<compile_context>
chip_gen: v7x
topology: tpu7x:2x2x1
jax: 0.10.0
libtpu: 0.0.40
codegen_flags: <defaults>
</compile_context>

<pallas_src>
import jax
import jax.numpy as jnp
import numpy as np
from jax.experimental import pallas as pl
from jax.experimental.pallas import tpu as pltpu

# --- small, AFM-consistent hyperparameters -------------------------------
N_VOCAB = 100      # n  (embedding table size)
K_EMBD = 32        # k  (embedding dim)
ATTN_FACTOR = 16   # attn_factor
BATCH = 2
FIELDS = 8         # number of feature fields per sample


def afm_kernel(embd_ref, linbf_ref, w1_ref, b1_ref, w2_ref, wf_ref, out_ref):
    """One batch tile of the AFM hot path, entirely in VMEM.

    embd_ref : (TB, F, K)  field embeddings
    linbf_ref: (TB, 1)     linear-part sum + fc_final bias (precomputed on host)
    w1_ref   : (K, A)      attn_fc[0] weight (stored (in, out))
    b1_ref   : (1, A)      attn_fc[0] bias
    w2_ref   : (1, A)      attn_fc[2] weight as a row vector
    wf_ref   : (1, K)      fc_final weight as a row vector
    out_ref  : (TB, 1)     sigmoid output
    """
    e = embd_ref[...].astype(jnp.float32)                     # (TB, F, K)
    TB, F, K = e.shape

    # pairwise_interactions = embd.unsqueeze(2) * embd.unsqueeze(1)
    # (single (TB,F,F,K) temporary; it feeds the attention MLP, so it is needed)
    p = e[:, :, None, :] * e[:, None, :, :]                   # (TB, F, F, K)
    p2 = p.reshape(TB * F * F, K)                             # (M, K), M = TB*F*F

    # attention MLP layer 1 on the MXU: Linear(K, A) + ReLU
    h = jnp.dot(p2, w1_ref[...], preferred_element_type=jnp.float32) + b1_ref[...]
    h = jnp.maximum(h, 0.0)                                   # (M, A)
    A = h.shape[1]

    # attention MLP layer 2 is Linear(A, 1): lane-wise mul + reduce on the VPU
    # instead of an N=1 MXU matmul.  (The scalar bias b2 shifts every score by
    # the same constant and is a no-op under softmax -> omitted.)
    h4 = h.reshape(TB, F, F, A)                               # layout-preserving split
    s = jnp.sum(h4 * w2_ref[...], axis=-1)                    # (TB, F, F)

    # softmax over dim=2 (second field axis), numerically stable
    m = jnp.max(s, axis=2, keepdims=True)
    ex = jnp.exp(s - m)
    denom = jnp.sum(ex, axis=2, keepdims=True)
    probs = ex * pl.reciprocal(denom, approx=False)           # (TB, F, F)

    # Factored weighted sum (avoids a second (TB,F,F,K) temp):
    #   w_int[b,i,k]  = e[b,i,k] * sum_j probs[b,i,j] * e[b,j,k]
    #   w_embd[b,k]   = sum_i w_int[b,i,k]
    pe = jnp.einsum('bij,bjk->bik', probs, e,
                    preferred_element_type=jnp.float32)       # (TB, F, K) on MXU
    w_embd = jnp.sum(e * pe, axis=1)                          # (TB, K)

    # fc_final: Linear(K, 1) as a lane-dense reduce (bias folded into linbf)
    total = jnp.sum(w_embd * wf_ref[...], axis=-1, keepdims=True)  # (TB, 1)

    z = linbf_ref[...] + total
    out_ref[...] = pl.reciprocal(1.0 + jnp.exp(-z), approx=False)  # sigmoid


def make_params(key):
    """Deterministic parameter init (shapes per AFM.__init__)."""
    ks = jax.random.split(key, 8)
    lin_tbl = jax.random.normal(ks[0], (N_VOCAB, 1), jnp.float32) * 0.1
    v_tbl = jax.random.normal(ks[1], (N_VOCAB, K_EMBD), jnp.float32) * 0.1
    # attn_fc[0]: Linear(k, attn_factor)  (stored as (in, out))
    w1 = jax.random.normal(ks[2], (K_EMBD, ATTN_FACTOR), jnp.float32) * 0.2
    b1 = jax.random.normal(ks[3], (1, ATTN_FACTOR), jnp.float32) * 0.1
    # attn_fc[2]: Linear(attn_factor, 1)
    w2 = jax.random.normal(ks[4], (ATTN_FACTOR, 1), jnp.float32) * 0.2
    b2 = jax.random.normal(ks[5], (1, 1), jnp.float32) * 0.1
    # fc_final: Linear(k, 1)
    wf = jax.random.normal(ks[6], (K_EMBD, 1), jnp.float32) * 0.2
    bf = jax.random.normal(ks[7], (1, 1), jnp.float32) * 0.1
    return lin_tbl, v_tbl, w1, b1, w2, b2, wf, bf


def afm_forward(x, params, *, block_b=128):
    lin_tbl, v_tbl, w1, b1, w2, b2, wf, bf = params
    del b2  # softmax-shift invariant -> mathematically a no-op (see kernel)

    B, F = x.shape
    K = v_tbl.shape[1]
    A = w1.shape[1]

    # glue: embedding table gathers stay in plain JAX
    embd = v_tbl[x]                                      # (B, F, K)
    lin = lin_tbl[x, 0]                                  # (B, F)
    # hoist the trivial linear-term reduction and fold fc_final's bias here
    linbf = lin.sum(axis=1, keepdims=True) + bf[0, 0]    # (B, 1)

    # batch tile: >=8 so the (TB,1) blocks are sublane-aligned and TB*F*F
    # gives the MXU a reasonable M; padded batch is masked off on return.
    tb = min(block_b, max(8, int(pl.next_power_of_2(B))))
    bp = pl.cdiv(B, tb) * tb
    if bp != B:
        pad = bp - B
        embd = jnp.pad(embd, ((0, pad), (0, 0), (0, 0)))
        linbf = jnp.pad(linbf, ((0, pad), (0, 0)))

    out = pl.pallas_call(
        afm_kernel,
        out_shape=jax.ShapeDtypeStruct((bp, 1), jnp.float32),
        grid_spec=pltpu.PrefetchScalarGridSpec(
            num_scalar_prefetch=0,
            grid=(bp // tb,),
            in_specs=[
                pl.BlockSpec((tb, F, K), lambda i: (i, 0, 0)),   # embd tile
                pl.BlockSpec((tb, 1), lambda i: (i, 0)),         # lin+bias tile
                pl.BlockSpec((K, A), lambda i: (0, 0)),          # w1 (resident)
                pl.BlockSpec((1, A), lambda i: (0, 0)),          # b1
                pl.BlockSpec((1, A), lambda i: (0, 0)),          # w2 row
                pl.BlockSpec((1, K), lambda i: (0, 0)),          # wf row
            ],
            out_specs=pl.BlockSpec((tb, 1), lambda i: (i, 0)),
        ),
        compiler_params=pltpu.CompilerParams(
            dimension_semantics=("parallel",)),
    )(embd, linbf, w1, b1, w2.reshape(1, A), wf.reshape(1, K))

    return out[:B, 0]                                    # .squeeze(1)


def afm_reference(x, params):
    """Pure-JAX reference mirroring the PyTorch forward exactly."""
    lin_tbl, v_tbl, w1, b1, w2, b2, wf, bf = params
    linear_part = lin_tbl[x].sum(axis=1)                       # (B, 1)
    e = v_tbl[x]                                               # (B, F, K)
    p = e[:, :, None, :] * e[:, None, :, :]                    # (B, F, F, K)
    h = jnp.maximum(p @ w1 + b1[0], 0.0)
    s = (h @ w2 + b2[0])[..., 0]                               # (B, F, F)
    probs = jax.nn.softmax(s, axis=2)
    w_int = jnp.sum(probs[..., None] * p, axis=2)
    w_embd = jnp.sum(w_int, axis=1)
    total = w_embd @ wf + bf[0]                                # (B, 1)
    return jax.nn.sigmoid(linear_part + total)[:, 0]


if __name__ == "__main__":
    key = jax.random.PRNGKey(0)
    kp, kx = jax.random.split(key)
    params = make_params(kp)
    x = jax.random.randint(kx, (BATCH, FIELDS), 0, N_VOCAB, dtype=jnp.int32)

    out = afm_forward(x, params)
    out = jax.block_until_ready(out)

    ref = jax.block_until_ready(afm_reference(x, params))
    np.testing.assert_allclose(np.asarray(out), np.asarray(ref),
                               rtol=1e-5, atol=1e-5)
    print("KERNEL_OK")
</pallas_src>

<mosaic_0001>
module attributes {stable_mosaic.version = 11 : i64} {
  func.func @afm_kernel(%arg0: i32, %arg1: memref<8x8x32xf32, #tpu.memory_space<vmem>>, %arg2: memref<8x1xf32, #tpu.memory_space<vmem>>, %arg3: memref<32x16xf32, #tpu.memory_space<vmem>>, %arg4: memref<1x16xf32, #tpu.memory_space<vmem>>, %arg5: memref<1x16xf32, #tpu.memory_space<vmem>>, %arg6: memref<1x32xf32, #tpu.memory_space<vmem>>, %arg7: memref<8x1xf32, #tpu.memory_space<vmem>>) attributes {dimension_semantics = [#tpu.dimension_semantics<parallel>], iteration_bounds = array<i64: 1>, scalar_prefetch = 0 : i64, scratch_operands = 0 : i64, tpu.core_type = #tpu.core_type<tc>, window_params = [{transform_indices = @transform_0, window_bounds = array<i64: 8, 8, 32>}, {transform_indices = @transform_1, window_bounds = array<i64: 8, 1>}, {pipeline_mode = #tpu.pipeline_mode<synchronous>, transform_indices = @transform_2, window_bounds = array<i64: 32, 16>}, {pipeline_mode = #tpu.pipeline_mode<synchronous>, transform_indices = @transform_3, window_bounds = array<i64: 1, 16>}, {pipeline_mode = #tpu.pipeline_mode<synchronous>, transform_indices = @transform_4, window_bounds = array<i64: 1, 16>}, {pipeline_mode = #tpu.pipeline_mode<synchronous>, transform_indices = @transform_5, window_bounds = array<i64: 1, 32>}, {transform_indices = @transform_6, window_bounds = array<i64: 8, 1>}]} {
    %c0 = arith.constant 0 : index
    %c0_0 = arith.constant 0 : index
    %c0_1 = arith.constant 0 : index
    %0 = vector.load %arg1[%c0, %c0_0, %c0_1] : memref<8x8x32xf32, #tpu.memory_space<vmem>>, vector<8x8x32xf32>
    %1 = vector.shape_cast %0 : vector<8x8x32xf32> to vector<8x8x1x32xf32>
    %2 = vector.shape_cast %0 : vector<8x8x32xf32> to vector<8x1x8x32xf32>
    %3 = vector.broadcast %1 : vector<8x8x1x32xf32> to vector<8x8x8x32xf32>
    %4 = vector.broadcast %2 : vector<8x1x8x32xf32> to vector<8x8x8x32xf32>
    %5 = arith.mulf %3, %4 : vector<8x8x8x32xf32>
    %6 = vector.shape_cast %5 : vector<8x8x8x32xf32> to vector<512x32xf32>
    %c0_2 = arith.constant 0 : index
    %c0_3 = arith.constant 0 : index
    %7 = vector.load %arg3[%c0_2, %c0_3] : memref<32x16xf32, #tpu.memory_space<vmem>>, vector<32x16xf32>
    %cst = arith.constant dense<0.000000e+00> : vector<512x16xf32>
    %8 = tpu.matmul %6, %7, %cst {dimension_numbers = #tpu.dot_dimension_numbers<[1], [0], [0], [1], [0, 0, 1, 1], [], []>} : vector<512x32xf32>, vector<32x16xf32>, vector<512x16xf32> -> vector<512x16xf32>
    %c0_4 = arith.constant 0 : index
    %c0_5 = arith.constant 0 : index
    %9 = vector.load %arg4[%c0_4, %c0_5] : memref<1x16xf32, #tpu.memory_space<vmem>>, vector<1x16xf32>
    %10 = vector.broadcast %9 : vector<1x16xf32> to vector<512x16xf32>
    %11 = arith.addf %8, %10 : vector<512x16xf32>
    %cst_6 = arith.constant 0.000000e+00 : f32
    %12 = vector.broadcast %cst_6 : f32 to vector<512x16xf32>
    %13 = arith.maximumf %11, %12 : vector<512x16xf32>
    %14 = vector.shape_cast %13 : vector<512x16xf32> to vector<8x8x8x16xf32>
    %c0_7 = arith.constant 0 : index
    %c0_8 = arith.constant 0 : index
    %15 = vector.load %arg5[%c0_7, %c0_8] : memref<1x16xf32, #tpu.memory_space<vmem>>, vector<1x16xf32>
    %16 = vector.shape_cast %15 : vector<1x16xf32> to vector<1x1x1x16xf32>
    %17 = vector.broadcast %16 : vector<1x1x1x16xf32> to vector<8x8x8x16xf32>
    %18 = arith.mulf %14, %17 : vector<8x8x8x16xf32>
    %cst_9 = arith.constant dense<0.000000e+00> : vector<8x8x8xf32>
    %19 = vector.multi_reduction <add>, %18, %cst_9 [3] : vector<8x8x8x16xf32> to vector<8x8x8xf32>
    %cst_10 = arith.constant dense<0xFF800000> : vector<8x8xf32>
    %20 = vector.multi_reduction <maximumf>, %19, %cst_10 [2] : vector<8x8x8xf32> to vector<8x8xf32>
    %21 = vector.shape_cast %20 : vector<8x8xf32> to vector<8x8x1xf32>
    %22 = vector.broadcast %21 : vector<8x8x1xf32> to vector<8x8x8xf32>
    %23 = arith.subf %19, %22 : vector<8x8x8xf32>
    %24 = math.exp %23 : vector<8x8x8xf32>
    %cst_11 = arith.constant dense<0.000000e+00> : vector<8x8xf32>
    %25 = vector.multi_reduction <add>, %24, %cst_11 [2] : vector<8x8x8xf32> to vector<8x8xf32>
    %26 = vector.shape_cast %25 : vector<8x8xf32> to vector<8x8x1xf32>
    %27 = tpu.reciprocal %26 : vector<8x8x1xf32> -> vector<8x8x1xf32>
    %28 = vector.broadcast %27 : vector<8x8x1xf32> to vector<8x8x8xf32>
    %29 = arith.mulf %24, %28 : vector<8x8x8xf32>
    "tpu.trace_start"() <{level = 10 : i32, message = "bij,bjk->bik"}> : () -> ()
    %cst_12 = arith.constant dense<0.000000e+00> : vector<8x8x32xf32>
    %30 = tpu.matmul %29, %0, %cst_12 {dimension_numbers = #tpu.dot_dimension_numbers<[2], [1], [1], [2], [0, 0, 0, 1, 1, 2], [0], [0]>} : vector<8x8x8xf32>, vector<8x8x32xf32>, vector<8x8x32xf32> -> vector<8x8x32xf32>
    "tpu.trace_stop"() : () -> ()
    %31 = arith.mulf %0, %30 : vector<8x8x32xf32>
    %cst_13 = arith.constant dense<0.000000e+00> : vector<8x32xf32>
    %32 = vector.multi_reduction <add>, %31, %cst_13 [1] : vector<8x8x32xf32> to vector<8x32xf32>
    %c0_14 = arith.constant 0 : index
    %c0_15 = arith.constant 0 : index
    %33 = vector.load %arg6[%c0_14, %c0_15] : memref<1x32xf32, #tpu.memory_space<vmem>>, vector<1x32xf32>
    %34 = vector.broadcast %33 : vector<1x32xf32> to vector<8x32xf32>
    %35 = arith.mulf %32, %34 : vector<8x32xf32>
    %cst_16 = arith.constant dense<0.000000e+00> : vector<8xf32>
    %36 = vector.multi_reduction <add>, %35, %cst_16 [1] : vector<8x32xf32> to vector<8xf32>
    %37 = vector.shape_cast %36 : vector<8xf32> to vector<8x1xf32>
    %c0_17 = arith.constant 0 : index
    %c0_18 = arith.constant 0 : index
    %38 = vector.load %arg2[%c0_17, %c0_18] : memref<8x1xf32, #tpu.memory_space<vmem>>, vector<8x1xf32>
    %39 = arith.addf %38, %37 : vector<8x1xf32>
    %cst_19 = arith.constant 0.000000e+00 : f32
    %40 = vector.broadcast %cst_19 : f32 to vector<8x1xf32>
    %41 = arith.subf %40, %39 : vector<8x1xf32>
    %42 = math.exp %41 : vector<8x1xf32>
    %cst_20 = arith.constant 1.000000e+00 : f32
    %43 = vector.broadcast %cst_20 : f32 to vector<8x1xf32>
    %44 = arith.addf %43, %42 : vector<8x1xf32>
    %45 = tpu.reciprocal %44 : vector<8x1xf32> -> vector<8x1xf32>
    %c0_21 = arith.constant 0 : index
    %c0_22 = arith.constant 0 : index
    %46 = vector.load %arg7[%c0_21, %c0_22] : memref<8x1xf32, #tpu.memory_space<vmem>>, vector<8x1xf32>
    tpu.vector_store %arg7[%c0_21, %c0_22], %45 {strides = array<i32>} : memref<8x1xf32, #tpu.memory_space<vmem>>, vector<8x1xf32>,
    return
  }
  func.func @transform_0(%arg0: i32) -> (i32, i32, i32) {
    %c0_i32 = arith.constant 0 : i32
    %c0_i32_0 = arith.constant 0 : i32
    %c0_i32_1 = arith.constant 0 : i32
    return %arg0, %c0_i32, %c0_i32_0 : i32, i32, i32
  }
  func.func @transform_1(%arg0: i32) -> (i32, i32) {
    %c0_i32 = arith.constant 0 : i32
    %c0_i32_0 = arith.constant 0 : i32
    return %arg0, %c0_i32 : i32, i32
  }
  func.func @transform_2(%arg0: i32) -> (i32, i32) {
    %c0_i32 = arith.constant 0 : i32
    %c0_i32_0 = arith.constant 0 : i32
    %c0_i32_1 = arith.constant 0 : i32
    return %c0_i32, %c0_i32_0 : i32, i32
  }
  func.func @transform_3(%arg0: i32) -> (i32, i32) {
    %c0_i32 = arith.constant 0 : i32
    %c0_i32_0 = arith.constant 0 : i32
    %c0_i32_1 = arith.constant 0 : i32
    return %c0_i32, %c0_i32_0 : i32, i32
  }
  func.func @transform_4(%arg0: i32) -> (i32, i32) {
    %c0_i32 = arith.constant 0 : i32
    %c0_i32_0 = arith.constant 0 : i32
    %c0_i32_1 = arith.constant 0 : i32
    return %c0_i32, %c0_i32_0 : i32, i32
  }
  func.func @transform_5(%arg0: i32) -> (i32, i32) {
    %c0_i32 = arith.constant 0 : i32
    %c0_i32_0 = arith.constant 0 : i32
    %c0_i32_1 = arith.constant 0 : i32
    return %c0_i32, %c0_i32_0 : i32, i32
  }
  func.func @transform_6(%arg0: i32) -> (i32, i32) {
    %c0_i32 = arith.constant 0 : i32
    %c0_i32_0 = arith.constant 0 : i32
    return %arg0, %c0_i32 : i32, i32
  }
}

</mosaic_0001>

<bundles_post_ra>
// kernel: tpu_custom_call.1
= control target key start
LH: loop header
LB: loop body
LE: loop exit
PB: predicated region body
PF: predicated region fallthrough
CT: control target
= control target key end

     0   :  { %11 = vsyncpa [#allocation3], 0  ;;  %s5459_s21 = smov [#allocation2]   ;;  %s7377_s0 = inlined_call_operand.hbm [shape: f32[8,8,32], index: 0, kind: input, shape index: {}]   ;;  %s7378_s1 = inlined_call_operand.vmem [shape: f32[8,1], index: 1, kind: input, shape index: {}]   ;;  %s7379_s2 = inlined_call_operand.vmem [shape: f32[32,16], index: 2, kind: input, shape index: {}]   ;;  %s7380_s3 = inlined_call_operand.vmem [shape: f32[1,16], index: 3, kind: input, shape index: {}]   ;;  %s7381_s4 = inlined_call_operand.vmem [shape: f32[1,16], index: 4, kind: input, shape index: {}]   ;;  %s7382_s5 = inlined_call_operand.vmem [shape: f32[1,32], index: 5, kind: input, shape index: {}]   ;;  %s7383_s6 = inlined_call_operand.vmem [shape: f32[8,1], index: 6, kind: output, shape index: {}]  }
   0x1   :  { %s17_s22 = sshll.u32 %s5459_s21, 4  ;;  %s5435_s25 = scalar_lea.hbm %s7377_s0, 1024  ;;  %s18_s22 = int_to_ptr.vmem [resolvable:$true] %s17_s22 }
   0x2   :  { %p5436_p0 = scmp.ne.s32.totalorder %s7377_s0, %s5435_s25  ;;  %p5439_p1 = scmp.lt.u32.totalorder %s5435_s25, %s7377_s0 }
   0x4   :  { %p5441_p2 = pnand %p5439_p1, %p5436_p0 }
   0x6   :  { %5444 = shalt.err (!%p5441_p2)
}
   0x7   :  { %s5445_s30 = scalar_lea.vmem %s18_s22, 1024  ;;  %p5450_p4 = scmp.lt.s32.totalorder %s18_s22, %s18_s22 }
   0x8   :  { %p5446_p3 = scmp.ne.s32.totalorder %s18_s22, %s5445_s30  ;;  %p5451_p5 = scmp.lt.s32.totalorder %s5445_s30, %s5445_s30 }
   0xa   :  { %p5452_p6 = por %p5451_p5, %p5450_p4 }
   0xc   :  { %p5453_p7 = pnand %p5452_p6, %p5446_p3 }
   0xe   :  { %5456 = shalt.err (!%p5453_p7)
}
   0xf   :  { %s5460_s7 = smov 128   ;;  %s5461_s8 = smov 8  }
  0x10   :  { %23 = dma.hbm_to_vmem [thread:$0]  %s7377_s0, 1024, %s18_s22, [#allocation3], %s5460_s7, %s5460_s7, %s5461_s8  }
  0x11   :  { %5457 = dma.done.wait [#allocation3], 1024  }
  0x12   :  { %5458 = vsyncadd [#allocation3], 4294966272  ;;  %v57_v0 = vlaneseq  ;;  %v5462_v1 = vmov 1966171168   ;;  %v829_v6 = vld [vmem:[%s7379_s2] sm:$0xff]  ;;  %v830_v7 = vld [vmem:[%s7379_s2 + $0x8] sm:$0xff] }
  0x13   :  { %v55_v2 = vunpack.c.l.s4 %v5462_v1  ;;  %v831_v8 = vld [vmem:[%s7379_s2 + $0x10] sm:$0xff]  ;;  %v832_v9 = vld [vmem:[%s7379_s2 + $0x18] sm:$0xff]  ;;  %v5250_v10 = vpack.c.bf16 %v830_v7, %v829_v6  ;;  %v5531_v12 = vld [vmem:[#allocation2] sm:$0xff]  ;;  %vm840_vm0 = vcmask 261120   ;;  %vm1553_vm1 = vcmask 130048  }
  0x14   :  { %v5514_v3 = vshrl.u32 %v57_v0, 7  ;;  %v5254_v11 = vpack.c.bf16 %v832_v9, %v831_v8  ;;  %v5536_v14 = vld [vmem:[#allocation2 + $0x28] sm:$0xff]  ;;  %v53_v18 = vcombine.high %v5531_v12, %v5531_v12  ;;  %v5548_v20 = vld [vmem:[#allocation2 + $0x30] sm:$0xff]  ;;  %vm2068_vm2 = vcmask 1041409  }
  0x15   :  { %v56_v4 = vunpack.c.0.s8 %v55_v2  ;;  %v5538_v15 = vld [vmem:[#allocation2 + $0x8] sm:$0xff]  ;;  %v298_v19 = vcombine.high %v5536_v14, %v5536_v14  ;;  %5251 = vmatprep.subr.bf16.mxu0 %v5250_v10  ;;  %5258 = vmatprep.subr.bf16.mxu1 %v5250_v10  ;;  %vm2070_vm3 = vcmask 1042434   ;;  %vm2072_vm4 = vcmask 1043459  }
  0x16   :  { %v5534_v13 = vsub.s32 0, %v5514_v3  ;;  %v102_v23 = vcombine.high %v5538_v15, %v5538_v15  ;;  %5253 = vmatpush3.bf16.msra.mxu0 %v5250_v10  ;;  %5260 = vmatpush3.bf16.msra.mxu1 %v5250_v10  ;;  %vm2074_vm5 = vcmask 1044484   ;;  %vm2076_vm6 = vcmask 1045509  }
  0x17   :  { %v5517_v5 = vsub.s32 %v56_v4, %v5514_v3  ;;  %5255 = vmatprep.subr.bf16.mxu0 %v5254_v11  ;;  %5259 = vmatprep.subr.bf16.mxu1 %v5254_v11  ;;  %vm2078_vm7 = vcmask 1046534   ;;  %vm2080_vm8 = vcmask 1047559   ;;  %vm2139_vm9 = vcmask 64512  }
  0x18   :  { %vm5465_vm10 = vmmov 0   ;;  %vm4940_vm11 = vcmask 7168  }
  0x19   :  { %v60_v16 = vrot.slane %v5531_v12, %v5517_v5  ;;  %v305_v17 = vrot.slane %v5536_v14, %v5517_v5  ;;  %v5552_v21 = vrot.slane %v5538_v15, %v5517_v5  ;;  %v5556_v22 = vrot.slane %v5548_v20, %v5517_v5 }
  0x1a   :  { %v67_v28 = vrot.slane %v53_v18, %v5517_v5  ;;  %v312_v29 = vrot.slane %v298_v19, %v5517_v5  ;;  %5257 = vmatpush3.bf16.msra.mxu0 %v5254_v11  ;;  %5261 = vmatpush3.bf16.msra.mxu1 %v5254_v11 }
  0x1b   :  { %v68_v24 = vcombine.high %v60_v16, %v60_v16  ;;  %v76_v25 = vrot.slane %v60_v16, %v5517_v5  ;;  %v313_v26 = vcombine.high %v305_v17, %v305_v17  ;;  %v321_v27 = vrot.slane %v305_v17, %v5517_v5 }
  0x1c   :  { %v83_v36 = vrot.slane %v67_v28, %v5517_v5  ;;  %v69_v37 = vcombine.high %v67_v28, %v67_v28  ;;  %v328_v55 = vrot.slane %v312_v29, %v5517_v5  ;;  %v314_v58 = vcombine.high %v312_v29, %v312_v29 }
  0x1d   :  { %v98_v30 = vcombine.high %v76_v25, %v76_v25  ;;  %v448_v31 = vrot.slane %v76_v25, %v5534_v13  ;;  %v90_v32 = vrot.slane %v68_v24, %v5517_v5  ;;  %v335_v33 = vrot.slane %v313_v26, %v5517_v5 }
  0x1e   :  { %v343_v34 = vcombine.high %v321_v27, %v321_v27  ;;  %v608_v35 = vrot.slane %v321_v27, %v5534_v13  ;;  %v464_v48 = vrot.slane %v83_v36, %v5534_v13  ;;  %v97_v52 = vrot.slane %v69_v37, %v5517_v5 }
  0x1f   :  { %v765_v38 = vmul.f32 %v448_v31, %v5531_v12  ;;  %v452_v39 = vrot.slane %v90_v32, %v5534_v13  ;;  %v612_v40 = vrot.slane %v335_v33, %v5534_v13  ;;  %v456_v42 = vrot.slane %v98_v30, %v5534_v13 }
  0x20   :  { %v805_v41 = vmul.f32 %v608_v35, %v5536_v14  ;;  %v100_v43 = vcombine.high %v90_v32, %v90_v32  ;;  %v616_v44 = vrot.slane %v343_v34, %v5534_v13  ;;  %v345_v47 = vcombine.high %v335_v33, %v335_v33 }
  0x21   :  { %5114 = vmatprep.mubr.msk.f32.mxu0 %vm840_vm0, %v765_v38  ;;  %v766_v45 = vmul.f32 %v452_v39, %v5531_v12  ;;  %v806_v46 = vmul.f32 %v612_v40, %v5536_v14  ;;  %v767_v49 = vmul.f32 %v456_v42, %v5531_v12  ;;  %v769_v54 = vmul.f32 %v464_v48, %v5531_v12 }
  0x22   :  { %5174 = vmatprep.mubr.msk.f32.mxu1 %vm840_vm0, %v805_v41  ;;  %v460_v50 = vrot.slane %v100_v43, %v5534_v13  ;;  %v807_v51 = vmul.f32 %v616_v44, %v5536_v14  ;;  %v620_v53 = vrot.slane %v345_v47, %v5534_v13  ;;  %v468_v57 = vrot.slane %v97_v52, %v5534_v13  ;;  %v5642_v43 = vld [vmem:[#allocation2 + $0x10] sm:$0xff] }
  0x23   :  { %5115 = vmatmul.mubr.msk.f32.vlgmr.msra.gmra.mrb[0].mxu0 %vm840_vm0, %v766_v45  ;;  %5175 = vmatmul.mubr.msk.f32.vlgmr.msra.gmra.mrb[0].mxu1 %vm840_vm0, %v806_v46  ;;  %v624_v60 = vrot.slane %v328_v55, %v5534_v13  ;;  %v99_v61 = vcombine.high %v83_v36, %v83_v36  ;;  %v101_v62 = vcombine.high %v97_v52, %v97_v52 }
  0x24   :  { %5117 = vmatprep.mubr.msk.f32.mxu0 %vm840_vm0, %v767_v49  ;;  %v768_v56 = vmul.f32 %v460_v50, %v5531_v12  ;;  %5177 = vmatprep.mubr.msk.f32.mxu1 %vm840_vm0, %v807_v51  ;;  %v808_v59 = vmul.f32 %v620_v53, %v5536_v14  ;;  %v770_v63 = vmul.f32 %v468_v57, %v5531_v12 }
  0x25   :  { %v342_v1 = vrot.slane %v314_v58, %v5517_v5  ;;  %v344_v2 = vcombine.high %v328_v55, %v328_v55  ;;  %v125_v4 = vrot.slane %v5552_v21, %v5517_v5  ;;  %v809_v6 = vmul.f32 %v624_v60, %v5536_v14 }
  0x26   :  { %v472_v7 = vrot.slane %v99_v61, %v5534_v13  ;;  %v476_v8 = vrot.slane %v101_v62, %v5534_v13  ;;  %v117_v19 = vcombine.high %v5552_v21, %v5552_v21  ;;  %v370_v24 = vrot.slane %v5556_v22, %v5517_v5 }
  0x27   :  { %5118 = vmatmul.mubr.msk.f32.gmra.mrb[2].mxu0 %vm840_vm0, %v768_v56  ;;  %5178 = vmatmul.mubr.msk.f32.gmra.mrb[2].mxu1 %vm840_vm0, %v808_v59  ;;  %v628_v9 = vrot.slane %v342_v1, %v5534_v13  ;;  %v632_v10 = vrot.slane %v344_v2, %v5534_v13  ;;  %v346_v11 = vcombine.high %v342_v1, %v342_v1  ;;  %v5663_v59 = vld [vmem:[#allocation2 + $0x38] sm:$0xff] }
  0x28   :  { %5120 = vmatprep.mubr.msk.f32.mxu0 %vm840_vm0, %v769_v54  ;;  %v480_v16 = vrot.slane %v125_v4, %v5534_v13  ;;  %5180 = vmatprep.mubr.msk.f32.mxu1 %vm840_vm0, %v809_v6  ;;  %v771_v17 = vmul.f32 %v472_v7, %v5531_v12  ;;  %v772_v18 = vmul.f32 %v476_v8, %v5531_v12 }
  0x29   :  { %v810_v25 = vmul.f32 %v628_v9, %v5536_v14  ;;  %v811_v26 = vmul.f32 %v632_v10, %v5536_v14  ;;  %v636_v27 = vrot.slane %v346_v11, %v5534_v13  ;;  %v139_v29 = vrot.slane %v117_v19, %v5517_v5 }
  0x2a   :  { %v773_v28 = vmul.f32 %v480_v16, %v5538_v15  ;;  %v640_v12 = vrot.slane %v370_v24, %v5534_v13  ;;  %v362_v21 = vcombine.high %v5556_v22, %v5556_v22  ;;  %v147_v30 = vcombine.high %v125_v4, %v125_v4 }
  0x2b   :  { %5121 = vmatmul.mubr.msk.f32.gmra.mrb[4].mxu0 %vm840_vm0, %v770_v63  ;;  %5181 = vmatmul.mubr.msk.f32.gmra.mrb[4].mxu1 %vm840_vm0, %v810_v25  ;;  %v812_v31 = vmul.f32 %v636_v27, %v5536_v14  ;;  %v392_v32 = vcombine.high %v370_v24, %v370_v24  ;;  %v116_v33 = vrot.slane %v102_v23, %v5517_v5 }
  0x2c   :  { %5123 = vmatprep.mubr.msk.f32.mxu0 %vm840_vm0, %v771_v17  ;;  %5183 = vmatprep.mubr.msk.f32.mxu1 %vm840_vm0, %v811_v26  ;;  %v484_v34 = vrot.slane %v139_v29, %v5534_v13  ;;  %v813_v35 = vmul.f32 %v640_v12, %v5548_v20  ;;  %v384_v22 = vrot.slane %v362_v21, %v5517_v5 }
  0x2d   :  { %v488_v36 = vrot.slane %v147_v30, %v5534_v13  ;;  %v149_v37 = vcombine.high %v139_v29, %v139_v29  ;;  %v648_v38 = vrot.slane %v392_v32, %v5534_v13  ;;  %v132_v14 = vrot.slane %v116_v33, %v5517_v5 }
  0x2e   :  { %v118_v39 = vcombine.high %v116_v33, %v116_v33  ;;  %v774_v23 = vmul.f32 %v484_v34, %v5538_v15  ;;  %v644_v40 = vrot.slane %v384_v22, %v5534_v13  ;;  %v394_v42 = vcombine.high %v384_v22, %v384_v22  ;;  %v5700_v22 = vld [vmem:[#allocation2 + $0x18] sm:$0xff] }
  0x2f   :  { %5124 = vmatmul.mubr.msk.f32.gmra.mrb[6].mxu0 %vm840_vm0, %v772_v18  ;;  %v775_v41 = vmul.f32 %v488_v36, %v5538_v15  ;;  %5184 = vmatmul.mubr.msk.f32.gmra.mrb[6].mxu1 %vm840_vm0, %v812_v31  ;;  %v492_v44 = vrot.slane %v149_v37, %v5534_v13  ;;  %v815_v45 = vmul.f32 %v648_v38, %v5548_v20 }
  0x30   :  { %5126 = vmatprep.mubr.msk.f32.mxu0 %vm840_vm0, %v773_v28  ;;  %v496_v46 = vrot.slane %v132_v14, %v5534_v13  ;;  %5186 = vmatprep.mubr.msk.f32.mxu1 %vm840_vm0, %v813_v35  ;;  %v814_v47 = vmul.f32 %v644_v40, %v5548_v20  ;;  %v652_v48 = vrot.slane %v394_v42, %v5534_v13 }
  0x31   :  { %v146_v49 = vrot.slane %v118_v39, %v5517_v5  ;;  %v347_v50 = vcombine.high %v5548_v20, %v5548_v20  ;;  %v776_v51 = vmul.f32 %v492_v44, %v5538_v15  ;;  %v148_v53 = vcombine.high %v132_v14, %v132_v14 }
  0x32   :  { %v777_v52 = vmul.f32 %v496_v46, %v5538_v15  ;;  %v158_v54 = vrot.slane %v5642_v43, %v5517_v5  ;;  %v816_v55 = vmul.f32 %v652_v48, %v5548_v20  ;;  %v403_v8 = vrot.slane %v5663_v59, %v5517_v5 }
  0x33   :  { %5127 = vmatmul.mubr.msk.f32.gmra.mrb[8].mxu0 %vm840_vm0, %v774_v23  ;;  %v500_v56 = vrot.slane %v146_v49, %v5534_v13  ;;  %v361_v57 = vrot.slane %v347_v50, %v5517_v5  ;;  %v150_v58 = vcombine.high %v146_v49, %v146_v49  ;;  %5187 = vmatmul.mubr.msk.f32.gmra.mrb[8].mxu1 %vm840_vm0, %v814_v47 }
  0x34   :  { %5129 = vmatprep.mubr.msk.f32.mxu0 %vm840_vm0, %v775_v41  ;;  %v504_v60 = vrot.slane %v148_v53, %v5534_v13  ;;  %v174_v61 = vrot.slane %v158_v54, %v5517_v5  ;;  %v166_v62 = vcombine.high %v158_v54, %v158_v54  ;;  %5189 = vmatprep.mubr.msk.f32.mxu1 %vm840_vm0, %v815_v45 }
  0x35   :  { %v377_v63 = vrot.slane %v361_v57, %v5517_v5  ;;  %v363_v1 = vcombine.high %v361_v57, %v361_v57  ;;  %v508_v2 = vrot.slane %v150_v58, %v5534_v13  ;;  %v778_v4 = vmul.f32 %v500_v56, %v5538_v15 }
  0x36   :  { %v512_v6 = vrot.slane %v174_v61, %v5534_v13  ;;  %v188_v7 = vrot.slane %v166_v62, %v5517_v5  ;;  %v779_v11 = vmul.f32 %v504_v60, %v5538_v15  ;;  %v419_v19 = vrot.slane %v403_v8, %v5517_v5 }
  0x37   :  { %5130 = vmatmul.mubr.msk.f32.gmra.mrb[10].mxu0 %vm840_vm0, %v776_v51  ;;  %v656_v9 = vrot.slane %v377_v63, %v5534_v13  ;;  %v391_v10 = vrot.slane %v363_v1, %v5517_v5  ;;  %v393_v16 = vcombine.high %v377_v63, %v377_v63  ;;  %5190 = vmatmul.mubr.msk.f32.gmra.mrb[10].mxu1 %vm840_vm0, %v816_v55 }
  0x38   :  { %5132 = vmatprep.mubr.msk.f32.mxu0 %vm840_vm0, %v777_v52  ;;  %v780_v17 = vmul.f32 %v508_v2, %v5538_v15  ;;  %v516_v18 = vrot.slane %v188_v7, %v5534_v13  ;;  %v781_v28 = vmul.f32 %v512_v6, %v5642_v43  ;;  %v672_v29 = vrot.slane %v419_v19, %v5534_v13 }
  0x39   :  { %v817_v24 = vmul.f32 %v656_v9, %v5548_v20  ;;  %v660_v25 = vrot.slane %v391_v10, %v5534_v13  ;;  %v664_v26 = vrot.slane %v393_v16, %v5534_v13  ;;  %v395_v27 = vcombine.high %v391_v10, %v391_v10 }
  0x3a   :  { %v411_v12 = vcombine.high %v403_v8, %v403_v8  ;;  %v196_v21 = vcombine.high %v174_v61, %v174_v61  ;;  %v782_v32 = vmul.f32 %v516_v18, %v5642_v43  ;;  %v198_v35 = vcombine.high %v188_v7, %v188_v7 }
  0x3b   :  { %5133 = vmatmul.mubr.msk.f32.gmra.mrb[12].mxu0 %vm840_vm0, %v778_v4  ;;  %5192 = vmatprep.mubr.msk.f32.mxu1 %vm840_vm0, %v817_v24  ;;  %v818_v15 = vmul.f32 %v660_v25, %v5548_v20  ;;  %v819_v30 = vmul.f32 %v664_v26, %v5548_v20  ;;  %v668_v31 = vrot.slane %v395_v27, %v5534_v13 }
  0x3c   :  { %5135 = vmatprep.mubr.msk.f32.mxu0 %vm840_vm0, %v779_v11  ;;  %v433_v33 = vrot.slane %v411_v12, %v5517_v5  ;;  %v520_v34 = vrot.slane %v196_v21, %v5534_v13  ;;  %v441_v37 = vcombine.high %v419_v19, %v419_v19  ;;  %v151_v38 = vcombine.high %v5642_v43, %v5642_v43 }
  0x3d   :  { %5193 = vmatmul.mubr.msk.f32.gmra.mrb[12].mxu1 %vm840_vm0, %v818_v15  ;;  %v820_v36 = vmul.f32 %v668_v31, %v5548_v20  ;;  %v396_v14 = vcombine.high %v5663_v59, %v5663_v59  ;;  %v821_v39 = vmul.f32 %v672_v29, %v5663_v59  ;;  %v524_v40 = vrot.slane %v198_v35, %v5534_v13  ;;  %v5766_v35 = vld [vmem:[#allocation2 + $0x20] sm:$0xff] }
  0x3e   :  { %5195 = vmatprep.mubr.msk.f32.mxu1 %vm840_vm0, %v819_v30  ;;  %v676_v23 = vrot.slane %v433_v33, %v5534_v13  ;;  %v443_v41 = vcombine.high %v433_v33, %v433_v33  ;;  %v680_v20 = vrot.slane %v441_v37, %v5534_v13  ;;  %v165_v42 = vrot.slane %v151_v38, %v5517_v5 }
  0x3f   :  { %5136 = vmatmul.mubr.msk.f32.gmra.mrb[14].mxu0 %vm840_vm0, %v780_v17  ;;  %v410_v44 = vrot.slane %v396_v14, %v5517_v5  ;;  %v207_v45 = vrot.slane %v5700_v22, %v5517_v5  ;;  %v783_v47 = vmul.f32 %v520_v34, %v5642_v43  ;;  %v784_v52 = vmul.f32 %v524_v40, %v5642_v43 }
  0x40   :  { %5138 = vmatprep.mubr.msk.f32.mxu0 %vm840_vm0, %v781_v28  ;;  %v822_v46 = vmul.f32 %v676_v23, %v5663_v59  ;;  %v684_v48 = vrot.slane %v443_v41, %v5534_v13  ;;  %v181_v49 = vrot.slane %v165_v42, %v5517_v5  ;;  %v167_v50 = vcombine.high %v165_v42, %v165_v42 }
  0x41   :  { %5196 = vmatmul.mubr.msk.f32.gmra.mrb[14].mxu1 %vm840_vm0, %v820_v36  ;;  %v426_v51 = vrot.slane %v410_v44, %v5517_v5  ;;  %v823_v53 = vmul.f32 %v680_v20, %v5663_v59  ;;  %v412_v54 = vcombine.high %v410_v44, %v410_v44  ;;  %v215_v55 = vcombine.high %v207_v45, %v207_v45 }
  0x42   :  { %5198 = vmatprep.mubr.msk.f32.mxu1 %vm840_vm0, %v821_v39  ;;  %v528_v56 = vrot.slane %v181_v49, %v5534_v13  ;;  %v195_v57 = vrot.slane %v167_v50, %v5517_v5  ;;  %v197_v60 = vcombine.high %v181_v49, %v181_v49  ;;  %v223_v63 = vrot.slane %v207_v45, %v5517_v5 }
  0x43   :  { %5139 = vmatmul.mubr.msk.f32.gmra.mrb[16].mxu0 %vm840_vm0, %v782_v32  ;;  %v688_v58 = vrot.slane %v426_v51, %v5534_v13  ;;  %v440_v61 = vrot.slane %v412_v54, %v5517_v5  ;;  %v442_v62 = vcombine.high %v426_v51, %v426_v51  ;;  %v200_v1 = vcombine.high %v5700_v22, %v5700_v22 }
  0x44   :  { %5141 = vmatprep.mubr.msk.f32.mxu0 %vm840_vm0, %v783_v47  ;;  %v824_v2 = vmul.f32 %v684_v48, %v5663_v59  ;;  %v785_v4 = vmul.f32 %v528_v56, %v5642_v43  ;;  %v532_v6 = vrot.slane %v195_v57, %v5534_v13  ;;  %v536_v7 = vrot.slane %v197_v60, %v5534_v13 }
  0x45   :  { %5199 = vmatmul.mubr.msk.f32.gmra.mrb[16].mxu1 %vm840_vm0, %v822_v46  ;;  %v825_v8 = vmul.f32 %v688_v58, %v5663_v59  ;;  %v692_v9 = vrot.slane %v440_v61, %v5534_v13  ;;  %v199_v10 = vcombine.high %v195_v57, %v195_v57  ;;  %v696_v11 = vrot.slane %v442_v62, %v5534_v13 }
  0x46   :  { %5201 = vmatprep.mubr.msk.f32.mxu1 %vm840_vm0, %v823_v53  ;;  %v786_v16 = vmul.f32 %v532_v6, %v5642_v43  ;;  %v444_v17 = vcombine.high %v440_v61, %v440_v61  ;;  %v237_v18 = vrot.slane %v215_v55, %v5517_v5  ;;  %v787_v19 = vmul.f32 %v536_v7, %v5642_v43 }
  0x47   :  { %5142 = vmatmul.mubr.msk.f32.gmra.mrb[18].mxu0 %vm840_vm0, %v784_v52  ;;  %v540_v24 = vrot.slane %v199_v10, %v5534_v13  ;;  %v544_v25 = vrot.slane %v223_v63, %v5534_v13  ;;  %v245_v26 = vcombine.high %v223_v63, %v223_v63  ;;  %v826_v27 = vmul.f32 %v692_v9, %v5663_v59 }
  0x48   :  { %5144 = vmatprep.mubr.msk.f32.mxu0 %vm840_vm0, %v785_v4  ;;  %v700_v28 = vrot.slane %v444_v17, %v5534_v13  ;;  %v214_v29 = vrot.slane %v200_v1, %v5517_v5  ;;  %v827_v12 = vmul.f32 %v696_v11, %v5663_v59  ;;  %v548_v15 = vrot.slane %v237_v18, %v5534_v13 }
  0x49   :  { %5202 = vmatmul.mubr.msk.f32.gmra.mrb[18].mxu1 %vm840_vm0, %v824_v2  ;;  %v788_v21 = vmul.f32 %v540_v24, %v5642_v43  ;;  %v247_v30 = vcombine.high %v237_v18, %v237_v18  ;;  %v789_v32 = vmul.f32 %v544_v25, %v5700_v22  ;;  %v552_v33 = vrot.slane %v245_v26, %v5534_v13 }
  0x4a   :  { %5204 = vmatprep.mubr.msk.f32.mxu1 %vm840_vm0, %v825_v8  ;;  %v216_v31 = vcombine.high %v214_v29, %v214_v29  ;;  %v230_v34 = vrot.slane %v214_v29, %v5517_v5  ;;  %v828_v36 = vmul.f32 %v700_v28, %v5663_v59  ;;  %v790_v43 = vmul.f32 %v548_v15, %v5700_v22 }
  0x4b   :  { %5145 = vmatmul.mubr.msk.f32.gmra.mrb[20].mxu0 %vm840_vm0, %v786_v16  ;;  %v556_v37 = vrot.slane %v247_v30, %v5534_v13  ;;  %v256_v14 = vrot.slane %v5766_v35, %v5517_v5  ;;  %v791_v39 = vmul.f32 %v552_v33, %v5700_v22  ;;  %v249_v40 = vcombine.high %v5766_v35, %v5766_v35 }
  0x4c   :  { %5147 = vmatprep.mubr.msk.f32.mxu0 %vm840_vm0, %v787_v19  ;;  %v244_v38 = vrot.slane %v216_v31, %v5517_v5  ;;  %v560_v23 = vrot.slane %v230_v34, %v5534_v13  ;;  %v246_v59 = vcombine.high %v230_v34, %v230_v34  ;;  %v5830_v19 = vld [vmem:[%s7380_s3] ss:$0 sm:$0xff] }
  0x4d   :  { %5205 = vmatmul.mubr.msk.f32.gmra.mrb[20].mxu1 %vm840_vm0, %v826_v27  ;;  %v792_v41 = vmul.f32 %v556_v37, %v5700_v22  ;;  %v264_v44 = vcombine.high %v256_v14, %v256_v14  ;;  %v272_v47 = vrot.slane %v256_v14, %v5517_v5  ;;  %v263_v51 = vrot.slane %v249_v40, %v5517_v5 }
  0x4e   :  { %5207 = vmatprep.mubr.msk.f32.mxu1 %vm840_vm0, %v827_v12  ;;  %v564_v20 = vrot.slane %v244_v38, %v5534_v13  ;;  %v248_v42 = vcombine.high %v244_v38, %v244_v38  ;;  %v793_v45 = vmul.f32 %v560_v23, %v5700_v22  ;;  %v568_v46 = vrot.slane %v246_v59, %v5534_v13  ;;  %v5837_v12 = vld [vmem:[%s7381_s4] ss:$0 sm:$0xff] }
  0x4f   :  { %5148 = vmatmul.mubr.msk.f32.gmra.mrb[22].mxu0 %vm840_vm0, %v788_v21  ;;  %v286_v50 = vrot.slane %v264_v44, %v5517_v5  ;;  %v576_v53 = vrot.slane %v272_v47, %v5534_v13  ;;  %v294_v54 = vcombine.high %v272_v47, %v272_v47  ;;  %v265_v58 = vcombine.high %v263_v51, %v263_v51 }
  0x50   :  { %5150 = vmatprep.mubr.msk.f32.mxu0 %vm840_vm0, %v789_v32  ;;  %v794_v48 = vmul.f32 %v564_v20, %v5700_v22  ;;  %v572_v49 = vrot.slane %v248_v42, %v5534_v13  ;;  %v795_v52 = vmul.f32 %v568_v46, %v5700_v22  ;;  %v279_v62 = vrot.slane %v263_v51, %v5517_v5 }
  0x51   :  { %5208 = vmatmul.mubr.msk.f32.gmra.mrb[22].mxu1 %vm840_vm0, %v828_v36  ;;  %v580_v56 = vrot.slane %v286_v50, %v5534_v13  ;;  %v296_v57 = vcombine.high %v286_v50, %v286_v50  ;;  %v797_v60 = vmul.f32 %v576_v53, %v5766_v35  ;;  %v584_v61 = vrot.slane %v294_v54, %v5534_v13 }
  0x52   :  { %v796_v55 = vmul.f32 %v572_v49, %v5700_v22  ;;  %v293_v22 = vrot.slane %v265_v58, %v5517_v5  ;;  %v592_v4 = vrot.slane %v279_v62, %v5534_v13  ;;  %v295_v6 = vcombine.high %v279_v62, %v279_v62 }
  0x53   :  { %5151 = vmatmul.mubr.msk.f32.gmra.mrb[24].mxu0 %vm840_vm0, %v790_v43  ;;  %v798_v63 = vmul.f32 %v580_v56, %v5766_v35  ;;  %v588_v1 = vrot.slane %v296_v57, %v5534_v13  ;;  %v799_v2 = vmul.f32 %v584_v61, %v5766_v35 }
  0x54   :  { %5153 = vmatprep.mubr.msk.f32.mxu0 %vm840_vm0, %v791_v39  ;;  %v596_v8 = vrot.slane %v293_v22, %v5534_v13  ;;  %v297_v9 = vcombine.high %v293_v22, %v293_v22  ;;  %v801_v10 = vmul.f32 %v592_v4, %v5766_v35  ;;  %v600_v5 = vrot.slane %v295_v6, %v5534_v13 }
  0x55   :  { %v800_v7 = vmul.f32 %v588_v1, %v5766_v35 }
  0x56   :  { %v802_v11 = vmul.f32 %v596_v8, %v5766_v35  ;;  %v604_v16 = vrot.slane %v297_v9, %v5534_v13  ;;  %v803_v17 = vmul.f32 %v600_v5, %v5766_v35 }
  0x57   :  { %5154 = vmatmul.mubr.msk.f32.gmra.mrb[26].mxu0 %vm840_vm0, %v792_v41 }
  0x58   :  { %5156 = vmatprep.mubr.msk.f32.mxu0 %vm840_vm0, %v793_v45  ;;  %v804_v18 = vmul.f32 %v604_v16, %v5766_v35 }
  0x5b   :  { %5157 = vmatmul.mubr.msk.f32.gmra.mrb[28].mxu0 %vm840_vm0, %v794_v48 }
  0x5c   :  { %5159 = vmatprep.mubr.msk.f32.mxu0 %vm840_vm0, %v795_v52 }
  0x5f   :  { %5160 = vmatmul.mubr.msk.f32.gmra.mrb[30].mxu0 %vm840_vm0, %v796_v55 }
  0x60   :  { %5162 = vmatprep.mubr.msk.f32.mxu0 %vm840_vm0, %v797_v60 }
  0x63   :  { %5163 = vmatmul.mubr.msk.f32.gmra.mrb[32].mxu0 %vm840_vm0, %v798_v63 }
  0x64   :  { %5165 = vmatprep.mubr.msk.f32.mxu0 %vm840_vm0, %v799_v2 }
  0x67   :  { %5166 = vmatmul.mubr.msk.f32.gmra.mrb[34].mxu0 %vm840_vm0, %v800_v7 }
  0x68   :  { %5168 = vmatprep.mubr.msk.f32.mxu0 %vm840_vm0, %v801_v10 }
  0x6b   :  { %5169 = vmatmul.mubr.msk.f32.gmra.mrb[36].mxu0 %vm840_vm0, %v802_v11 }
  0x6c   :  { %5171 = vmatprep.mubr.msk.f32.mxu0 %vm840_vm0, %v803_v17 }
  0x6f   :  { %5172 = vmatmul.mubr.msk.f32.gmra.mrb[38].mxu0 %vm840_vm0, %v804_v18 }
  0xf6   :  { %v5116_v24 = vpop.f32.mrb[0].mxu0  ;;  %v5176_v25 = vpop.f32.mrb[0].mxu1 }
  0xf7   :  { %v1105_v26 = vadd.f32 %v5116_v24, %v5830_v19  ;;  %v1305_v27 = vadd.f32 %v5176_v25, %v5830_v19  ;;  %v1099_v28 = vpop.f32.mrb[1].mxu0  ;;  %v1299_v29 = vpop.f32.mrb[1].mxu1 }
  0xf8   :  { %v1100_v21 = vadd.f32 %v5830_v19, %v1099_v28  ;;  %v1300_v15 = vadd.f32 %v5830_v19, %v1299_v29 }
  0xf9   :  { %v1419_v30 = vmax.f32 %v1105_v26, 0.0  ;;  %v1459_v31 = vmax.f32 %v1305_v27, 0.0 }
  0xfa   :  { %v1418_v32 = vmax.f32 %v1100_v21, 0.0  ;;  %v5119_v33 = vpop.f32.mrb[2].mxu0  ;;  %v1458_v34 = vmax.f32 %v1300_v15, 0.0  ;;  %v5179_v35 = vpop.f32.mrb[2].mxu1 }
  0xfb   :  { %v1115_v36 = vadd.f32 %v5119_v33, %v5830_v19  ;;  %v1109_v43 = vpop.f32.mrb[3].mxu0  ;;  %v1530_v37 = vmul.f32 %v5837_v12, %v1459_v31  ;;  %v1315_v38 = vadd.f32 %v5179_v35, %v5830_v19  ;;  %v1490_v14 = vmul.f32 %v5837_v12, %v1419_v30  ;;  %v1309_v39 = vpop.f32.mrb[3].mxu1 }
  0xfc   :  { %v1110_v23 = vadd.f32 %v5830_v19, %v1109_v43  ;;  %v1489_v59 = vmul.f32 %v5837_v12, %v1418_v32  ;;  %v1529_v48 = vmul.f32 %v5837_v12, %v1458_v34  ;;  %v1310_v51 = vadd.f32 %v5830_v19, %v1309_v39 }
  0xfd   :  { %v1421_v40 = vmax.f32 %v1115_v36, 0.0  ;;  %v1677_v41 = vsel %vm1553_vm1, %v1530_v37, 0.0  ;;  %v1461_v20 = vmax.f32 %v1315_v38, 0.0  ;;  %v1557_v42 = vsel %vm1553_vm1, %v1490_v14, 0.0 }
  0xfe   :  { %1678 = vadd.xlane.f32.xlu1 %v1677_v41  ;;  %1558 = vadd.xlane.f32.xlu0 %v1557_v42  ;;  %v5122_v44 = vpop.f32.mrb[4].mxu0  ;;  %v5182_v47 = vpop.f32.mrb[4].mxu1  ;;  %v1420_v53 = vmax.f32 %v1110_v23, 0.0  ;;  %v1554_v54 = vsel %vm1553_vm1, %v1489_v59, 0.0  ;;  %v1674_v61 = vsel %vm1553_vm1, %v1529_v48, 0.0  ;;  %v1460_v7 = vmax.f32 %v1310_v51, 0.0 }
  0xff   :  { %v1119_v45 = vpop.f32.mrb[5].mxu0  ;;  %v1492_v46 = vmul.f32 %v5837_v12, %v1421_v40  ;;  %v1532_v49 = vmul.f32 %v5837_v12, %v1461_v20  ;;  %v1319_v52 = vpop.f32.mrb[5].mxu1  ;;  %v1125_v6 = vadd.f32 %v5122_v44, %v5830_v19  ;;  %v1325_v26 = vadd.f32 %v5182_v47, %v5830_v19 }
 0x100   :  { %v1120_v50 = vadd.f32 %v5830_v19, %v1119_v45  ;;  %v1320_v56 = vadd.f32 %v5830_v19, %v1319_v52  ;;  %v1491_v8 = vmul.f32 %v5837_v12, %v1420_v53  ;;  %v1531_v28 = vmul.f32 %v5837_v12, %v1460_v7 }
 0x101   :  { %v1563_v55 = vsel %vm1553_vm1, %v1492_v46, 0.0  ;;  %v1683_v62 = vsel %vm1553_vm1, %v1532_v49, 0.0  ;;  %v1423_v25 = vmax.f32 %v1125_v6, 0.0  ;;  %v1463_v35 = vmax.f32 %v1325_v26, 0.0 }
 0x102   :  { %v1422_v57 = vmax.f32 %v1120_v50, 0.0  ;;  %1555 = vadd.xlane.f32.xlu0 %v1554_v54  ;;  %1564 = vadd.xlane.f32.xlu1 %v1563_v55  ;;  %v5125_v58 = vpop.f32.mrb[6].mxu0  ;;  %v1462_v60 = vmax.f32 %v1320_v56, 0.0  ;;  %v5185_v22 = vpop.f32.mrb[6].mxu1  ;;  %v1560_v27 = vsel %vm1553_vm1, %v1491_v8, 0.0  ;;  %v1680_v43 = vsel %vm1553_vm1, %v1531_v28, 0.0 }
 0x103   :  { %v1135_v63 = vadd.f32 %v5125_v58, %v5830_v19  ;;  %v1129_v1 = vpop.f32.mrb[7].mxu0  ;;  %v1329_v4 = vpop.f32.mrb[7].mxu1  ;;  %v1335_v11 = vadd.f32 %v5185_v22, %v5830_v19  ;;  %v1494_v37 = vmul.f32 %v5837_v12, %v1423_v25  ;;  %v1534_v45 = vmul.f32 %v5837_v12, %v1463_v35 }
 0x104   :  { %v1493_v2 = vmul.f32 %v5837_v12, %v1422_v57  ;;  %v1533_v16 = vmul.f32 %v5837_v12, %v1462_v60  ;;  %v1130_v36 = vadd.f32 %v5830_v19, %v1129_v1  ;;  %v1330_v42 = vadd.f32 %v5830_v19, %v1329_v4 }
 0x105   :  { %v1425_v10 = vmax.f32 %v1135_v63, 0.0  ;;  %v1465_v21 = vmax.f32 %v1335_v11, 0.0  ;;  %v1569_v44 = vsel %vm1553_vm1, %v1494_v37, 0.0  ;;  %v1689_v56 = vsel %vm1553_vm1, %v1534_v45, 0.0 }
 0x106   :  { %1675 = vadd.xlane.f32.xlu0 %v1674_v61  ;;  %1684 = vadd.xlane.f32.xlu1 %v1683_v62  ;;  %v5128_v9 = vpop.f32.mrb[8].mxu0  ;;  %v1566_v5 = vsel %vm1553_vm1, %v1493_v2, 0.0  ;;  %v5188_v17 = vpop.f32.mrb[8].mxu1  ;;  %v1686_v15 = vsel %vm1553_vm1, %v1533_v16, 0.0  ;;  %v1424_v20 = vmax.f32 %v1130_v36, 0.0  ;;  %v1464_v55 = vmax.f32 %v1330_v42, 0.0 }
 0x107   :  { %v1139_v18 = vpop.f32.mrb[9].mxu0  ;;  %v1339_v24 = vpop.f32.mrb[9].mxu1  ;;  %v1496_v30 = vmul.f32 %v5837_v12, %v1425_v10  ;;  %v1145_v31 = vadd.f32 %v5128_v9, %v5830_v19  ;;  %v1345_v23 = vadd.f32 %v5188_v17, %v5830_v19  ;;  %v1536_v59 = vmul.f32 %v5837_v12, %v1465_v21 }
 0x108   :  { %v1140_v47 = vadd.f32 %v5830_v19, %v1139_v18  ;;  %v1495_v57 = vmul.f32 %v5837_v12, %v1424_v20  ;;  %v1340_v61 = vadd.f32 %v5830_v19, %v1339_v24  ;;  %v1535_v8 = vmul.f32 %v5837_v12, %v1464_v55 }
 0x109   :  { %v1575_v14 = vsel %vm1553_vm1, %v1496_v30, 0.0  ;;  %v1427_v39 = vmax.f32 %v1145_v31, 0.0  ;;  %v1467_v49 = vmax.f32 %v1345_v23, 0.0  ;;  %v1695_v50 = vsel %vm1553_vm1, %v1536_v59, 0.0 }
 0x10a   :  { %1561 = vadd.xlane.f32.xlu1 %v1560_v27  ;;  %1567 = vadd.xlane.f32.xlu0 %v1566_v5  ;;  %v5131_v29 = vpop.f32.mrb[10].mxu0  ;;  %v5191_v32 = vpop.f32.mrb[10].mxu1  ;;  %v1426_v60 = vmax.f32 %v1140_v47, 0.0  ;;  %v1572_v7 = vsel %vm1553_vm1, %v1495_v57, 0.0  ;;  %v1466_v10 = vmax.f32 %v1340_v61, 0.0  ;;  %v1692_v28 = vsel %vm1553_vm1, %v1535_v8, 0.0 }
 0x10b   :  { %v1149_v33 = vpop.f32.mrb[11].mxu0  ;;  %v5872_v34 = vpop.f32.mrb[11].mxu1  ;;  %v1498_v51 = vmul.f32 %v5837_v12, %v1427_v39  ;;  %v1155_v52 = vadd.f32 %v5131_v29, %v5830_v19  ;;  %v1355_v22 = vadd.f32 %v5191_v32, %v5830_v19  ;;  %v1538_v2 = vmul.f32 %v5837_v12, %v1467_v49 }
 0x10c   :  { %v1150_v5 = vadd.f32 %v5830_v19, %v1149_v33  ;;  %v1497_v11 = vmul.f32 %v5837_v12, %v1426_v60  ;;  %v1350_v30 = vadd.f32 %v5830_v19, %v5872_v34  ;;  %v1537_v31 = vmul.f32 %v5837_v12, %v1466_v10 }
 0x10d   :  { %v1581_v63 = vsel %vm1553_vm1, %v1498_v51, 0.0  ;;  %v1429_v1 = vmax.f32 %v1155_v52, 0.0  ;;  %v1469_v17 = vmax.f32 %v1355_v22, 0.0  ;;  %v1701_v18 = vsel %vm1553_vm1, %v1538_v2, 0.0 }
 0x10e   :  { %1681 = vadd.xlane.f32.xlu1 %v1680_v43  ;;  %1687 = vadd.xlane.f32.xlu0 %v1686_v15  ;;  %v5877_v38 = vpop.f32.mrb[12].mxu0  ;;  %v1428_v21 = vmax.f32 %v1150_v5, 0.0  ;;  %v1578_v15 = vsel %vm1553_vm1, %v1497_v11, 0.0  ;;  %v1468_v23 = vmax.f32 %v1350_v30, 0.0  ;;  %v1698_v59 = vsel %vm1553_vm1, %v1537_v31, 0.0 }
 0x10f   :  { %v1159_v40 = vpop.f32.mrb[13].mxu0  ;;  %v1500_v24 = vmul.f32 %v5837_v12, %v1429_v1  ;;  %v1540_v43 = vmul.f32 %v5837_v12, %v1469_v17  ;;  %v1165_v34 = vadd.f32 %v5877_v38, %v5830_v19 }
 0x110   :  { %v5882_v41 = vpop.f32.mrb[12].mxu1  ;;  %v1160_v25 = vadd.f32 %v5830_v19, %v1159_v40  ;;  %v1499_v40 = vmul.f32 %v5837_v12, %v1428_v21  ;;  %v1539_v55 = vmul.f32 %v5837_v12, %v1468_v23 }
 0x111   :  { %v1359_v46 = vpop.f32.mrb[13].mxu1  ;;  %v1587_v33 = vsel %vm1553_vm1, %v1500_v24, 0.0  ;;  %v1365_v51 = vadd.f32 %v5882_v41, %v5830_v19 }
 0x112   :  { %1570 = vadd.xlane.f32.xlu1 %v1569_v44  ;;  %1576 = vadd.xlane.f32.xlu0 %v1575_v14  ;;  %v5137_v48 = vpop.f32.mrb[14].mxu0  ;;  %v1430_v35 = vmax.f32 %v1160_v25, 0.0  ;;  %v1360_v36 = vadd.f32 %v5830_v19, %v1359_v46  ;;  %v1707_v44 = vsel %vm1553_vm1, %v1540_v43, 0.0  ;;  %v1584_v52 = vsel %vm1553_vm1, %v1499_v40, 0.0 }
 0x113   :  { %v5891_v53 = vpop.f32.mrb[15].mxu0  ;;  %v1175_v45 = vadd.f32 %v5137_v48, %v5830_v19  ;;  %v1471_v1 = vmax.f32 %v1365_v51, 0.0  ;;  %v1704_v41 = vsel %vm1553_vm1, %v1539_v55, 0.0 }
 0x114   :  { %v5893_v54 = vpop.f32.mrb[14].mxu1  ;;  %v1470_v42 = vmax.f32 %v1360_v36, 0.0  ;;  %v1501_v46 = vmul.f32 %v5837_v12, %v1430_v35  ;;  %v1170_v22 = vadd.f32 %v5830_v19, %v5891_v53 }
 0x115   :  { %v5897_v58 = vpop.f32.mrb[15].mxu1  ;;  %v1433_v48 = vmax.f32 %v1175_v45, 0.0  ;;  %v1375_v60 = vadd.f32 %v5893_v54, %v5830_v19  ;;  %v1542_v24 = vmul.f32 %v5837_v12, %v1471_v1 }
 0x116   :  { %1690 = vadd.xlane.f32.xlu1 %v1689_v56  ;;  %1696 = vadd.xlane.f32.xlu0 %v1695_v50  ;;  %v5900_v62 = vpop.f32.mrb[16].mxu0  ;;  %v1431_v50 = vmax.f32 %v1165_v34, 0.0  ;;  %v1590_v57 = vsel %vm1553_vm1, %v1501_v46, 0.0  ;;  %v1541_v61 = vmul.f32 %v5837_v12, %v1470_v42  ;;  %v1432_v17 = vmax.f32 %v1170_v22, 0.0 }
 0x117   :  { %v5905_v4 = vpop.f32.mrb[17].mxu0  ;;  %v1473_v8 = vmax.f32 %v1375_v60, 0.0  ;;  %v1185_v54 = vadd.f32 %v5900_v62, %v5830_v19  ;;  %v1504_v5 = vmul.f32 %v5837_v12, %v1433_v48  ;;  %v1370_v53 = vadd.f32 %v5830_v19, %v5897_v58 }
 0x118   :  { %v5907_v6 = vpop.f32.mrb[16].mxu1  ;;  %v1502_v2 = vmul.f32 %v5837_v12, %v1431_v50  ;;  %v1710_v10 = vsel %vm1553_vm1, %v1541_v61, 0.0  ;;  %v1180_v58 = vadd.f32 %v5830_v19, %v5905_v4  ;;  %v1503_v35 = vmul.f32 %v5837_v12, %v1432_v17 }
 0x119   :  { %v5911_v9 = vpop.f32.mrb[17].mxu1  ;;  %v1599_v21 = vsel %vm1553_vm1, %v1504_v5, 0.0  ;;  %v1385_v62 = vadd.f32 %v5907_v6, %v5830_v19  ;;  %v1472_v31 = vmax.f32 %v1370_v53, 0.0 }
 0x11a   :  { %1582 = vadd.xlane.f32.xlu1 %v1581_v63  ;;  %1573 = vadd.xlane.f32.xlu0 %v1572_v7  ;;  %v5915_v16 = vpop.f32.mrb[18].mxu0  ;;  %v1434_v40 = vmax.f32 %v1180_v58, 0.0  ;;  %v1596_v42 = vsel %vm1553_vm1, %v1503_v35, 0.0  ;;  %v1380_v4 = vadd.f32 %v5830_v19, %v5911_v9 }
 0x11b   :  { %v5920_v26 = vpop.f32.mrb[19].mxu0  ;;  %v1475_v43 = vmax.f32 %v1385_v62, 0.0  ;;  %v1195_v6 = vadd.f32 %v5915_v16, %v5830_v19 }
 0x11c   :  { %v5922_v27 = vpop.f32.mrb[18].mxu1  ;;  %v1474_v55 = vmax.f32 %v1380_v4, 0.0  ;;  %v1190_v9 = vadd.f32 %v5830_v19, %v5920_v26 }
 0x11d   :  { %v5925_v29 = vpop.f32.mrb[19].mxu1  ;;  %v1437_v46 = vmax.f32 %v1195_v6, 0.0  ;;  %v1395_v16 = vadd.f32 %v5922_v27, %v5830_v19  ;;  %v1546_v51 = vmul.f32 %v5837_v12, %v1475_v43 }
 0x11e   :  { %1702 = vadd.xlane.f32.xlu1 %v1701_v18  ;;  %1693 = vadd.xlane.f32.xlu0 %v1692_v28  ;;  %v5931_v32 = vpop.f32.mrb[20].mxu0  ;;  %v1593_v18 = vsel %vm1553_vm1, %v1502_v2, 0.0  ;;  %v1435_v28 = vmax.f32 %v1185_v54, 0.0  ;;  %v1436_v2 = vmax.f32 %v1190_v9, 0.0  ;;  %v1390_v26 = vadd.f32 %v5830_v19, %v5925_v29 }
 0x11f   :  { %v5936_v37 = vpop.f32.mrb[21].mxu0  ;;  %v1477_v61 = vmax.f32 %v1395_v16, 0.0  ;;  %v1725_v1 = vsel %vm1553_vm1, %v1546_v51, 0.0 }
 0x120   :  { %v5938_v14 = vpop.f32.mrb[20].mxu1  ;;  %v1506_v23 = vmul.f32 %v5837_v12, %v1435_v28  ;;  %v1200_v27 = vadd.f32 %v5830_v19, %v5936_v37  ;;  %v1476_v29 = vmax.f32 %v1390_v26, 0.0 }
 0x121   :  { %v5940_v39 = vpop.f32.mrb[21].mxu1  ;;  %v1405_v35 = vadd.f32 %v5938_v14, %v5830_v19 }
 0x122   :  { %1588 = vadd.xlane.f32.xlu1 %v1587_v33  ;;  %1579 = vadd.xlane.f32.xlu0 %v1578_v15  ;;  %v5946_v20 = vpop.f32.mrb[22].mxu0  ;;  %v1544_v15 = vmul.f32 %v5837_v12, %v1473_v8  ;;  %v1713_v33 = vsel %vm1553_vm1, %v1542_v24, 0.0  ;;  %v1605_v50 = vsel %vm1553_vm1, %v1506_v23, 0.0  ;;  %v1438_v5 = vmax.f32 %v1200_v27, 0.0 }
 0x123   :  { %v5951_v47 = vpop.f32.mrb[23].mxu0  ;;  %v1400_v37 = vadd.f32 %v5830_v19, %v5940_v39  ;;  %v1205_v24 = vadd.f32 %v5931_v32, %v5830_v19  ;;  %v1215_v39 = vadd.f32 %v5946_v20, %v5830_v19 }
 0x124   :  { %v5953_v49 = vpop.f32.mrb[22].mxu1  ;;  %v1719_v34 = vsel %vm1553_vm1, %v1544_v15, 0.0  ;;  %v1210_v20 = vadd.f32 %v5830_v19, %v5951_v47 }
 0x125   :  { %v5955_v38 = vpop.f32.mrb[23].mxu1  ;;  %v1478_v15 = vmax.f32 %v1400_v37, 0.0  ;;  %v1439_v32 = vmax.f32 %v1205_v24, 0.0  ;;  %v1441_v6 = vmax.f32 %v1215_v39, 0.0  ;;  %v1415_v14 = vadd.f32 %v5953_v49, %v5830_v19 }
 0x126   :  { %1708 = vadd.xlane.f32.xlu1 %v1707_v44  ;;  %1699 = vadd.xlane.f32.xlu0 %v1698_v59  ;;  %v5961_v56 = vpop.f32.mrb[24].mxu0  ;;  %v1543_v44 = vmul.f32 %v5837_v12, %v1472_v31  ;;  %v1410_v16 = vadd.f32 %v5830_v19, %v5955_v38 }
 0x127   :  { %v5967_v63 = vpop.f32.mrb[25].mxu0  ;;  %v1512_v47 = vmul.f32 %v5837_v12, %v1441_v6  ;;  %v1481_v51 = vmax.f32 %v1415_v14, 0.0 }
 0x128   :  { %v1716_v48 = vsel %vm1553_vm1, %v1543_v44, 0.0  ;;  %v1510_v44 = vmul.f32 %v5837_v12, %v1439_v32  ;;  %v1220_v49 = vadd.f32 %v5830_v19, %v5967_v63  ;;  %v1480_v9 = vmax.f32 %v1410_v16, 0.0 }
 0x12a   :  { %1585 = vadd.xlane.f32.xlu1 %v1584_v52  ;;  %1591 = vadd.xlane.f32.xlu0 %v1590_v57  ;;  %v5973_v7 = vpop.f32.mrb[26].mxu0  ;;  %v1505_v57 = vmul.f32 %v5837_v12, %v1434_v40  ;;  %v1549_v40 = vmul.f32 %v5837_v12, %v1478_v15 }
 0x12b   :  { %v5979_v11 = vpop.f32.mrb[27].mxu0  ;;  %v1235_v63 = vadd.f32 %v5973_v7, %v5830_v19 }
 0x12c   :  { %v1602_v8 = vsel %vm1553_vm1, %v1505_v57, 0.0  ;;  %v1617_v57 = vsel %vm1553_vm1, %v1510_v44, 0.0 }
 0x12e   :  { %1705 = vadd.xlane.f32.xlu1 %v1704_v41  ;;  %1711 = vadd.xlane.f32.xlu0 %v1710_v10  ;;  %v5985_v25 = vpop.f32.mrb[28].mxu0  ;;  %v1508_v41 = vmul.f32 %v5837_v12, %v1437_v46  ;;  %v1545_v10 = vmul.f32 %v5837_v12, %v1474_v55  ;;  %v1440_v46 = vmax.f32 %v1210_v20, 0.0  ;;  %v1225_v55 = vadd.f32 %v5961_v56, %v5830_v19 }
 0x12f   :  { %v5991_v30 = vpop.f32.mrb[29].mxu0  ;;  %v1552_v56 = vmul.f32 %v5837_v12, %v1481_v51 }
 0x130   :  { %v1611_v17 = vsel %vm1553_vm1, %v1508_v41, 0.0  ;;  %v1722_v28 = vsel %vm1553_vm1, %v1545_v10, 0.0  ;;  %v1511_v38 = vmul.f32 %v5837_v12, %v1440_v46  ;;  %v1442_v41 = vmax.f32 %v1220_v49, 0.0 }
 0x131   :  { %v1240_v26 = vadd.f32 %v5830_v19, %v5991_v30  ;;  %v1230_v10 = vadd.f32 %v5830_v19, %v5979_v11  ;;  %v1245_v30 = vadd.f32 %v5985_v25, %v5830_v19 }
 0x132   :  { %1594 = vadd.xlane.f32.xlu1 %v1593_v18  ;;  %1600 = vadd.xlane.f32.xlu0 %v1599_v21  ;;  %v5997_v36 = vpop.f32.mrb[30].mxu0  ;;  %v1548_v18 = vmul.f32 %v5837_v12, %v1477_v61  ;;  %v1507_v21 = vmul.f32 %v5837_v12, %v1436_v2  ;;  %v1623_v61 = vsel %vm1553_vm1, %v1512_v47, 0.0  ;;  %v1620_v2 = vsel %vm1553_vm1, %v1511_v38, 0.0 }
 0x133   :  { %v6003_v59 = vpop.f32.mrb[31].mxu0  ;;  %v1513_v37 = vmul.f32 %v5837_v12, %v1442_v41  ;;  %v1446_v7 = vmax.f32 %v1240_v26, 0.0  ;;  %v1447_v32 = vmax.f32 %v1245_v30, 0.0 }
 0x134   :  { %v1731_v31 = vsel %vm1553_vm1, %v1548_v18, 0.0  ;;  %v1608_v43 = vsel %vm1553_vm1, %v1507_v21, 0.0  ;;  %v1445_v18 = vmax.f32 %v1235_v63, 0.0  ;;  %v1250_v39 = vadd.f32 %v5830_v19, %v6003_v59 }
 0x135   :  { %v1626_v21 = vsel %vm1553_vm1, %v1513_v37, 0.0 }
 0x136   :  { %1714 = vadd.xlane.f32.xlu1 %v1713_v33  ;;  %1720 = vadd.xlane.f32.xlu0 %v1719_v34  ;;  %v6009_v45 = vpop.f32.mrb[32].mxu0  ;;  %v1509_v33 = vmul.f32 %v5837_v12, %v1438_v5  ;;  %v1547_v34 = vmul.f32 %v5837_v12, %v1476_v29  ;;  %v1743_v5 = vsel %vm1553_vm1, %v1552_v56, 0.0  ;;  %v1255_v29 = vadd.f32 %v5997_v36, %v5830_v19 }
 0x137   :  { %v6015_v52 = vpop.f32.mrb[33].mxu0  ;;  %v1265_v25 = vadd.f32 %v6009_v45, %v5830_v19  ;;  %v1518_v45 = vmul.f32 %v5837_v12, %v1447_v32 }
 0x138   :  { %v1614_v23 = vsel %vm1553_vm1, %v1509_v33, 0.0  ;;  %v1728_v4 = vsel %vm1553_vm1, %v1547_v34, 0.0  ;;  %v1449_v15 = vmax.f32 %v1255_v29, 0.0  ;;  %v1517_v33 = vmul.f32 %v5837_v12, %v1446_v7 }
 0x139   :  { %v1448_v34 = vmax.f32 %v1250_v39, 0.0  ;;  %v1641_v46 = vsel %vm1553_vm1, %v1518_v45, 0.0 }
 0x13a   :  { %1606 = vadd.xlane.f32.xlu1 %v1605_v50  ;;  %1597 = vadd.xlane.f32.xlu0 %v1596_v42  ;;  %v6021_v60 = vpop.f32.mrb[34].mxu0  ;;  %v1479_v42 = vmax.f32 %v1405_v35, 0.0  ;;  %v1734_v50 = vsel %vm1553_vm1, %v1549_v40, 0.0  ;;  %v1260_v35 = vadd.f32 %v5830_v19, %v6015_v52  ;;  %v1638_v6 = vsel %vm1553_vm1, %v1517_v33, 0.0 }
 0x13b   :  { %v6027_v22 = vpop.f32.mrb[35].mxu0  ;;  %v1520_v59 = vmul.f32 %v5837_v12, %v1449_v15  ;;  %v1275_v52 = vadd.f32 %v6021_v60, %v5830_v19  ;;  %v1519_v14 = vmul.f32 %v5837_v12, %v1448_v34 }
 0x13c   :  { %v1450_v40 = vmax.f32 %v1260_v35, 0.0  ;;  %v1270_v44 = vadd.f32 %v5830_v19, %v6027_v22 }
 0x13d   :  { %v1453_v47 = vmax.f32 %v1275_v52, 0.0  ;;  %v1644_v60 = vsel %vm1553_vm1, %v1519_v14, 0.0 }
 0x13e   :  { %1726 = vadd.xlane.f32.xlu1 %v1725_v1  ;;  %1717 = vadd.xlane.f32.xlu0 %v1716_v48  ;;  %v6033_v54 = vpop.f32.mrb[36].mxu0  ;;  %v1550_v48 = vmul.f32 %v5837_v12, %v1479_v42  ;;  %v1443_v1 = vmax.f32 %v1225_v55, 0.0  ;;  %v1647_v42 = vsel %vm1553_vm1, %v1520_v59, 0.0  ;;  %v1521_v16 = vmul.f32 %v5837_v12, %v1450_v40 }
 0x13f   :  { %v6039_v53 = vpop.f32.mrb[37].mxu0  ;;  %v1452_v55 = vmax.f32 %v1270_v44, 0.0 }
 0x140   :  { %v1737_v27 = vsel %vm1553_vm1, %v1550_v48, 0.0  ;;  %v1285_v48 = vadd.f32 %v6033_v54, %v5830_v19  ;;  %v1650_v49 = vsel %vm1553_vm1, %v1521_v16, 0.0 }
 0x142   :  { %1612 = vadd.xlane.f32.xlu1 %v1611_v17  ;;  %1603 = vadd.xlane.f32.xlu0 %v1602_v8  ;;  %v6045_v62 = vpop.f32.mrb[38].mxu0  ;;  %v1551_v8 = vmul.f32 %v5837_v12, %v1480_v9  ;;  %v1514_v17 = vmul.f32 %v5837_v12, %v1443_v1  ;;  %v1455_v1 = vmax.f32 %v1285_v48, 0.0 }
 0x143   :  { %v6051_v58 = vpop.f32.mrb[39].mxu0 }
 0x144   :  { %v1740_v24 = vsel %vm1553_vm1, %v1551_v8, 0.0  ;;  %v1629_v11 = vsel %vm1553_vm1, %v1514_v17, 0.0 }
 0x146   :  { %1732 = vadd.xlane.f32.xlu1 %v1731_v31  ;;  %1723 = vadd.xlane.f32.xlu0 %v1722_v28  ;;  %v1444_v28 = vmax.f32 %v1230_v10, 0.0  ;;  %v1516_v31 = vmul.f32 %v5837_v12, %v1445_v18 }
 0x148   :  { %v1515_v36 = vmul.f32 %v5837_v12, %v1444_v28 }
 0x14a   :  { %1609 = vadd.xlane.f32.xlu1 %v1608_v43  ;;  %1615 = vadd.xlane.f32.xlu0 %v1614_v23  ;;  %v1635_v43 = vsel %vm1553_vm1, %v1516_v31, 0.0  ;;  %v1451_v23 = vmax.f32 %v1265_v25, 0.0  ;;  %v1632_v20 = vsel %vm1553_vm1, %v1515_v36, 0.0 }
 0x14e   :  { %1729 = vadd.xlane.f32.xlu1 %v1728_v4  ;;  %1735 = vadd.xlane.f32.xlu0 %v1734_v50  ;;  %v1280_v4 = vadd.f32 %v5830_v19, %v6039_v53  ;;  %v1522_v50 = vmul.f32 %v5837_v12, %v1451_v23  ;;  %v1295_v53 = vadd.f32 %v6045_v62, %v5830_v19 }
 0x14f   :  { %v1523_v62 = vmul.f32 %v5837_v12, %v1452_v55 }
 0x150   :  { %v1454_v51 = vmax.f32 %v1280_v4, 0.0  ;;  %v1653_v22 = vsel %vm1553_vm1, %v1522_v50, 0.0  ;;  %v1457_v9 = vmax.f32 %v1295_v53, 0.0 }
 0x152   :  { %1618 = vadd.xlane.f32.xlu1 %v1617_v57  ;;  %1624 = vadd.xlane.f32.xlu0 %v1623_v61  ;;  %v1524_v57 = vmul.f32 %v5837_v12, %v1453_v47  ;;  %v1290_v61 = vadd.f32 %v5830_v19, %v6051_v58  ;;  %v1525_v38 = vmul.f32 %v5837_v12, %v1454_v51 }
 0x153   :  { %v1528_v56 = vmul.f32 %v5837_v12, %v1457_v9  ;;  %v1526_v58 = vmul.f32 %v5837_v12, %v1455_v1 }
 0x154   :  { %v1659_v54 = vsel %vm1553_vm1, %v1524_v57, 0.0  ;;  %v1662_v41 = vsel %vm1553_vm1, %v1525_v38, 0.0 }
 0x155   :  { %v1671_v19 = vsel %vm1553_vm1, %v1528_v56, 0.0  ;;  %v1665_v8 = vsel %vm1553_vm1, %v1526_v58, 0.0 }
 0x156   :  { %1738 = vadd.xlane.f32.xlu1 %v1737_v27  ;;  %1621 = vadd.xlane.f32.xlu0 %v1620_v2  ;;  %v1456_v27 = vmax.f32 %v1290_v61, 0.0  ;;  %v1656_v2 = vsel %vm1553_vm1, %v1523_v62, 0.0 }
 0x158   :  { %v1527_v63 = vmul.f32 %v5837_v12, %v1456_v27  ;;  %v1811_v12 = vand.u32 127, %v57_v0 }
 0x15a   :  { %1744 = vadd.xlane.f32.xlu1 %v1743_v5  ;;  %1741 = vadd.xlane.f32.xlu0 %v1740_v24  ;;  %v1668_v26 = vsel %vm1553_vm1, %v1527_v63, 0.0  ;;  %v6161_v28 = vsub.s32 %v1811_v12, %v5514_v3 }
 0x15c   :  { %7440 = vst [vmem:[#allocation5_spill] sm:$0xff] %v6161_v28 }
 0x15e   :  { %1630 = vadd.xlane.f32.xlu1 %v1629_v11  ;;  %1627 = vadd.xlane.f32.xlu0 %v1626_v21 }
 0x162   :  { %1636 = vadd.xlane.f32.xlu1 %v1635_v43  ;;  %1639 = vadd.xlane.f32.xlu0 %v1638_v6 }
 0x166   :  { %1633 = vadd.xlane.f32.xlu1 %v1632_v20  ;;  %1648 = vadd.xlane.f32.xlu0 %v1647_v42 }
 0x16a   :  { %1642 = vadd.xlane.f32.xlu1 %v1641_v46  ;;  %1645 = vadd.xlane.f32.xlu0 %v1644_v60 }
 0x16e   :  { %1654 = vadd.xlane.f32.xlu1 %v1653_v22  ;;  %1651 = vadd.xlane.f32.xlu0 %v1650_v49 }
 0x172   :  { %1660 = vadd.xlane.f32.xlu1 %v1659_v54  ;;  %1663 = vadd.xlane.f32.xlu0 %v1662_v41 }
 0x176   :  { %1657 = vadd.xlane.f32.xlu1 %v1656_v2  ;;  %1672 = vadd.xlane.f32.xlu0 %v1671_v19 }
 0x17a   :  { %1666 = vadd.xlane.f32.xlu1 %v1665_v8  ;;  %1669 = vadd.xlane.f32.xlu0 %v1668_v26 }
 0x18b   :  { %v6143_v10 = vpop.xlane.xlu1 %1678  ;;  %v6145_v5 = vpop.xlane.xlu0 %1558 }
 0x18c   :  { %v1819_v0 = vrot.slane %v6145_v5, %v6161_v28  ;;  %v1979_v33 = vrot.slane %v6143_v10, %v6161_v28 }
 0x18f   :  { %v6147_v17 = vpop.xlane.xlu0 %1555  ;;  %v6149_v37 = vpop.xlane.xlu1 %1564 }
 0x190   :  { %v1815_v21 = vrot.slane %v6147_v17, %v6161_v28  ;;  %v1827_v43 = vrot.slane %v6149_v37, %v6161_v28 }
 0x192   :  { %v2069_v32 = vsel %vm2068_vm2, %v1819_v0, %v1815_v21 }
 0x193   :  { %v6151_v18 = vpop.xlane.xlu0 %1675  ;;  %v6153_v24 = vpop.xlane.xlu1 %1684 }
 0x194   :  { %v1975_v25 = vrot.slane %v6151_v18, %v6161_v28  ;;  %v1987_v42 = vrot.slane %v6153_v24, %v6161_v28 }
 0x196   :  { %v2110_v59 = vsel %vm2068_vm2, %v1979_v33, %v1975_v25 }
 0x197   :  { %v6156_v7 = vpop.xlane.xlu1 %1561  ;;  %v6158_v29 = vpop.xlane.xlu0 %1567 }
 0x198   :  { %v1823_v15 = vrot.slane %v6156_v7, %v6161_v28  ;;  %v1831_v40 = vrot.slane %v6158_v29, %v6161_v28 }
 0x19a   :  { %v2071_v36 = vsel %vm2070_vm3, %v1823_v15, %v2069_v32 }
 0x19b   :  { %v6163_v30 = vpop.xlane.xlu1 %1681  ;;  %v6165_v11 = vpop.xlane.xlu0 %1687  ;;  %v2073_v23 = vsel %vm2072_vm4, %v1827_v43, %v2071_v36  ;;  %v5463_v36 = vmov 0  }
 0x19c   :  { %v1983_v35 = vrot.slane %v6163_v30, %v6161_v28  ;;  %v2075_v14 = vsel %vm2074_vm5, %v1831_v40, %v2073_v23  ;;  %v1991_v51 = vrot.slane %v6165_v11, %v6161_v28  ;;  %5270 = vset.pattern.permute.xlu1 %v5463_v36  ;;  %5269 = vset.pattern.permute.xlu0 %v5463_v36 }
 0x19e   :  { %v2111_v45 = vsel %vm2070_vm3, %v1983_v35, %v2110_v59 }
 0x19f   :  { %v6173_v31 = vpop.xlane.xlu1 %1570  ;;  %v6175_v39 = vpop.xlane.xlu0 %1576  ;;  %v2112_v46 = vsel %vm2072_vm4, %v1987_v42, %v2111_v45 }
 0x1a0   :  { %v1835_v20 = vrot.slane %v6173_v31, %v6161_v28  ;;  %v1843_v50 = vrot.slane %v6175_v39, %v6161_v28  ;;  %v2113_v22 = vsel %vm2074_vm5, %v1991_v51, %v2112_v46 }
 0x1a2   :  { %v2077_v47 = vsel %vm2076_vm6, %v1835_v20, %v2075_v14 }
 0x1a3   :  { %v6187_v34 = vpop.xlane.xlu1 %1690  ;;  %v6189_v6 = vpop.xlane.xlu0 %1696 }
 0x1a4   :  { %v1995_v16 = vrot.slane %v6187_v34, %v6161_v28  ;;  %v2003_v57 = vrot.slane %v6189_v6, %v6161_v28 }
 0x1a6   :  { %v2114_v61 = vsel %vm2076_vm6, %v1995_v16, %v2113_v22 }
 0x1a7   :  { %v6200_v52 = vpop.xlane.xlu1 %1582  ;;  %v6202_v4 = vpop.xlane.xlu0 %1573 }
 0x1a8   :  { %v1839_v44 = vrot.slane %v6202_v4, %v6161_v28  ;;  %v1851_v58 = vrot.slane %v6200_v52, %v6161_v28 }
 0x1aa   :  { %v2079_v60 = vsel %vm2078_vm7, %v1839_v44, %v2077_v47 }
 0x1ab   :  { %v6216_v53 = vpop.xlane.xlu1 %1702  ;;  %v6218_v55 = vpop.xlane.xlu0 %1693  ;;  %v2081_v48 = vsel %vm2080_vm8, %v1843_v50, %v2079_v60 }
 0x1ac   :  { %v1999_v49 = vrot.slane %v6218_v55, %v6161_v28  ;;  %v2140_v9 = vsel %vm2139_vm9, %v2081_v48, -inf  ;;  %v2011_v21 = vrot.slane %v6216_v53, %v6161_v28 }
 0x1ad   :  { %2141 = vmax.xlane.f32.xlu0 %v2140_v9 }
 0x1ae   :  { %v2115_v38 = vsel %vm2078_vm7, %v1999_v49, %v2114_v61 }
 0x1af   :  { %v6229_v1 = vpop.xlane.xlu1 %1588  ;;  %v6231_v62 = vpop.xlane.xlu0 %1579  ;;  %v2116_v54 = vsel %vm2080_vm8, %v2003_v57, %v2115_v38 }
 0x1b0   :  { %v2155_v27 = vsel %vm2139_vm9, %v2116_v54, -inf  ;;  %v1847_v63 = vrot.slane %v6231_v62, %v6161_v28  ;;  %v1859_v25 = vrot.slane %v6229_v1, %v6161_v28 }
 0x1b1   :  { %2156 = vmax.xlane.f32.xlu1 %v2155_v27 }
 0x1b2   :  { %v2082_v15 = vsel %vm2068_vm2, %v1851_v58, %v1847_v63 }
 0x1b3   :  { %v6235_v41 = vpop.xlane.xlu1 %1708  ;;  %v6237_v56 = vpop.xlane.xlu0 %1699 }
 0x1b4   :  { %v2007_v0 = vrot.slane %v6237_v56, %v6161_v28  ;;  %v2019_v45 = vrot.slane %v6235_v41, %v6161_v28 }
 0x1b6   :  { %v2117_v59 = vsel %vm2068_vm2, %v2011_v21, %v2007_v0 }
 0x1b7   :  { %v6239_v2 = vpop.xlane.xlu1 %1585  ;;  %v6241_v19 = vpop.xlane.xlu0 %1591 }
 0x1b8   :  { %v1855_v12 = vrot.slane %v6239_v2, %v6161_v28  ;;  %v1863_v40 = vrot.slane %v6241_v19, %v6161_v28 }
 0x1ba   :  { %v2083_v35 = vsel %vm2070_vm3, %v1855_v12, %v2082_v15 }
 0x1bb   :  { %v6247_v8 = vpop.xlane.xlu1 %1705  ;;  %v6249_v26 = vpop.xlane.xlu0 %1711  ;;  %v2084_v42 = vsel %vm2072_vm4, %v1859_v25, %v2083_v35 }
 0x1bc   :  { %v2015_v43 = vrot.slane %v6247_v8, %v6161_v28  ;;  %v2085_v47 = vsel %vm2074_vm5, %v1863_v40, %v2084_v42  ;;  %v2023_v51 = vrot.slane %v6249_v26, %v6161_v28 }
 0x1be   :  { %v2118_v44 = vsel %vm2070_vm3, %v2015_v43, %v2117_v59 }
 0x1bf   :  { %v6258_v33 = vpop.xlane.xlu1 %1594  ;;  %v6260_v32 = vpop.xlane.xlu0 %1600  ;;  %v2119_v48 = vsel %vm2072_vm4, %v2019_v45, %v2118_v44 }
 0x1c0   :  { %v1867_v14 = vrot.slane %v6258_v33, %v6161_v28  ;;  %v1875_v46 = vrot.slane %v6260_v32, %v6161_v28  ;;  %v2120_v27 = vsel %vm2074_vm5, %v2023_v51, %v2119_v48 }
 0x1c2   :  { %v2086_v49 = vsel %vm2076_vm6, %v1867_v14, %v2085_v47 }
 0x1c3   :  { %v6268_v23 = vpop.xlane.xlu1 %1714  ;;  %v6270_v20 = vpop.xlane.xlu0 %1720 }
 0x1c4   :  { %v2027_v22 = vrot.slane %v6268_v23, %v6161_v28  ;;  %v2035_v57 = vrot.slane %v6270_v20, %v6161_v28 }
 0x1c6   :  { %v2121_v12 = vsel %vm2076_vm6, %v2027_v22, %v2120_v27 }
 0x1c7   :  { %v6282_v50 = vpop.xlane.xlu1 %1606  ;;  %v6284_v16 = vpop.xlane.xlu0 %1597 }
 0x1c8   :  { %v1871_v60 = vrot.slane %v6284_v16, %v6161_v28  ;;  %v1883_v59 = vrot.slane %v6282_v50, %v6161_v28 }
 0x1ca   :  { %v2087_v9 = vsel %vm2078_vm7, %v1871_v60, %v2086_v49 }
 0x1cb   :  { %v6298_v61 = vpop.xlane.xlu1 %1726  ;;  %v6300_v38 = vpop.xlane.xlu0 %1717  ;;  %v2088_v54 = vsel %vm2080_vm8, %v1875_v46, %v2087_v9 }
 0x1cc   :  { %v2031_v58 = vrot.slane %v6300_v38, %v6161_v28  ;;  %v2143_v63 = vsel %vm2139_vm9, %v2088_v54, -inf  ;;  %v2043_v44 = vrot.slane %v6298_v61, %v6161_v28 }
 0x1cd   :  { %2144 = vmax.xlane.f32.xlu1 %v2143_v63 }
 0x1ce   :  { %v2122_v21 = vsel %vm2078_vm7, %v2031_v58, %v2121_v12 }
 0x1cf   :  { %v6309_v15 = vpop.xlane.xlu1 %1612  ;;  %v6311_v0 = vpop.xlane.xlu0 %1603  ;;  %v2123_v25 = vsel %vm2080_vm8, %v2035_v57, %v2122_v21 }
 0x1d0   :  { %v2158_v36 = vsel %vm2139_vm9, %v2123_v25, -inf  ;;  %v1879_v40 = vrot.slane %v6311_v0, %v6161_v28  ;;  %v1891_v48 = vrot.slane %v6309_v15, %v6161_v28 }
 0x1d1   :  { %2159 = vmax.xlane.f32.xlu0 %v2158_v36 }
 0x1d2   :  { %v2089_v46 = vsel %vm2068_vm2, %v1883_v59, %v1879_v40 }
 0x1d3   :  { %v6315_v35 = vpop.xlane.xlu1 %1732  ;;  %v6317_v43 = vpop.xlane.xlu0 %1723 }
 0x1d4   :  { %7441 = vst [vmem:[#allocation6_spill] sm:$0xff] %v6315_v35  ;;  %v2039_v47 = vrot.slane %v6317_v43, %v6161_v28  ;;  %v2051_v58 = vrot.slane %v6315_v35, %v6161_v28 }
 0x1d6   :  { %v2124_v9 = vsel %vm2068_vm2, %v2043_v44, %v2039_v47 }
 0x1d7   :  { %v6323_v45 = vpop.xlane.xlu1 %1609  ;;  %v6325_v42 = vpop.xlane.xlu0 %1615 }
 0x1d8   :  { %v1887_v14 = vrot.slane %v6323_v45, %v6161_v28  ;;  %v1895_v27 = vrot.slane %v6325_v42, %v6161_v28 }
 0x1da   :  { %v2090_v22 = vsel %vm2070_vm3, %v1887_v14, %v2089_v46 }
 0x1db   :  { %v6334_v51 = vpop.xlane.xlu1 %1729  ;;  %v6336_v60 = vpop.xlane.xlu0 %1735  ;;  %v2091_v63 = vsel %vm2072_vm4, %v1891_v48, %v2090_v22 }
 0x1dc   :  { %7442 = vst [vmem:[#allocation7_spill] sm:$0xff] %v6336_v60  ;;  %v2047_v49 = vrot.slane %v6334_v51, %v6161_v28  ;;  %v2092_v40 = vsel %vm2074_vm5, %v1895_v27, %v2091_v63  ;;  %v2055_v14 = vrot.slane %v6336_v60, %v6161_v28 }
 0x1de   :  { %v2125_v21 = vsel %vm2070_vm3, %v2047_v49, %v2124_v9 }
 0x1df   :  { %v6344_v57 = vpop.xlane.xlu1 %1618  ;;  %v6346_v54 = vpop.xlane.xlu0 %1624  ;;  %v2126_v46 = vsel %vm2072_vm4, %v2051_v58, %v2125_v21 }
 0x1e0   :  { %v1899_v12 = vrot.slane %v6344_v57, %v6161_v28  ;;  %v1907_v25 = vrot.slane %v6346_v54, %v6161_v28  ;;  %v2127_v63 = vsel %vm2074_vm5, %v2055_v14, %v2126_v46 }
 0x1e2   :  { %v2093_v48 = vsel %vm2076_vm6, %v1899_v12, %v2092_v40 }
 0x1e3   :  { %v6358_v36 = vpop.xlane.xlu1 %1738  ;;  %v6360_v59 = vpop.xlane.xlu0 %1621 }
 0x1e4   :  { %7443 = vst [vmem:[#allocation8_spill] sm:$0xff] %v6358_v36  ;;  %v1903_v44 = vrot.slane %v6360_v59, %v6161_v28  ;;  %v2059_v47 = vrot.slane %v6358_v36, %v6161_v28 }
 0x1e6   :  { %v2094_v22 = vsel %vm2078_vm7, %v1903_v44, %v2093_v48  ;;  %v2128_v12 = vsel %vm2076_vm6, %v2059_v47, %v2127_v63 }
 0x1e7   :  { %v6372_v49 = vpop.xlane.xlu1 %1744  ;;  %v6374_v9 = vpop.xlane.xlu0 %1741  ;;  %v2095_v27 = vsel %vm2080_vm8, %v1907_v25, %v2094_v22 }
 0x1e8   :  { %7444 = vst [vmem:[#allocation9_spill] sm:$0xff] %v6372_v49  ;;  %7445 = vst [vmem:[#allocation10_spill] sm:$0xff] %v6374_v9  ;;  %v2067_v60 = vrot.slane %v6372_v49, %v6161_v28  ;;  %v2063_v58 = vrot.slane %v6374_v9, %v6161_v28  ;;  %v2146_v21 = vsel %vm2139_vm9, %v2095_v27, -inf }
 0x1e9   :  { %2147 = vmax.xlane.f32.xlu0 %v2146_v21 }
 0x1ea   :  { %v2129_v40 = vsel %vm2078_vm7, %v2063_v58, %v2128_v12 }
 0x1eb   :  { %v6385_v44 = vpop.xlane.xlu1 %1630  ;;  %v6387_v48 = vpop.xlane.xlu0 %1627  ;;  %v2130_v25 = vsel %vm2080_vm8, %v2067_v60, %v2129_v40 }
 0x1ec   :  { %7446 = vst [vmem:[#allocation11_spill] sm:$0xff] %v6385_v44  ;;  %7447 = vst [vmem:[#allocation12_spill] sm:$0xff] %v6387_v48  ;;  %v2161_v14 = vsel %vm2139_vm9, %v2130_v25, -inf  ;;  %v1915_v46 = vrot.slane %v6385_v44, %v6161_v28  ;;  %v1911_v22 = vrot.slane %v6387_v48, %v6161_v28 }
 0x1ed   :  { %2162 = vmax.xlane.f32.xlu1 %v2161_v14 }
 0x1ee   :  { %v2096_v63 = vsel %vm2068_vm2, %v1915_v46, %v1911_v22 }
 0x1ef   :  { %v6395_v27 = vpop.xlane.xlu1 %1636  ;;  %v6397_v47 = vpop.xlane.xlu0 %1639 }
 0x1f0   :  { %7448 = vst [vmem:[#allocation13_spill] sm:$0xff] %v6395_v27  ;;  %7449 = vst [vmem:[#allocation14_spill] sm:$0xff] %v6397_v47  ;;  %v1923_v58 = vrot.slane %v6395_v27, %v6161_v28  ;;  %v1927_v12 = vrot.slane %v6397_v47, %v6161_v28 }
 0x1f3   :  { %v6402_v21 = vpop.xlane.xlu1 %1633  ;;  %v6404_v60 = vpop.xlane.xlu0 %1648 }
 0x1f4   :  { %7450 = vst [vmem:[#allocation15_spill] sm:$0xff] %v6402_v21  ;;  %7451 = vst [vmem:[#allocation16_spill] sm:$0xff] %v6404_v60  ;;  %v1919_v40 = vrot.slane %v6402_v21, %v6161_v28  ;;  %v1939_v22 = vrot.slane %v6404_v60, %v6161_v28 }
 0x1f6   :  { %v2097_v25 = vsel %vm2070_vm3, %v1919_v40, %v2096_v63 }
 0x1f7   :  { %v2098_v14 = vsel %vm2072_vm4, %v1923_v58, %v2097_v25  ;;  %v6412_v44 = vpop.xlane.xlu1 %1642  ;;  %v6414_v46 = vpop.xlane.xlu0 %1645 }
 0x1f8   :  { %7452 = vst [vmem:[#allocation17_spill] sm:$0xff] %v6412_v44  ;;  %7453 = vst [vmem:[#allocation18_spill] sm:$0xff] %v6414_v46  ;;  %v1931_v27 = vrot.slane %v6412_v44, %v6161_v28  ;;  %v1935_v47 = vrot.slane %v6414_v46, %v6161_v28  ;;  %v2099_v48 = vsel %vm2074_vm5, %v1927_v12, %v2098_v14 }
 0x1fa   :  { %v2100_v21 = vsel %vm2076_vm6, %v1931_v27, %v2099_v48 }
 0x1fb   :  { %v6424_v63 = vpop.xlane.xlu1 %1654  ;;  %v6426_v58 = vpop.xlane.xlu0 %1651  ;;  %v2101_v40 = vsel %vm2078_vm7, %v1935_v47, %v2100_v21 }
 0x1fc   :  { %7454 = vst [vmem:[#allocation19_spill] sm:$0xff] %v6424_v63  ;;  %7455 = vst [vmem:[#allocation20_spill] sm:$0xff] %v6426_v58  ;;  %v2102_v25 = vsel %vm2080_vm8, %v1939_v22, %v2101_v40  ;;  %v1947_v44 = vrot.slane %v6424_v63, %v6161_v28  ;;  %v1943_v46 = vrot.slane %v6426_v58, %v6161_v28 }
 0x1fd   :  { %v2149_v60 = vsel %vm2139_vm9, %v2102_v25, -inf }
 0x1fe   :  { %2150 = vmax.xlane.f32.xlu1 %v2149_v60  ;;  %v2103_v27 = vsel %vm2068_vm2, %v1947_v44, %v1943_v46 }
 0x1ff   :  { %v6435_v12 = vpop.xlane.xlu1 %1660  ;;  %v6437_v48 = vpop.xlane.xlu0 %1663 }
 0x200   :  { %7456 = vst [vmem:[#allocation21_spill] sm:$0xff] %v6435_v12  ;;  %7457 = vst [vmem:[#allocation22_spill] sm:$0xff] %v6437_v48  ;;  %v1955_v47 = vrot.slane %v6435_v12, %v6161_v28  ;;  %v1959_v60 = vrot.slane %v6437_v48, %v6161_v28 }
 0x203   :  { %v6442_v21 = vpop.xlane.xlu1 %1657  ;;  %v6444_v14 = vpop.xlane.xlu0 %1672 }
 0x204   :  { %7458 = vst [vmem:[#allocation23_spill] sm:$0xff] %v6442_v21  ;;  %7459 = vst [vmem:[#allocation24_spill] sm:$0xff] %v6444_v14  ;;  %v1951_v22 = vrot.slane %v6442_v21, %v6161_v28  ;;  %v1971_v46 = vrot.slane %v6444_v14, %v6161_v28  ;;  %v6471_v14 = vsub.s32 2, %v5514_v3 }
 0x206   :  { %v2104_v40 = vsel %vm2070_vm3, %v1951_v22, %v2103_v27 }
 0x207   :  { %v2105_v25 = vsel %vm2072_vm4, %v1955_v47, %v2104_v40  ;;  %v6452_v63 = vpop.xlane.xlu1 %1666  ;;  %v6454_v44 = vpop.xlane.xlu0 %1669  ;;  %v6468_v40 = vsub.s32 1, %v5514_v3 }
 0x208   :  { %7460 = vst [vmem:[#allocation25_spill] sm:$0xff] %v6452_v63  ;;  %7461 = vst [vmem:[#allocation26_spill] sm:$0xff] %v6454_v44  ;;  %v1963_v12 = vrot.slane %v6452_v63, %v6161_v28  ;;  %v1967_v48 = vrot.slane %v6454_v44, %v6161_v28  ;;  %v2106_v58 = vsel %vm2074_vm5, %v1959_v60, %v2105_v25  ;;  %v6474_v28 = vsub.s32 3, %v5514_v3 }
 0x209   :  { %v6482_v25 = vsub.s32 4, %v5514_v3 }
 0x20a   :  { %v2107_v21 = vsel %vm2076_vm6, %v1963_v12, %v2106_v58 }
 0x20b   :  { %v2108_v27 = vsel %vm2078_vm7, %v1967_v48, %v2107_v21 }
 0x20c   :  { %v2109_v47 = vsel %vm2080_vm8, %v1971_v46, %v2108_v27 }
 0x20d   :  { %v2152_v22 = vsel %vm2139_vm9, %v2109_v47, -inf }
 0x20e   :  { %2153 = vmax.xlane.f32.xlu0 %v2152_v22 }
 0x23a   :  { %v2142_v63 = vpop.xlane.xlu0 %2141 }
 0x23b   :  { %v2175_v60 = vrot.slane %v2142_v63, %v5534_v13  ;;  %v2179_v58 = vrot.slane %v2142_v63, %v6468_v40  ;;  %v2183_v12 = vrot.slane %v2142_v63, %v6471_v14  ;;  %v2187_v27 = vrot.slane %v2142_v63, %v6474_v28 }
 0x23d   :  { %v2493_v48 = vsub.f32 %v6145_v5, %v2179_v58  ;;  %v2492_v21 = vsub.f32 %v6147_v17, %v2175_v60  ;;  %v2494_v22 = vsub.f32 %v6156_v7, %v2183_v12  ;;  %v6494_v17 = vsub.s32 5, %v5514_v3 }
 0x23e   :  { %v6484_v46 = vpop.xlane.xlu1 %2156  ;;  %v2191_v60 = vrot.slane %v2142_v63, %v6482_v25  ;;  %v2495_v35 = vsub.f32 %v6149_v37, %v2187_v27 }
 0x23f   :  { %v2339_v47 = vrot.slane %v6484_v46, %v6468_v40  ;;  %v2343_v44 = vrot.slane %v6484_v46, %v6471_v14  ;;  %v2558_v49 = vmul.f32 1.442695, %v2493_v48  ;;  %v2556_v9 = vmul.f32 1.442695, %v2492_v21 }
 0x240   :  { %v2560_v58 = vmul.f32 1.442695, %v2494_v22  ;;  %v2347_v7 = vrot.slane %v6484_v46, %v6474_v28  ;;  %v6502_v48 = vsub.s32 6, %v5514_v3  ;;  %v2562_v21 = vmul.f32 1.442695, %v2495_v35 }
 0x241   :  { %v2533_v5 = vsub.f32 %v6143_v10, %v2339_v47  ;;  %5279 = vpow2.f32 %v2558_v49  ;;  %v2534_v12 = vsub.f32 %v6163_v30, %v2343_v44  ;;  %v2195_v10 = vrot.slane %v2142_v63, %v6494_v17 }
 0x242   :  { %5281 = vpow2.f32 %v2556_v9  ;;  %v2496_v49 = vsub.f32 %v6158_v29, %v2191_v60  ;;  %v2355_v47 = vrot.slane %v6484_v46, %v6494_v17  ;;  %v2535_v27 = vsub.f32 %v6153_v24, %v2347_v7 }
 0x243   :  { %v2638_v36 = vmul.f32 1.442695, %v2533_v5  ;;  %v2640_v37 = vmul.f32 1.442695, %v2534_v12  ;;  %v6510_v9 = vsub.s32 7, %v5514_v3  ;;  %v2199_v30 = vrot.slane %v2142_v63, %v6502_v48 }
 0x244   :  { %v2564_v44 = vmul.f32 1.442695, %v2496_v49  ;;  %v2642_v22 = vmul.f32 1.442695, %v2535_v27  ;;  %v2537_v35 = vsub.f32 %v6187_v34, %v2355_v47  ;;  %v2335_v34 = vrot.slane %v6484_v46, %v5534_v13 }
 0x245   :  { %5283 = vpow2.f32 %v2638_v36  ;;  %v2497_v36 = vsub.f32 %v6173_v31, %v2195_v10  ;;  %v2203_v24 = vrot.slane %v2142_v63, %v6510_v9  ;;  %v2498_v60 = vsub.f32 %v6202_v4, %v2199_v30 }
 0x246   :  { %5285 = vpow2.f32 %v2560_v58  ;;  %v2646_v31 = vmul.f32 1.442695, %v2537_v35  ;;  %v2532_v47 = vsub.f32 %v6151_v18, %v2335_v34  ;;  %v2359_v30 = vrot.slane %v6484_v46, %v6502_v48 }
 0x247   :  { %5287 = vpow2.f32 %v2562_v21  ;;  %v2566_v3 = vmul.f32 1.442695, %v2497_v36  ;;  %v2568_v63 = vmul.f32 1.442695, %v2498_v60  ;;  %v2499_v12 = vsub.f32 %v6175_v39, %v2203_v24 }
 0x248   :  { %5289 = vpow2.f32 %v2640_v37  ;;  %v2351_v21 = vrot.slane %v6484_v46, %v6482_v25  ;;  %v2363_v24 = vrot.slane %v6484_v46, %v6510_v9  ;;  %v2538_v60 = vsub.f32 %v6218_v55, %v2359_v30 }
 0x249   :  { %5291 = vpow2.f32 %v2564_v44  ;;  %v2570_v49 = vmul.f32 1.442695, %v2499_v12  ;;  %v2636_v44 = vmul.f32 1.442695, %v2532_v47 }
 0x24a   :  { %5293 = vpow2.f32 %v2642_v22  ;;  %v2536_v36 = vsub.f32 %v6165_v11, %v2351_v21  ;;  %v2648_v46 = vmul.f32 1.442695, %v2538_v60  ;;  %v2539_v12 = vsub.f32 %v6189_v6, %v2363_v24 }
 0x24b   :  { %v6515_v29 = vpop.eup %5279  ;;  %5295 = vpow2.f32 %v2566_v3 }
 0x24c   :  { %v6517_v5 = vpop.eup %5281  ;;  %2752 = vperm.xlu1 %5270, %v6515_v29   ;;  %5297 = vpow2.f32 %v2646_v31  ;;  %v2644_v3 = vmul.f32 1.442695, %v2536_v36 }
 0x24d   :  { %2749 = vperm.xlu0 %5269, %v6517_v5   ;;  %5299 = vpow2.f32 %v2568_v63 }
 0x24e   :  { %5301 = vpow2.f32 %v2570_v49 }
 0x24f   :  { %v6523_v58 = vpop.eup %5283  ;;  %5303 = vpow2.f32 %v2636_v44  ;;  %v2650_v44 = vmul.f32 1.442695, %v2539_v12 }
 0x250   :  { %v6525_v7 = vpop.eup %5285  ;;  %5305 = vpow2.f32 %v2644_v3 }
 0x251   :  { %2755 = vperm.xlu1 %5270, %v6525_v7   ;;  %2872 = vperm.xlu0 %5269, %v6523_v58   ;;  %v6532_v10 = vpop.eup %5287  ;;  %5307 = vpow2.f32 %v2648_v46 }
 0x252   :  { %v6534_v4 = vpop.eup %5289 }
 0x253   :  { %v6541_v37 = vpop.eup %5291 }
 0x254   :  { %v6543_v27 = vpop.eup %5293 }
 0x255   :  { %2758 = vperm.xlu1 %5270, %v6532_v10   ;;  %2875 = vperm.xlu0 %5269, %v6534_v4   ;;  %v6552_v22 = vpop.eup %5295 }
 0x256   :  { %v6556_v35 = vpop.eup %5297 }
 0x257   :  { %v6563_v31 = vpop.eup %5299 }
 0x258   :  { %v6572_v21 = vpop.eup %5301 }
 0x259   :  { %2761 = vperm.xlu1 %5270, %v6541_v37   ;;  %2878 = vperm.xlu0 %5269, %v6543_v27   ;;  %v6583_v6 = vpop.eup %5303 }
 0x25a   :  { %v6546_v39 = vpop.xlane.xlu1 %2144 }
 0x25b   :  { %v2215_v18 = vrot.slane %v6546_v39, %v6471_v14  ;;  %v2219_v11 = vrot.slane %v6546_v39, %v6474_v28  ;;  %v2207_v63 = vrot.slane %v6546_v39, %v5534_v13  ;;  %v2227_v55 = vrot.slane %v6546_v39, %v6494_v17 }
 0x25c   :  { %v2223_v3 = vrot.slane %v6546_v39, %v6482_v25 }
 0x25d   :  { %2764 = vperm.xlu1 %5270, %v6552_v22   ;;  %2884 = vperm.xlu0 %5269, %v6556_v35   ;;  %v2502_v34 = vsub.f32 %v6239_v2, %v2215_v18  ;;  %v2503_v47 = vsub.f32 %v6229_v1, %v2219_v11  ;;  %v2211_v2 = vrot.slane %v6546_v39, %v6468_v40 }
 0x25e   :  { %v6577_v30 = vpop.xlane.xlu0 %2159  ;;  %v2500_v36 = vsub.f32 %v6231_v62, %v2207_v63  ;;  %v2505_v1 = vsub.f32 %v6258_v33, %v2227_v55  ;;  %v2231_v33 = vrot.slane %v6546_v39, %v6502_v48  ;;  %v2504_v12 = vsub.f32 %v6241_v19, %v2223_v3 }
 0x25f   :  { %v2576_v49 = vmul.f32 1.442695, %v2502_v34  ;;  %v2371_v18 = vrot.slane %v6577_v30, %v6468_v40  ;;  %v2578_v24 = vmul.f32 1.442695, %v2503_v47  ;;  %v2501_v11 = vsub.f32 %v6200_v52, %v2211_v2  ;;  %v6592_v34 = vpop.eup %5305 }
 0x260   :  { %v2572_v60 = vmul.f32 1.442695, %v2500_v36  ;;  %v2375_v62 = vrot.slane %v6577_v30, %v6471_v14  ;;  %v2582_v63 = vmul.f32 1.442695, %v2505_v1  ;;  %v2379_v52 = vrot.slane %v6577_v30, %v6474_v28 }
 0x261   :  { %2767 = vperm.xlu1 %5270, %v6563_v31   ;;  %5309 = vpow2.f32 %v2576_v49  ;;  %v2541_v46 = vsub.f32 %v6216_v53, %v2371_v18  ;;  %v2574_v55 = vmul.f32 1.442695, %v2501_v11  ;;  %v6601_v49 = vpop.eup %5307  ;;  %v2506_v19 = vsub.f32 %v6284_v16, %v2231_v33 }
 0x262   :  { %5311 = vpow2.f32 %v2650_v44  ;;  %v2542_v2 = vsub.f32 %v6247_v8, %v2375_v62  ;;  %v2235_v44 = vrot.slane %v6546_v39, %v6510_v9  ;;  %v2580_v36 = vmul.f32 1.442695, %v2504_v12 }
 0x263   :  { %5313 = vpow2.f32 %v2578_v24  ;;  %v2654_v47 = vmul.f32 1.442695, %v2541_v46  ;;  %v2387_v24 = vrot.slane %v6577_v30, %v6494_v17  ;;  %v2543_v1 = vsub.f32 %v6235_v41, %v2379_v52 }
 0x264   :  { %5315 = vpow2.f32 %v2572_v60  ;;  %v2656_v8 = vmul.f32 1.442695, %v2542_v2  ;;  %v2507_v39 = vsub.f32 %v6260_v32, %v2235_v44  ;;  %v2584_v16 = vmul.f32 1.442695, %v2506_v19 }
 0x265   :  { %2770 = vperm.xlu1 %5270, %v6572_v21   ;;  %5317 = vpow2.f32 %v2582_v63  ;;  %v2367_v60 = vrot.slane %v6577_v30, %v5534_v13  ;;  %v2658_v62 = vmul.f32 1.442695, %v2543_v1  ;;  %v2545_v63 = vsub.f32 %v6268_v23, %v2387_v24 }
 0x266   :  { %5319 = vpow2.f32 %v2574_v55  ;;  %v2586_v46 = vmul.f32 1.442695, %v2507_v39  ;;  %v2383_v32 = vrot.slane %v6577_v30, %v6482_v25  ;;  %v2395_v24 = vrot.slane %v6577_v30, %v6510_v9 }
 0x267   :  { %5321 = vpow2.f32 %v2654_v47  ;;  %v2540_v33 = vsub.f32 %v6237_v56, %v2367_v60  ;;  %v2662_v52 = vmul.f32 1.442695, %v2545_v63  ;;  %v2391_v47 = vrot.slane %v6577_v30, %v6502_v48 }
 0x268   :  { %5323 = vpow2.f32 %v2580_v36  ;;  %v2544_v2 = vsub.f32 %v6249_v26, %v2383_v32 }
 0x269   :  { %2869 = vperm.xlu1 %5270, %v6583_v6   ;;  %5325 = vpow2.f32 %v2656_v8  ;;  %v2652_v44 = vmul.f32 1.442695, %v2540_v33  ;;  %v2546_v8 = vsub.f32 %v6300_v38, %v2391_v47 }
 0x26a   :  { %5327 = vpow2.f32 %v2584_v16  ;;  %v2660_v26 = vmul.f32 1.442695, %v2544_v2 }
 0x26b   :  { %v6607_v53 = vpop.eup %5309  ;;  %5329 = vpow2.f32 %v2658_v62  ;;  %v2547_v62 = vsub.f32 %v6270_v20, %v2395_v24  ;;  %v2664_v30 = vmul.f32 1.442695, %v2546_v8 }
 0x26c   :  { %2779 = vperm.xlu0 %5269, %v6607_v53   ;;  %v6613_v18 = vpop.eup %5311  ;;  %5331 = vpow2.f32 %v2586_v46 }
 0x26d   :  { %2881 = vperm.xlu1 %5270, %v6592_v34   ;;  %v6619_v3 = vpop.eup %5313  ;;  %5333 = vpow2.f32 %v2662_v52  ;;  %v2666_v20 = vmul.f32 1.442695, %v2547_v62 }
 0x26e   :  { %v6625_v11 = vpop.eup %5315  ;;  %5335 = vpow2.f32 %v2652_v44 }
 0x26f   :  { %v6629_v41 = vpop.eup %5317  ;;  %5337 = vpow2.f32 %v2660_v26 }
 0x270   :  { %2782 = vperm.xlu0 %5269, %v6619_v3   ;;  %v6635_v12 = vpop.eup %5319  ;;  %5339 = vpow2.f32 %v2664_v30 }
 0x271   :  { %2887 = vperm.xlu1 %5270, %v6601_v49   ;;  %v6640_v23 = vpop.eup %5321 }
 0x272   :  { %v6648_v19 = vpop.eup %5323 }
 0x273   :  { %v6651_v36 = vpop.eup %5325 }
 0x274   :  { %2788 = vperm.xlu0 %5269, %v6629_v41   ;;  %v6660_v16 = vpop.eup %5327 }
 0x275   :  { %2890 = vperm.xlu1 %5270, %v6613_v18   ;;  %v6663_v60 = vpop.eup %5329 }
 0x276   :  { %v6637_v55 = vpop.xlane.xlu0 %2147  ;;  %v6672_v32 = vpop.eup %5331 }
 0x277   :  { %v2243_v56 = vrot.slane %v6637_v55, %v6468_v40  ;;  %v2247_v1 = vrot.slane %v6637_v55, %v6471_v14  ;;  %v2239_v38 = vrot.slane %v6637_v55, %v5534_v13  ;;  %v2251_v63 = vrot.slane %v6637_v55, %v6474_v28  ;;  %v6675_v33 = vpop.eup %5333 }
 0x278   :  { %2896 = vperm.xlu0 %5269, %v6640_v23   ;;  %v2255_v52 = vrot.slane %v6637_v55, %v6482_v25  ;;  %v2259_v2 = vrot.slane %v6637_v55, %v6494_v17  ;;  %v2263_v8 = vrot.slane %v6637_v55, %v6502_v48  ;;  %v2267_v30 = vrot.slane %v6637_v55, %v6510_v9 }
 0x279   :  { %2773 = vperm.xlu1 %5270, %v6625_v11   ;;  %v2509_v39 = vsub.f32 %v6282_v50, %v2243_v56  ;;  %v2510_v46 = vsub.f32 %v6323_v45, %v2247_v1  ;;  %v2508_v47 = vsub.f32 %v6311_v0, %v2239_v38  ;;  %v2511_v45 = vsub.f32 %v6309_v15, %v2251_v63  ;;  %v6684_v56 = vpop.eup %5335 }
 0x27a   :  { %v6686_v24 = vpop.xlane.xlu1 %2162  ;;  %v2512_v0 = vsub.f32 %v6325_v42, %v2255_v52  ;;  %v2513_v1 = vsub.f32 %v6344_v57, %v2259_v2  ;;  %v6695_v62 = vpop.eup %5337  ;;  %v2514_v38 = vsub.f32 %v6360_v59, %v2263_v8  ;;  %v2515_v52 = vsub.f32 %v6346_v54, %v2267_v30 }
 0x27b   :  { %v2590_v50 = vmul.f32 1.442695, %v2509_v39  ;;  %v2592_v44 = vmul.f32 1.442695, %v2510_v46  ;;  %v2588_v26 = vmul.f32 1.442695, %v2508_v47  ;;  %v2403_v39 = vrot.slane %v6686_v24, %v6468_v40 }
 0x27c   :  { %2899 = vperm.xlu0 %5269, %v6651_v36   ;;  %v2594_v15 = vmul.f32 1.442695, %v2511_v45  ;;  %v2596_v63 = vmul.f32 1.442695, %v2512_v0  ;;  %v2598_v42 = vmul.f32 1.442695, %v2513_v1  ;;  %v2407_v57 = vrot.slane %v6686_v24, %v6471_v14 }
 0x27d   :  { %2776 = vperm.xlu1 %5270, %v6635_v12   ;;  %5341 = vpow2.f32 %v2590_v50  ;;  %v2549_v46 = vsub.f32 %v6298_v61, %v2403_v39  ;;  %v6704_v50 = vpop.eup %5339  ;;  %v2600_v55 = vmul.f32 1.442695, %v2514_v38  ;;  %v2399_v59 = vrot.slane %v6686_v24, %v5534_v13 }
 0x27e   :  { %5343 = vpow2.f32 %v2666_v20  ;;  %v2411_v47 = vrot.slane %v6686_v24, %v6474_v28  ;;  %v2550_v61 = vsub.f32 %v6334_v51, %v2407_v57  ;;  %v2602_v54 = vmul.f32 1.442695, %v2515_v52  ;;  %v7465_v51 = vld [vmem:[#allocation6_spill] sm:$0xff] }
 0x27f   :  { %5345 = vpow2.f32 %v2592_v44  ;;  %v2670_v2 = vmul.f32 1.442695, %v2549_v46  ;;  %v2415_v8 = vrot.slane %v6686_v24, %v6482_v25  ;;  %v2548_v0 = vsub.f32 %v6317_v43, %v2399_v59  ;;  %v7468_v43 = vld [vmem:[#allocation7_spill] sm:$0xff]  ;;  %v7469_v46 = vld [vmem:[#allocation8_spill] sm:$0xff] }
 0x280   :  { %2902 = vperm.xlu0 %5269, %v6663_v60   ;;  %5347 = vpow2.f32 %v2588_v26  ;;  %v2419_v26 = vrot.slane %v6686_v24, %v6494_v17  ;;  %v2551_v1 = vsub.f32 %v7465_v51, %v2411_v47  ;;  %v2423_v38 = vrot.slane %v6686_v24, %v6502_v48 }
 0x281   :  { %2785 = vperm.xlu1 %5270, %v6648_v19   ;;  %5349 = vpow2.f32 %v2594_v15  ;;  %v2672_v15 = vmul.f32 1.442695, %v2550_v61  ;;  %v2427_v57 = vrot.slane %v6686_v24, %v6510_v9  ;;  %v7473_v24 = vld [vmem:[#allocation9_spill] sm:$0xff] }
 0x282   :  { %5351 = vpow2.f32 %v2596_v63  ;;  %v2552_v63 = vsub.f32 %v7468_v43, %v2415_v8  ;;  %v2553_v52 = vsub.f32 %v7469_v46, %v2419_v26 }
 0x283   :  { %5353 = vpow2.f32 %v2598_v42  ;;  %v2668_v42 = vmul.f32 1.442695, %v2548_v0  ;;  %v2555_v51 = vsub.f32 %v7473_v24, %v2427_v57 }
 0x284   :  { %2908 = vperm.xlu0 %5269, %v6675_v33   ;;  %5355 = vpow2.f32 %v2600_v55  ;;  %v2674_v55 = vmul.f32 1.442695, %v2551_v1  ;;  %v2676_v8 = vmul.f32 1.442695, %v2552_v63  ;;  %v2678_v26 = vmul.f32 1.442695, %v2553_v52 }
 0x285   :  { %2791 = vperm.xlu1 %5270, %v6660_v16   ;;  %5357 = vpow2.f32 %v2670_v2  ;;  %v7472_v2 = vld [vmem:[#allocation10_spill] sm:$0xff]  ;;  %v2682_v57 = vmul.f32 1.442695, %v2555_v51 }
 0x286   :  { %5359 = vpow2.f32 %v2602_v54  ;;  %v2554_v54 = vsub.f32 %v7472_v2, %v2423_v38 }
 0x287   :  { %v6706_v20 = vpop.eup %5341  ;;  %5361 = vpow2.f32 %v2672_v15 }
 0x288   :  { %7462 = vst [vmem:[#allocation27_spill] sm:$0xff] %v6706_v20  ;;  %2800 = vperm.xlu0 %5269, %v6706_v20   ;;  %v6716_v45 = vpop.eup %5343  ;;  %5363 = vpow2.f32 %v2668_v42  ;;  %v2680_v38 = vmul.f32 1.442695, %v2554_v54  ;;  %v7476_v42 = vld [vmem:[#allocation12_spill] sm:$0xff] }
 0x289   :  { %2794 = vperm.xlu1 %5270, %v6672_v32   ;;  %7463 = vst [vmem:[#allocation28_spill] sm:$0xff] %v6716_v45  ;;  %v6718_v44 = vpop.eup %5345  ;;  %5365 = vpow2.f32 %v2674_v55  ;;  %v7477_v55 = vld [vmem:[#allocation11_spill] sm:$0xff] }
 0x28a   :  { %7464 = vst [vmem:[#allocation29_spill] sm:$0xff] %v6718_v44  ;;  %v6728_v39 = vpop.eup %5347  ;;  %5367 = vpow2.f32 %v2676_v8  ;;  %v7480_v8 = vld [vmem:[#allocation14_spill] sm:$0xff] }
 0x28b   :  { %7466 = vst [vmem:[#allocation6_spill] sm:$0xff] %v6728_v39  ;;  %v6730_v30 = vpop.eup %5349  ;;  %v2151_v59 = vpop.xlane.xlu1 %2150  ;;  %5369 = vpow2.f32 %v2678_v26  ;;  %v7481_v26 = vld [vmem:[#allocation15_spill] sm:$0xff] }
 0x28c   :  { %2803 = vperm.xlu0 %5269, %v6718_v44   ;;  %7467 = vst [vmem:[#allocation30_spill] sm:$0xff] %v6730_v30  ;;  %v6740_v47 = vpop.eup %5351  ;;  %v2271_v0 = vrot.slane %v2151_v59, %v5534_v13  ;;  %v2275_v1 = vrot.slane %v2151_v59, %v6468_v40  ;;  %v2287_v63 = vrot.slane %v2151_v59, %v6482_v25  ;;  %5371 = vpow2.f32 %v2680_v38 }
 0x28d   :  { %2893 = vperm.xlu1 %5270, %v6684_v56   ;;  %7470 = vst [vmem:[#allocation7_spill] sm:$0xff] %v6740_v47  ;;  %v6742_v61 = vpop.eup %5353  ;;  %v2279_v52 = vrot.slane %v2151_v59, %v6471_v14  ;;  %v2295_v54 = vrot.slane %v2151_v59, %v6502_v48  ;;  %5373 = vpow2.f32 %v2682_v57  ;;  %v2283_v51 = vrot.slane %v2151_v59, %v6474_v28  ;;  %v7485_v57 = vld [vmem:[#allocation13_spill] sm:$0xff] }
 0x28e   :  { %7471 = vst [vmem:[#allocation8_spill] sm:$0xff] %v6742_v61  ;;  %v6750_v15 = vpop.eup %5355  ;;  %v2516_v46 = vsub.f32 %v7476_v42, %v2271_v0  ;;  %v2517_v2 = vsub.f32 %v7477_v55, %v2275_v1  ;;  %v2299_v38 = vrot.slane %v2151_v59, %v6510_v9 }
 0x28f   :  { %7474 = vst [vmem:[#allocation10_spill] sm:$0xff] %v6750_v15  ;;  %v6752_v43 = vpop.eup %5357  ;;  %v2518_v42 = vsub.f32 %v7481_v26, %v2279_v52 }
 0x290   :  { %2806 = vperm.xlu0 %5269, %v6730_v30   ;;  %7475 = vst [vmem:[#allocation9_spill] sm:$0xff] %v6752_v43  ;;  %v6760_v24 = vpop.eup %5359  ;;  %v2604_v0 = vmul.f32 1.442695, %v2516_v46  ;;  %v2606_v1 = vmul.f32 1.442695, %v2517_v2  ;;  %v2291_v46 = vrot.slane %v2151_v59, %v6494_v17  ;;  %v7489_v59 = vld [vmem:[#allocation17_spill] sm:$0xff] }
 0x291   :  { %2905 = vperm.xlu1 %5270, %v6695_v62   ;;  %7478 = vst [vmem:[#allocation12_spill] sm:$0xff] %v6760_v24  ;;  %v2608_v52 = vmul.f32 1.442695, %v2518_v42 }
 0x292   :  { %5375 = vpow2.f32 %v2604_v0 }
 0x293   :  { %5377 = vpow2.f32 %v2606_v1 }
 0x294   :  { %2812 = vperm.xlu0 %5269, %v6742_v61  }
 0x295   :  { %2911 = vperm.xlu1 %5270, %v6704_v50  }
 0x298   :  { %2920 = vperm.xlu0 %5269, %v6752_v43  }
 0x299   :  { %2914 = vperm.xlu1 %5270, %v6716_v45   ;;  %v6762_v45 = vpop.eup %5361 }
 0x29a   :  { %7479 = vst [vmem:[#allocation11_spill] sm:$0xff] %v6762_v45  ;;  %v6770_v55 = vpop.eup %5363 }
 0x29b   :  { %7482 = vst [vmem:[#allocation14_spill] sm:$0xff] %v6770_v55  ;;  %v6772_v43 = vpop.eup %5365  ;;  %v2154_v2 = vpop.xlane.xlu0 %2153 }
 0x29c   :  { %2923 = vperm.xlu0 %5269, %v6762_v45   ;;  %7483 = vst [vmem:[#allocation15_spill] sm:$0xff] %v6772_v43  ;;  %v6780_v26 = vpop.eup %5367 }
 0x29d   :  { %2797 = vperm.xlu1 %5270, %v6728_v39   ;;  %v6782_v45 = vpop.eup %5369 }
 0x29e   :  { %7487 = vst [vmem:[#allocation13_spill] sm:$0xff] %v6782_v45  ;;  %v6790_v42 = vpop.eup %5371 }
 0x29f   :  { %v6792_v1 = vpop.eup %5373 }
 0x2a0   :  { %2926 = vperm.xlu0 %5269, %v6772_v43   ;;  %7491 = vst [vmem:[#allocation17_spill] sm:$0xff] %v6792_v1 }
 0x2a1   :  { %2809 = vperm.xlu1 %5270, %v6740_v47  }
 0x2a4   :  { %2932 = vperm.xlu0 %5269, %v6782_v45  }
 0x2a5   :  { %2815 = vperm.xlu1 %5270, %v6750_v15   ;;  %v2520_v15 = vsub.f32 %v7480_v8, %v2287_v63  ;;  %v2519_v8 = vsub.f32 %v7485_v57, %v2283_v51  ;;  %v2307_v51 = vrot.slane %v2154_v2, %v6468_v40  ;;  %v2311_v57 = vrot.slane %v2154_v2, %v6471_v14 }
 0x2a7   :  { %v2612_v63 = vmul.f32 1.442695, %v2520_v15  ;;  %v2303_v15 = vrot.slane %v2154_v2, %v5534_v13  ;;  %v2610_v0 = vmul.f32 1.442695, %v2519_v8  ;;  %v7493_v8 = vld [vmem:[#allocation19_spill] sm:$0xff] }
 0x2a8   :  { %2938 = vperm.xlu0 %5269, %v6792_v1  }
 0x2a9   :  { %2818 = vperm.xlu1 %5270, %v6760_v24   ;;  %v7484_v24 = vld [vmem:[#allocation18_spill] sm:$0xff]  ;;  %5379 = vpow2.f32 %v2612_v63 }
 0x2aa   :  { %v2522_v61 = vsub.f32 %v7484_v24, %v2295_v54  ;;  %7486 = vst [vmem:[#allocation18_spill] sm:$0xff] %v6780_v26  ;;  %v2521_v54 = vsub.f32 %v7489_v59, %v2291_v46  ;;  %5381 = vpow2.f32 %v2608_v52  ;;  %v2525_v52 = vsub.f32 %v7493_v8, %v2307_v51  ;;  %v6800_v59 = vpop.eup %5375 }
 0x2ab   :  { %v6802_v45 = vpop.eup %5377 }
 0x2ac   :  { %v2616_v24 = vmul.f32 1.442695, %v2522_v61  ;;  %v2319_v61 = vrot.slane %v2154_v2, %v6482_v25  ;;  %v2614_v46 = vmul.f32 1.442695, %v2521_v54  ;;  %7495 = vst [vmem:[#allocation19_spill] sm:$0xff] %v6802_v45  ;;  %2824 = vperm.xlu0 %5269, %v6802_v45   ;;  %v2315_v54 = vrot.slane %v2154_v2, %v6474_v28 }
 0x2ad   :  { %2917 = vperm.xlu1 %5270, %v6770_v55   ;;  %v7488_v55 = vld [vmem:[#allocation16_spill] sm:$0xff]  ;;  %v2622_v51 = vmul.f32 1.442695, %v2525_v52 }
 0x2ae   :  { %v2523_v47 = vsub.f32 %v7488_v55, %v2299_v38  ;;  %7490 = vst [vmem:[#allocation16_spill] sm:$0xff] %v6790_v42  ;;  %5383 = vpow2.f32 %v2616_v24  ;;  %v7492_v38 = vld [vmem:[#allocation20_spill] sm:$0xff]  ;;  %v7496_v24 = vld [vmem:[#allocation22_spill] sm:$0xff] }
 0x2af   :  { %v2524_v63 = vsub.f32 %v7492_v38, %v2303_v15  ;;  %5385 = vpow2.f32 %v2610_v0  ;;  %7494 = vst [vmem:[#allocation20_spill] sm:$0xff] %v6800_v59  ;;  %v7497_v0 = vld [vmem:[#allocation23_spill] sm:$0xff] }
 0x2b0   :  { %v2618_v55 = vmul.f32 1.442695, %v2523_v47  ;;  %v2327_v47 = vrot.slane %v2154_v2, %v6502_v48  ;;  %v2526_v38 = vsub.f32 %v7497_v0, %v2311_v57 }
 0x2b1   :  { %2929 = vperm.xlu1 %5270, %v6780_v26   ;;  %v2620_v15 = vmul.f32 1.442695, %v2524_v63  ;;  %v7500_v26 = vld [vmem:[#allocation26_spill] sm:$0xff]  ;;  %v2323_v63 = vrot.slane %v2154_v2, %v6494_v17 }
 0x2b2   :  { %5387 = vpow2.f32 %v2618_v55  ;;  %v2331_v55 = vrot.slane %v2154_v2, %v6510_v9  ;;  %v2530_v43 = vsub.f32 %v7500_v26, %v2327_v47  ;;  %v2624_v57 = vmul.f32 1.442695, %v2526_v38 }
 0x2b3   :  { %5389 = vpow2.f32 %v2614_v46  ;;  %v6810_v8 = vpop.eup %5379  ;;  %v7501_v46 = vld [vmem:[#allocation21_spill] sm:$0xff] }
 0x2b4   :  { %7498 = vst [vmem:[#allocation22_spill] sm:$0xff] %v6810_v8  ;;  %v6812_v1 = vpop.eup %5381  ;;  %5391 = vpow2.f32 %v2620_v15  ;;  %v2632_v26 = vmul.f32 1.442695, %v2530_v43 }
 0x2b5   :  { %2935 = vperm.xlu1 %5270, %v6790_v42   ;;  %v2528_v42 = vsub.f32 %v7496_v24, %v2319_v61  ;;  %7499 = vst [vmem:[#allocation23_spill] sm:$0xff] %v6812_v1  ;;  %2827 = vperm.xlu0 %5269, %v6812_v1   ;;  %v2527_v24 = vsub.f32 %v7501_v46, %v2315_v54  ;;  %5393 = vpow2.f32 %v2622_v51 }
 0x2b7   :  { %v2628_v61 = vmul.f32 1.442695, %v2528_v42  ;;  %v7505_v42 = vld [vmem:[#allocation25_spill] sm:$0xff]  ;;  %v2626_v2 = vmul.f32 1.442695, %v2527_v24 }
 0x2b8   :  { %v6820_v52 = vpop.eup %5383  ;;  %v2529_v47 = vsub.f32 %v7505_v42, %v2323_v63 }
 0x2b9   :  { %2821 = vperm.xlu1 %5270, %v6800_v59   ;;  %7502 = vst [vmem:[#allocation26_spill] sm:$0xff] %v6820_v52  ;;  %v6822_v0 = vpop.eup %5385  ;;  %5395 = vpow2.f32 %v2628_v61 }
 0x2ba   :  { %7503 = vst [vmem:[#allocation21_spill] sm:$0xff] %v6822_v0  ;;  %2830 = vperm.xlu0 %5269, %v6822_v0   ;;  %5397 = vpow2.f32 %v2624_v57  ;;  %v2630_v51 = vmul.f32 1.442695, %v2529_v47 }
 0x2bb   :  { %5399 = vpow2.f32 %v2632_v26 }
 0x2bc   :  { %v6828_v15 = vpop.eup %5387  ;;  %5401 = vpow2.f32 %v2626_v2 }
 0x2bd   :  { %2833 = vperm.xlu1 %5270, %v6810_v8   ;;  %v7504_v8 = vld [vmem:[#allocation24_spill] sm:$0xff]  ;;  %v6830_v54 = vpop.eup %5389 }
 0x2be   :  { %v2531_v59 = vsub.f32 %v7504_v8, %v2331_v55  ;;  %7506 = vst [vmem:[#allocation24_spill] sm:$0xff] %v6828_v15  ;;  %7507 = vst [vmem:[#allocation25_spill] sm:$0xff] %v6830_v54  ;;  %2836 = vperm.xlu0 %5269, %v6830_v54   ;;  %v6834_v8 = vpop.eup %5391 }
 0x2bf   :  { %7508 = vst [vmem:[#allocation31_spill] sm:$0xff] %v6834_v8  ;;  %v6836_v43 = vpop.eup %5393 }
 0x2c0   :  { %v2634_v38 = vmul.f32 1.442695, %v2531_v59  ;;  %7509 = vst [vmem:[#allocation32_spill] sm:$0xff] %v6836_v43 }
 0x2c1   :  { %2839 = vperm.xlu1 %5270, %v6820_v52  }
 0x2c2   :  { %5403 = vpow2.f32 %v2634_v38  ;;  %2848 = vperm.xlu0 %5269, %v6836_v43  }
 0x2c3   :  { %5405 = vpow2.f32 %v2630_v51  ;;  %v6840_v55 = vpop.eup %5395 }
 0x2c4   :  { %7510 = vst [vmem:[#allocation33_spill] sm:$0xff] %v6840_v55  ;;  %v6842_v63 = vpop.eup %5397 }
 0x2c5   :  { %2842 = vperm.xlu1 %5270, %v6828_v15   ;;  %7511 = vst [vmem:[#allocation34_spill] sm:$0xff] %v6842_v63  ;;  %v6846_v59 = vpop.eup %5399  ;;  %v7516_v15 = vld [vmem:[#allocation5_spill] sm:$0xff] }
 0x2c6   :  { %2851 = vperm.xlu0 %5269, %v6842_v63   ;;  %7512 = vst [vmem:[#allocation35_spill] sm:$0xff] %v6846_v59  ;;  %v6848_v24 = vpop.eup %5401 }
 0x2c7   :  { %7513 = vst [vmem:[#allocation36_spill] sm:$0xff] %v6848_v24 }
 0x2c9   :  { %2845 = vperm.xlu1 %5270, %v6834_v8  }
 0x2ca   :  { %2854 = vperm.xlu0 %5269, %v6848_v24  }
 0x2cb   :  { %v2753_v61 = vpop.permute.xlu1 %2752 }
 0x2cc   :  { %v6852_v57 = vpop.eup %5403  ;;  %v2750_v47 = vpop.permute.xlu0 %2749  ;;  %v2947_v52 = vrot.slane %v2753_v61, %v7516_v15 }
 0x2cd   :  { %2857 = vperm.xlu1 %5270, %v6840_v55   ;;  %7514 = vst [vmem:[#allocation37_spill] sm:$0xff] %v6852_v57  ;;  %v6854_v42 = vpop.eup %5405  ;;  %v2943_v0 = vrot.slane %v2750_v47, %v7516_v15 }
 0x2ce   :  { %7515 = vst [vmem:[#allocation38_spill] sm:$0xff] %v6854_v42  ;;  %2860 = vperm.xlu0 %5269, %v6854_v42  }
 0x2d0   :  { %v2756_v46 = vpop.permute.xlu1 %2755  ;;  %v2873_v38 = vpop.permute.xlu0 %2872 }
 0x2d1   :  { %2863 = vperm.xlu1 %5270, %v6846_v59   ;;  %v3107_v24 = vrot.slane %v2873_v38, %v7516_v15  ;;  %v2951_v42 = vrot.slane %v2756_v46, %v7516_v15 }
 0x2d4   :  { %v2759_v26 = vpop.permute.xlu1 %2758  ;;  %v2876_v63 = vpop.permute.xlu0 %2875 }
 0x2d5   :  { %2866 = vperm.xlu1 %5270, %v6852_v57   ;;  %v3111_v1 = vrot.slane %v2876_v63, %v7516_v15  ;;  %v2955_v30 = vrot.slane %v2759_v26, %v7516_v15 }
 0x2d8   :  { %v2762_v2 = vpop.permute.xlu1 %2761  ;;  %v2879_v43 = vpop.permute.xlu0 %2878 }
 0x2d9   :  { %v2959_v39 = vrot.slane %v2762_v2, %v7516_v15  ;;  %v3115_v61 = vrot.slane %v2879_v43, %v7516_v15 }
 0x2dc   :  { %v2765_v51 = vpop.permute.xlu1 %2764  ;;  %v2885_v44 = vpop.permute.xlu0 %2884 }
 0x2dd   :  { %v2963_v47 = vrot.slane %v2765_v51, %v7516_v15 }
 0x2e0   :  { %v2768_v55 = vpop.permute.xlu1 %2767 }
 0x2e1   :  { %v2967_v46 = vrot.slane %v2768_v55, %v7516_v15 }
 0x2e4   :  { %v2771_v8 = vpop.permute.xlu1 %2770 }
 0x2e5   :  { %v2971_v2 = vrot.slane %v2771_v8, %v7516_v15 }
 0x2e8   :  { %v2870_v59 = vpop.permute.xlu1 %2869 }
 0x2e9   :  { %v3103_v54 = vrot.slane %v2870_v59, %v7516_v15  ;;  %v3196_v59 = vsel %vm2068_vm2, %v2947_v52, %v2943_v0 }
 0x2eb   :  { %v3231_v57 = vsel %vm2068_vm2, %v3107_v24, %v3103_v54  ;;  %v3197_v54 = vsel %vm2070_vm3, %v2951_v42, %v3196_v59  ;;  %v2780_v52 = vpop.permute.xlu0 %2779 }
 0x2ec   :  { %v2882_v45 = vpop.permute.xlu1 %2881  ;;  %v3232_v38 = vsel %vm2070_vm3, %v3111_v1, %v3231_v57  ;;  %v3198_v26 = vsel %vm2072_vm4, %v2955_v30, %v3197_v54 }
 0x2ed   :  { %v3119_v63 = vrot.slane %v2882_v45, %v7516_v15  ;;  %v3233_v20 = vsel %vm2072_vm4, %v3115_v61, %v3232_v38  ;;  %v3199_v1 = vsel %vm2074_vm5, %v2959_v39, %v3198_v26  ;;  %v3123_v45 = vrot.slane %v2885_v44, %v7516_v15 }
 0x2ee   :  { %v3200_v0 = vsel %vm2076_vm6, %v2963_v47, %v3199_v1 }
 0x2ef   :  { %v3234_v43 = vsel %vm2074_vm5, %v3119_v63, %v3233_v20  ;;  %v3201_v55 = vsel %vm2078_vm7, %v2967_v46, %v3200_v0  ;;  %v2783_v51 = vpop.permute.xlu0 %2782 }
 0x2f0   :  { %v2888_v24 = vpop.permute.xlu1 %2887  ;;  %v3202_v8 = vsel %vm2080_vm8, %v2971_v2, %v3201_v55  ;;  %v3235_v38 = vsel %vm2076_vm6, %v3123_v45, %v3234_v43  ;;  %v2987_v43 = vrot.slane %v2783_v51, %v7516_v15 }
 0x2f1   :  { %v3127_v57 = vrot.slane %v2888_v24, %v7516_v15  ;;  %v3260_v59 = vsel %vm2139_vm9, %v3202_v8, 0.0  ;;  %v2983_v24 = vrot.slane %v2780_v52, %v7516_v15 }
 0x2f3   :  { %v3236_v61 = vsel %vm2078_vm7, %v3127_v57, %v3235_v38  ;;  %v2789_v47 = vpop.permute.xlu0 %2788 }
 0x2f4   :  { %v2891_v42 = vpop.permute.xlu1 %2890  ;;  %v2995_v52 = vrot.slane %v2789_v47, %v7516_v15 }
 0x2f5   :  { %v3131_v30 = vrot.slane %v2891_v42, %v7516_v15 }
 0x2f7   :  { %v3237_v20 = vsel %vm2080_vm8, %v3131_v30, %v3236_v61  ;;  %v2897_v26 = vpop.permute.xlu0 %2896 }
 0x2f8   :  { %v2774_v39 = vpop.permute.xlu1 %2773  ;;  %v3275_v46 = vsel %vm2139_vm9, %v3237_v20, 0.0 }
 0x2f9   :  { %3261 = vadd.xlane.f32.xlu1 %v3260_v59  ;;  %v2975_v44 = vrot.slane %v2774_v39, %v7516_v15 }
 0x2fb   :  { %v2900_v42 = vpop.permute.xlu0 %2899 }
 0x2fc   :  { %v2777_v54 = vpop.permute.xlu1 %2776  ;;  %v3143_v47 = vrot.slane %v2900_v42, %v7516_v15 }
 0x2fd   :  { %v2979_v63 = vrot.slane %v2777_v54, %v7516_v15  ;;  %3276 = vadd.xlane.f32.xlu1 %v3275_v46 }
 0x2ff   :  { %v3203_v2 = vsel %vm2068_vm2, %v2979_v63, %v2975_v44  ;;  %v2903_v39 = vpop.permute.xlu0 %2902  ;;  %v3139_v44 = vrot.slane %v2897_v26, %v7516_v15 }
 0x300   :  { %v3204_v1 = vsel %vm2070_vm3, %v2983_v24, %v3203_v2  ;;  %v2786_v0 = vpop.permute.xlu1 %2785 }
 0x301   :  { %v2991_v57 = vrot.slane %v2786_v0, %v7516_v15  ;;  %v3205_v55 = vsel %vm2072_vm4, %v2987_v43, %v3204_v1  ;;  %v3147_v43 = vrot.slane %v2903_v39, %v7516_v15 }
 0x303   :  { %v3206_v30 = vsel %vm2074_vm5, %v2991_v57, %v3205_v55  ;;  %v2909_v24 = vpop.permute.xlu0 %2908 }
 0x304   :  { %v2792_v45 = vpop.permute.xlu1 %2791  ;;  %v3207_v61 = vsel %vm2076_vm6, %v2995_v52, %v3206_v30  ;;  %v3155_v42 = vrot.slane %v2909_v24, %v7516_v15 }
 0x305   :  { %v2999_v8 = vrot.slane %v2792_v45, %v7516_v15 }
 0x307   :  { %v3208_v51 = vsel %vm2078_vm7, %v2999_v8, %v3207_v61  ;;  %v2801_v30 = vpop.permute.xlu0 %2800 }
 0x308   :  { %v2795_v38 = vpop.permute.xlu1 %2794 }
 0x309   :  { %v3003_v59 = vrot.slane %v2795_v38, %v7516_v15 }
 0x30b   :  { %v3209_v20 = vsel %vm2080_vm8, %v3003_v59, %v3208_v51  ;;  %v2804_v38 = vpop.permute.xlu0 %2803 }
 0x30c   :  { %v2894_v54 = vpop.permute.xlu1 %2893  ;;  %v3263_v46 = vsel %vm2139_vm9, %v3209_v20, 0.0 }
 0x30d   :  { %v3135_v63 = vrot.slane %v2894_v54, %v7516_v15  ;;  %3264 = vadd.xlane.f32.xlu0 %v3263_v46  ;;  %v3011_v46 = vrot.slane %v2801_v30, %v7516_v15 }
 0x30f   :  { %v3238_v2 = vsel %vm2068_vm2, %v3139_v44, %v3135_v63  ;;  %v2807_v44 = vpop.permute.xlu0 %2806 }
 0x310   :  { %v3239_v1 = vsel %vm2070_vm3, %v3143_v47, %v3238_v2  ;;  %v2906_v0 = vpop.permute.xlu1 %2905  ;;  %v3015_v47 = vrot.slane %v2804_v38, %v7516_v15 }
 0x311   :  { %v3151_v57 = vrot.slane %v2906_v0, %v7516_v15  ;;  %v3240_v55 = vsel %vm2072_vm4, %v3147_v43, %v3239_v1  ;;  %v3019_v0 = vrot.slane %v2807_v44, %v7516_v15 }
 0x313   :  { %v3241_v26 = vsel %vm2074_vm5, %v3151_v57, %v3240_v55  ;;  %v2813_v43 = vpop.permute.xlu0 %2812 }
 0x314   :  { %v2912_v45 = vpop.permute.xlu1 %2911  ;;  %v3242_v61 = vsel %vm2076_vm6, %v3155_v42, %v3241_v26  ;;  %v3027_v42 = vrot.slane %v2813_v43, %v7516_v15 }
 0x315   :  { %v3159_v8 = vrot.slane %v2912_v45, %v7516_v15 }
 0x317   :  { %v3243_v39 = vsel %vm2078_vm7, %v3159_v8, %v3242_v61  ;;  %v2921_v30 = vpop.permute.xlu0 %2920 }
 0x318   :  { %v2915_v52 = vpop.permute.xlu1 %2914 }
 0x319   :  { %v3163_v59 = vrot.slane %v2915_v52, %v7516_v15 }
 0x31b   :  { %v3244_v51 = vsel %vm2080_vm8, %v3163_v59, %v3243_v39  ;;  %v2924_v38 = vpop.permute.xlu0 %2923 }
 0x31c   :  { %v2798_v20 = vpop.permute.xlu1 %2797  ;;  %v3278_v54 = vsel %vm2139_vm9, %v3244_v51, 0.0 }
 0x31d   :  { %v3007_v63 = vrot.slane %v2798_v20, %v7516_v15  ;;  %3279 = vadd.xlane.f32.xlu0 %v3278_v54 }
 0x31f   :  { %v3210_v24 = vsel %vm2068_vm2, %v3011_v46, %v3007_v63  ;;  %v3171_v46 = vrot.slane %v2921_v30, %v7516_v15  ;;  %v2927_v44 = vpop.permute.xlu0 %2926 }
 0x320   :  { %v3211_v2 = vsel %vm2070_vm3, %v3015_v47, %v3210_v24  ;;  %v2810_v1 = vpop.permute.xlu1 %2809  ;;  %v3175_v47 = vrot.slane %v2924_v38, %v7516_v15  ;;  %v3179_v24 = vrot.slane %v2927_v44, %v7516_v15 }
 0x321   :  { %v3023_v57 = vrot.slane %v2810_v1, %v7516_v15  ;;  %v3212_v55 = vsel %vm2072_vm4, %v3019_v0, %v3211_v2 }
 0x323   :  { %v3213_v26 = vsel %vm2074_vm5, %v3023_v57, %v3212_v55  ;;  %v2933_v43 = vpop.permute.xlu0 %2932 }
 0x324   :  { %v2816_v45 = vpop.permute.xlu1 %2815  ;;  %v3214_v61 = vsel %vm2076_vm6, %v3027_v42, %v3213_v26  ;;  %v3187_v30 = vrot.slane %v2933_v43, %v7516_v15 }
 0x325   :  { %v3031_v8 = vrot.slane %v2816_v45, %v7516_v15 }
 0x327   :  { %v3215_v39 = vsel %vm2078_vm7, %v3031_v8, %v3214_v61  ;;  %v2939_v8 = vpop.permute.xlu0 %2938 }
 0x328   :  { %v2819_v52 = vpop.permute.xlu1 %2818 }
 0x329   :  { %v3035_v59 = vrot.slane %v2819_v52, %v7516_v15  ;;  %v3195_v52 = vrot.slane %v2939_v8, %v7516_v15 }
 0x32b   :  { %v3216_v51 = vsel %vm2080_vm8, %v3035_v59, %v3215_v39 }
 0x32c   :  { %v2918_v20 = vpop.permute.xlu1 %2917  ;;  %v3266_v54 = vsel %vm2139_vm9, %v3216_v51, 0.0  ;;  %v2825_v51 = vpop.permute.xlu0 %2824 }
 0x32d   :  { %v3167_v63 = vrot.slane %v2918_v20, %v7516_v15  ;;  %3267 = vadd.xlane.f32.xlu0 %v3266_v54 }
 0x32f   :  { %v3245_v2 = vsel %vm2068_vm2, %v3171_v46, %v3167_v63  ;;  %v3043_v46 = vrot.slane %v2825_v51, %v7516_v15 }
 0x330   :  { %v3246_v1 = vsel %vm2070_vm3, %v3175_v47, %v3245_v2  ;;  %v2930_v0 = vpop.permute.xlu1 %2929 }
 0x331   :  { %v3183_v57 = vrot.slane %v2930_v0, %v7516_v15  ;;  %v3247_v55 = vsel %vm2072_vm4, %v3179_v24, %v3246_v1 }
 0x333   :  { %v3248_v45 = vsel %vm2074_vm5, %v3183_v57, %v3247_v55 }
 0x334   :  { %v2936_v26 = vpop.permute.xlu1 %2935  ;;  %v3249_v38 = vsel %vm2076_vm6, %v3187_v30, %v3248_v45  ;;  %v2828_v63 = vpop.permute.xlu0 %2827 }
 0x335   :  { %v3191_v42 = vrot.slane %v2936_v26, %v7516_v15  ;;  %v3047_v24 = vrot.slane %v2828_v63, %v7516_v15 }
 0x337   :  { %v3250_v59 = vsel %vm2078_vm7, %v3191_v42, %v3249_v38 }
 0x338   :  { %v2822_v61 = vpop.permute.xlu1 %2821  ;;  %v3251_v39 = vsel %vm2080_vm8, %v3195_v52, %v3250_v59 }
 0x339   :  { %v3281_v20 = vsel %vm2139_vm9, %v3251_v39, 0.0  ;;  %v3039_v54 = vrot.slane %v2822_v61, %v7516_v15  ;;  %v2831_v1 = vpop.permute.xlu0 %2830 }
 0x33a   :  { %3282 = vadd.xlane.f32.xlu1 %v3281_v20  ;;  %v3051_v57 = vrot.slane %v2831_v1, %v7516_v15 }
 0x33b   :  { %v3217_v47 = vsel %vm2068_vm2, %v3043_v46, %v3039_v54 }
 0x33c   :  { %v2834_v44 = vpop.permute.xlu1 %2833  ;;  %v3218_v0 = vsel %vm2070_vm3, %v3047_v24, %v3217_v47 }
 0x33d   :  { %v3055_v43 = vrot.slane %v2834_v44, %v7516_v15  ;;  %v3219_v55 = vsel %vm2072_vm4, %v3051_v57, %v3218_v0  ;;  %v2837_v30 = vpop.permute.xlu0 %2836 }
 0x33e   :  { %v3059_v42 = vrot.slane %v2837_v30, %v7516_v15 }
 0x33f   :  { %v3220_v26 = vsel %vm2074_vm5, %v3055_v43, %v3219_v55 }
 0x340   :  { %v2840_v2 = vpop.permute.xlu1 %2839  ;;  %v3221_v59 = vsel %vm2076_vm6, %v3059_v42, %v3220_v26 }
 0x341   :  { %v3063_v8 = vrot.slane %v2840_v2, %v7516_v15  ;;  %v2849_v61 = vpop.permute.xlu0 %2848 }
 0x342   :  { %v3075_v46 = vrot.slane %v2849_v61, %v7516_v15 }
 0x343   :  { %v3222_v39 = vsel %vm2078_vm7, %v3063_v8, %v3221_v59 }
 0x344   :  { %v2843_v45 = vpop.permute.xlu1 %2842 }
 0x345   :  { %v3067_v52 = vrot.slane %v2843_v45, %v7516_v15  ;;  %v2852_v63 = vpop.permute.xlu0 %2851 }
 0x346   :  { %v3079_v24 = vrot.slane %v2852_v63, %v7516_v15 }
 0x347   :  { %v3223_v20 = vsel %vm2080_vm8, %v3067_v52, %v3222_v39 }
 0x348   :  { %v2846_v38 = vpop.permute.xlu1 %2845  ;;  %v3269_v54 = vsel %vm2139_vm9, %v3223_v20, 0.0 }
 0x349   :  { %v3071_v51 = vrot.slane %v2846_v38, %v7516_v15  ;;  %3270 = vadd.xlane.f32.xlu1 %v3269_v54  ;;  %v2855_v1 = vpop.permute.xlu0 %2854 }
 0x34a   :  { %v3083_v57 = vrot.slane %v2855_v1, %v7516_v15 }
 0x34b   :  { %v3224_v47 = vsel %vm2068_vm2, %v3075_v46, %v3071_v51 }
 0x34c   :  { %v2858_v44 = vpop.permute.xlu1 %2857  ;;  %v3225_v0 = vsel %vm2070_vm3, %v3079_v24, %v3224_v47 }
 0x34d   :  { %v3087_v43 = vrot.slane %v2858_v44, %v7516_v15  ;;  %v3226_v55 = vsel %vm2072_vm4, %v3083_v57, %v3225_v0  ;;  %v2861_v30 = vpop.permute.xlu0 %2860 }
 0x34e   :  { %v3091_v42 = vrot.slane %v2861_v30, %v7516_v15 }
 0x34f   :  { %v3227_v26 = vsel %vm2074_vm5, %v3087_v43, %v3226_v55 }
 0x350   :  { %v2864_v2 = vpop.permute.xlu1 %2863  ;;  %v3228_v38 = vsel %vm2076_vm6, %v3091_v42, %v3227_v26 }
 0x351   :  { %v3095_v8 = vrot.slane %v2864_v2, %v7516_v15 }
 0x353   :  { %v3229_v59 = vsel %vm2078_vm7, %v3095_v8, %v3228_v38 }
 0x354   :  { %v2867_v45 = vpop.permute.xlu1 %2866 }
 0x355   :  { %v3099_v52 = vrot.slane %v2867_v45, %v7516_v15 }
 0x357   :  { %v3230_v61 = vsel %vm2080_vm8, %v3099_v52, %v3229_v59 }
 0x358   :  { %v3272_v39 = vsel %vm2139_vm9, %v3230_v61, 0.0 }
 0x359   :  { %3273 = vadd.xlane.f32.xlu0 %v3272_v39 }
 0x386   :  { %v3262_v51 = vpop.xlane.xlu1 %3261 }
 0x387   :  { %5407 = vrcp.f32 %v3262_v51 }
 0x38a   :  { %v3277_v20 = vpop.xlane.xlu1 %3276 }
 0x38b   :  { %5409 = vrcp.f32 %v3277_v20 }
 0x391   :  { %v5408_v54 = vpop.eup %5407 }
 0x392   :  { %v3307_v46 = vrot.slane %v5408_v54, %v6468_v40  ;;  %v3303_v44 = vrot.slane %v5408_v54, %v5534_v13  ;;  %v3311_v24 = vrot.slane %v5408_v54, %v6471_v14  ;;  %v3315_v2 = vrot.slane %v5408_v54, %v6474_v28 }
 0x393   :  { %v3319_v43 = vrot.slane %v5408_v54, %v6482_v25  ;;  %v3323_v57 = vrot.slane %v5408_v54, %v6494_v17  ;;  %v3327_v30 = vrot.slane %v5408_v54, %v6502_v48  ;;  %v3331_v8 = vrot.slane %v5408_v54, %v6510_v9  ;;  %v7019_v54 = vld [vmem:[#allocation2] sm:$0xff] }
 0x394   :  { %v3621_v63 = vmul.f32 %v6515_v29, %v3307_v46  ;;  %v3620_v47 = vmul.f32 %v6517_v5, %v3303_v44  ;;  %v3622_v1 = vmul.f32 %v6525_v7, %v3311_v24  ;;  %v3623_v0 = vmul.f32 %v6532_v10, %v3315_v2 }
 0x395   :  { %v5410_v55 = vpop.eup %5409  ;;  %v3624_v5 = vmul.f32 %v6541_v37, %v3319_v43  ;;  %v3625_v45 = vmul.f32 %v6552_v22, %v3323_v57  ;;  %v3626_v7 = vmul.f32 %v6563_v31, %v3327_v30  ;;  %v3627_v37 = vmul.f32 %v6572_v21, %v3331_v8 }
 0x396   :  { %3696 = vperm.xlu1 %5270, %v3621_v63   ;;  %3693 = vperm.xlu0 %5269, %v3620_v47   ;;  %v3467_v26 = vrot.slane %v5410_v55, %v6468_v40  ;;  %v3471_v42 = vrot.slane %v5410_v55, %v6471_v14  ;;  %v3463_v52 = vrot.slane %v5410_v55, %v5534_v13  ;;  %v5464_v21 = vmov 0.0  }
 0x397   :  { %v3475_v38 = vrot.slane %v5410_v55, %v6474_v28  ;;  %v3479_v59 = vrot.slane %v5410_v55, %v6482_v25  ;;  %v3483_v61 = vrot.slane %v5410_v55, %v6494_v17  ;;  %5210 = vmatprep.subr.mxu1 %v5464_v21  ;;  %5212 = vmatprep.mubr.msk.f32.mxu1 %vm5465_vm10, %v5464_v21 }
 0x398   :  { %v3661_v10 = vmul.f32 %v6523_v58, %v3467_v26  ;;  %v3662_v22 = vmul.f32 %v6534_v4, %v3471_v42  ;;  %v3660_v31 = vmul.f32 %v6583_v6, %v3463_v52  ;;  %5211 = vmatpush3.msra.mxu1 %v7019_v54 }
 0x399   :  { %v3663_v58 = vmul.f32 %v6543_v27, %v3475_v38  ;;  %v3664_v51 = vmul.f32 %v6592_v34, %v3479_v59  ;;  %v3665_v6 = vmul.f32 %v6556_v35, %v3483_v61  ;;  %v3487_v27 = vrot.slane %v5410_v55, %v6502_v48  ;;  %5215 = vmatprep.subr.mxu1 %v5464_v21 }
 0x39a   :  { %3699 = vperm.xlu1 %5270, %v3622_v1   ;;  %3702 = vperm.xlu0 %5269, %v3623_v0   ;;  %v3265_v29 = vpop.xlane.xlu0 %3264  ;;  %v3491_v34 = vrot.slane %v5410_v55, %v6510_v9 }
 0x39b   :  { %5411 = vrcp.f32 %v3265_v29  ;;  %v3666_v46 = vmul.f32 %v6601_v49, %v3487_v27 }
 0x39c   :  { %v3667_v63 = vmul.f32 %v6613_v18, %v3491_v34  ;;  %v7522_v34 = vld [vmem:[#allocation8_spill] sm:$0xff] }
 0x39e   :  { %3705 = vperm.xlu1 %5270, %v3624_v5   ;;  %3708 = vperm.xlu0 %5269, %v3625_v45  }
 0x3a2   :  { %3711 = vperm.xlu1 %5270, %v3626_v7   ;;  %4411 = vperm.xlu0 %5269, %v3661_v10  }
 0x3a5   :  { %v5412_v39 = vpop.eup %5411 }
 0x3a6   :  { %3714 = vperm.xlu1 %5270, %v3627_v37   ;;  %4414 = vperm.xlu0 %5269, %v3662_v22   ;;  %v3339_v20 = vrot.slane %v5412_v39, %v6468_v40  ;;  %v3343_v35 = vrot.slane %v5412_v39, %v6471_v14  ;;  %v3347_v24 = vrot.slane %v5412_v39, %v6474_v28  ;;  %v7517_v22 = vld [vmem:[#allocation27_spill] sm:$0xff] }
 0x3a7   :  { %v3335_v2 = vrot.slane %v5412_v39, %v5534_v13  ;;  %v3355_v1 = vrot.slane %v5412_v39, %v6494_v17  ;;  %v3351_v0 = vrot.slane %v5412_v39, %v6482_v25  ;;  %v3359_v55 = vrot.slane %v5412_v39, %v6502_v48 }
 0x3a8   :  { %v3629_v44 = vmul.f32 %v6635_v12, %v3339_v20  ;;  %v3630_v47 = vmul.f32 %v6607_v53, %v3343_v35  ;;  %v3631_v49 = vmul.f32 %v6619_v3, %v3347_v24  ;;  %v3363_v5 = vrot.slane %v5412_v39, %v6510_v9 }
 0x3a9   :  { %v3628_v12 = vmul.f32 %v6625_v11, %v3335_v2  ;;  %v3633_v53 = vmul.f32 %v6629_v41, %v3355_v1  ;;  %v3632_v57 = vmul.f32 %v6648_v19, %v3351_v0  ;;  %v3634_v11 = vmul.f32 %v6660_v16, %v3359_v55  ;;  %v7525_v1 = vld [vmem:[#allocation12_spill] sm:$0xff] }
 0x3aa   :  { %4408 = vperm.xlu1 %5270, %v3660_v31   ;;  %4417 = vperm.xlu0 %5269, %v3663_v58   ;;  %v3280_v4 = vpop.xlane.xlu0 %3279  ;;  %v3635_v41 = vmul.f32 %v6672_v32, %v3363_v5  ;;  %v7519_v58 = vld [vmem:[#allocation6_spill] sm:$0xff] }
 0x3ab   :  { %5413 = vrcp.f32 %v3280_v4  ;;  %v7520_v4 = vld [vmem:[#allocation30_spill] sm:$0xff] }
 0x3ae   :  { %4420 = vperm.xlu1 %5270, %v3664_v51   ;;  %4423 = vperm.xlu0 %5269, %v3665_v6   ;;  %v7521_v51 = vld [vmem:[#allocation7_spill] sm:$0xff] }
 0x3b2   :  { %4426 = vperm.xlu1 %5270, %v3666_v46   ;;  %3839 = vperm.xlu0 %5269, %v3629_v44  }
 0x3b5   :  { %v7035_v43 = vpop.eup %5413 }
 0x3b6   :  { %4429 = vperm.xlu1 %5270, %v3667_v63   ;;  %3842 = vperm.xlu0 %5269, %v3630_v47   ;;  %v3499_v3 = vrot.slane %v7035_v43, %v6468_v40  ;;  %v3503_v45 = vrot.slane %v7035_v43, %v6471_v14  ;;  %v3507_v30 = vrot.slane %v7035_v43, %v6474_v28  ;;  %v7523_v63 = vld [vmem:[#allocation10_spill] sm:$0xff] }
 0x3b7   :  { %v3495_v26 = vrot.slane %v7035_v43, %v5534_v13  ;;  %v3515_v7 = vrot.slane %v7035_v43, %v6494_v17  ;;  %v3511_v32 = vrot.slane %v7035_v43, %v6482_v25  ;;  %v3519_v37 = vrot.slane %v7035_v43, %v6502_v48 }
 0x3b8   :  { %v3669_v29 = vmul.f32 %v6640_v23, %v3499_v3  ;;  %v3670_v19 = vmul.f32 %v6651_v36, %v3503_v45  ;;  %v3671_v23 = vmul.f32 %v6663_v60, %v3507_v30 }
 0x3b9   :  { %v3668_v16 = vmul.f32 %v6684_v56, %v3495_v26  ;;  %v3673_v8 = vmul.f32 %v6675_v33, %v3515_v7  ;;  %v3672_v42 = vmul.f32 %v6695_v62, %v3511_v32  ;;  %v3674_v56 = vmul.f32 %v6704_v50, %v3519_v37  ;;  %v7518_v33 = vld [vmem:[#allocation29_spill] sm:$0xff]  ;;  %v7530_v32 = vld [vmem:[#allocation22_spill] sm:$0xff] }
 0x3ba   :  { %3845 = vperm.xlu0 %5269, %v3631_v49   ;;  %3836 = vperm.xlu1 %5270, %v3628_v12   ;;  %v3268_v18 = vpop.xlane.xlu0 %3267  ;;  %v7524_v49 = vld [vmem:[#allocation9_spill] sm:$0xff] }
 0x3bb   :  { %5415 = vrcp.f32 %v3268_v18 }
 0x3be   :  { %3851 = vperm.xlu0 %5269, %v3633_v53   ;;  %3848 = vperm.xlu1 %5270, %v3632_v57   ;;  %v7526_v57 = vld [vmem:[#allocation14_spill] sm:$0xff] }
 0x3c2   :  { %3854 = vperm.xlu1 %5270, %v3634_v11   ;;  %4554 = vperm.xlu0 %5269, %v3669_v29   ;;  %v7527_v29 = vld [vmem:[#allocation19_spill] sm:$0xff] }
 0x3c5   :  { %v5416_v10 = vpop.eup %5415 }
 0x3c6   :  { %3857 = vperm.xlu1 %5270, %v3635_v41   ;;  %4557 = vperm.xlu0 %5269, %v3670_v19   ;;  %v3371_v60 = vrot.slane %v5416_v10, %v6468_v40  ;;  %v3375_v38 = vrot.slane %v5416_v10, %v6471_v14  ;;  %v3367_v31 = vrot.slane %v5416_v10, %v5534_v13  ;;  %v7528_v41 = vld [vmem:[#allocation20_spill] sm:$0xff] }
 0x3c7   :  { %v3283_v36 = vpop.xlane.xlu1 %3282  ;;  %v3379_v61 = vrot.slane %v5416_v10, %v6474_v28  ;;  %v3383_v39 = vrot.slane %v5416_v10, %v6482_v25  ;;  %v3387_v27 = vrot.slane %v5416_v10, %v6494_v17  ;;  %v3391_v20 = vrot.slane %v5416_v10, %v6502_v48 }
 0x3c8   :  { %5417 = vrcp.f32 %v3283_v36  ;;  %v3637_v52 = vmul.f32 %v7517_v22, %v3371_v60  ;;  %v3638_v62 = vmul.f32 %v7518_v33, %v3375_v38  ;;  %v3636_v59 = vmul.f32 %v7519_v58, %v3367_v31  ;;  %v7532_v60 = vld [vmem:[#allocation26_spill] sm:$0xff]  ;;  %v7534_v33 = vld [vmem:[#allocation24_spill] sm:$0xff] }
 0x3c9   :  { %v3639_v50 = vmul.f32 %v7520_v4, %v3379_v61  ;;  %v3640_v6 = vmul.f32 %v7521_v51, %v3383_v39  ;;  %v3641_v35 = vmul.f32 %v7522_v34, %v3387_v27  ;;  %v3642_v47 = vmul.f32 %v7523_v63, %v3391_v20  ;;  %v7535_v61 = vld [vmem:[#allocation32_spill] sm:$0xff]  ;;  %v7537_v27 = vld [vmem:[#allocation34_spill] sm:$0xff]  ;;  %v7538_v34 = vld [vmem:[#allocation33_spill] sm:$0xff] }
 0x3ca   :  { %4560 = vperm.xlu0 %5269, %v3671_v23   ;;  %4551 = vperm.xlu1 %5270, %v3668_v16   ;;  %v3395_v2 = vrot.slane %v5416_v10, %v6510_v9  ;;  %v7529_v23 = vld [vmem:[#allocation23_spill] sm:$0xff] }
 0x3cc   :  { %v3643_v0 = vmul.f32 %v7525_v1, %v3395_v2 }
 0x3ce   :  { %4566 = vperm.xlu0 %5269, %v3673_v8   ;;  %4563 = vperm.xlu1 %5270, %v3672_v42   ;;  %v7531_v8 = vld [vmem:[#allocation21_spill] sm:$0xff] }
 0x3d2   :  { %4569 = vperm.xlu1 %5270, %v3674_v56   ;;  %3982 = vperm.xlu0 %5269, %v3637_v52   ;;  %v7076_v46 = vpop.eup %5417  ;;  %v7533_v52 = vld [vmem:[#allocation25_spill] sm:$0xff] }
 0x3d3   :  { %v3531_v24 = vrot.slane %v7076_v46, %v6468_v40  ;;  %v3527_v18 = vrot.slane %v7076_v46, %v5534_v13 }
 0x3d5   :  { %v3677_v12 = vmul.f32 %v7524_v49, %v3531_v24  ;;  %v3676_v55 = vmul.f32 %v7526_v57, %v3527_v18  ;;  %v7540_v24 = vld [vmem:[#allocation35_spill] sm:$0xff]  ;;  %v7542_v18 = vld [vmem:[#allocation37_spill] sm:$0xff]  ;;  %v3523_v57 = vrot.slane %v7035_v43, %v6510_v9  ;;  %v7546_v43 = vld [vmem:[#allocation18_spill] sm:$0xff] }
 0x3d6   :  { %3985 = vperm.xlu0 %5269, %v3638_v62   ;;  %3979 = vperm.xlu1 %5270, %v3636_v59   ;;  %v3271_v44 = vpop.xlane.xlu1 %3270 }
 0x3d7   :  { %5419 = vrcp.f32 %v3271_v44 }
 0x3da   :  { %3988 = vperm.xlu0 %5269, %v3639_v50   ;;  %3991 = vperm.xlu1 %5270, %v3640_v6   ;;  %v7536_v50 = vld [vmem:[#allocation31_spill] sm:$0xff] }
 0x3de   :  { %3994 = vperm.xlu0 %5269, %v3641_v35   ;;  %3997 = vperm.xlu1 %5270, %v3642_v47  }
 0x3e1   :  { %v5420_v53 = vpop.eup %5419 }
 0x3e2   :  { %4697 = vperm.xlu0 %5269, %v3677_v12   ;;  %4000 = vperm.xlu1 %5270, %v3643_v0   ;;  %v3403_v3 = vrot.slane %v5420_v53, %v6468_v40  ;;  %v3399_v11 = vrot.slane %v5420_v53, %v5534_v13  ;;  %v3407_v45 = vrot.slane %v5420_v53, %v6471_v14  ;;  %v7541_v12 = vld [vmem:[#allocation38_spill] sm:$0xff] }
 0x3e3   :  { %v3415_v30 = vrot.slane %v5420_v53, %v6482_v25  ;;  %v3411_v7 = vrot.slane %v5420_v53, %v6474_v28  ;;  %v3423_v36 = vrot.slane %v5420_v53, %v6502_v48  ;;  %v3419_v37 = vrot.slane %v5420_v53, %v6494_v17 }
 0x3e4   :  { %v3645_v5 = vmul.f32 %v7527_v29, %v3403_v3  ;;  %v3644_v19 = vmul.f32 %v7528_v41, %v3399_v11  ;;  %v3646_v16 = vmul.f32 %v7529_v23, %v3407_v45  ;;  %v3427_v22 = vrot.slane %v5420_v53, %v6510_v9  ;;  %v7544_v29 = vld [vmem:[#allocation28_spill] sm:$0xff] }
 0x3e5   :  { %v3648_v10 = vmul.f32 %v7530_v32, %v3415_v30  ;;  %v3647_v42 = vmul.f32 %v7531_v8, %v3411_v7  ;;  %v3650_v56 = vmul.f32 %v7532_v60, %v3423_v36  ;;  %v3649_v38 = vmul.f32 %v7533_v52, %v3419_v37  ;;  %v7549_v32 = vld [vmem:[#allocation17_spill] sm:$0xff] }
 0x3e6   :  { %4694 = vperm.xlu1 %5270, %v3676_v55   ;;  %4125 = vperm.xlu0 %5269, %v3645_v5   ;;  %v3274_v26 = vpop.xlane.xlu0 %3273  ;;  %v3651_v62 = vmul.f32 %v7534_v33, %v3427_v22  ;;  %v3535_v0 = vrot.slane %v7076_v46, %v6471_v14  ;;  %v7543_v55 = vld [vmem:[#allocation11_spill] sm:$0xff]  ;;  %v3539_v11 = vrot.slane %v7076_v46, %v6474_v28 }
 0x3e7   :  { %5421 = vrcp.f32 %v3274_v26  ;;  %v3675_v5 = vmul.f32 %v7544_v29, %v3523_v57  ;;  %v3543_v45 = vrot.slane %v7076_v46, %v6482_v25  ;;  %v3551_v26 = vrot.slane %v7076_v46, %v6502_v48 }
 0x3e8   :  { %v3678_v3 = vmul.f32 %v7543_v55, %v3535_v0 }
 0x3e9   :  { %v3680_v30 = vmul.f32 %v7546_v43, %v3543_v45 }
 0x3ea   :  { %4122 = vperm.xlu1 %5270, %v3644_v19   ;;  %4128 = vperm.xlu0 %5269, %v3646_v16   ;;  %v3547_v19 = vrot.slane %v7076_v46, %v6494_v17  ;;  %v3555_v16 = vrot.slane %v7076_v46, %v6510_v9 }
 0x3ee   :  { %4134 = vperm.xlu1 %5270, %v3648_v10   ;;  %4131 = vperm.xlu0 %5269, %v3647_v42   ;;  %v3683_v10 = vmul.f32 %v7549_v32, %v3555_v16 }
 0x3f1   :  { %v5422_v31 = vpop.eup %5421 }
 0x3f2   :  { %4140 = vperm.xlu1 %5270, %v3650_v56   ;;  %4137 = vperm.xlu0 %5269, %v3649_v38   ;;  %v3435_v58 = vrot.slane %v5422_v31, %v6468_v40  ;;  %v3431_v59 = vrot.slane %v5422_v31, %v5534_v13  ;;  %v3439_v4 = vrot.slane %v5422_v31, %v6471_v14  ;;  %v7539_v13 = vld [vmem:[#allocation36_spill] sm:$0xff]  ;;  %v7545_v14 = vld [vmem:[#allocation15_spill] sm:$0xff] }
 0x3f3   :  { %v3447_v6 = vrot.slane %v5422_v31, %v6482_v25  ;;  %v3443_v44 = vrot.slane %v5422_v31, %v6474_v28  ;;  %v3455_v40 = vrot.slane %v5422_v31, %v6502_v48  ;;  %v3451_v47 = vrot.slane %v5422_v31, %v6494_v17  ;;  %v7547_v28 = vld [vmem:[#allocation13_spill] sm:$0xff]  ;;  %v7548_v25 = vld [vmem:[#allocation16_spill] sm:$0xff] }
 0x3f4   :  { %v3653_v39 = vmul.f32 %v7535_v61, %v3435_v58  ;;  %v3652_v51 = vmul.f32 %v7536_v50, %v3431_v59  ;;  %v3654_v20 = vmul.f32 %v7537_v27, %v3439_v4  ;;  %v3459_v49 = vrot.slane %v5422_v31, %v6510_v9 }
 0x3f5   :  { %v3656_v35 = vmul.f32 %v7538_v34, %v3447_v6  ;;  %v3655_v63 = vmul.f32 %v7539_v13, %v3443_v44  ;;  %v3658_v2 = vmul.f32 %v7540_v24, %v3455_v40  ;;  %v3657_v1 = vmul.f32 %v7541_v12, %v3451_v47  ;;  %v7159_v40 = vld [vmem:[#allocation2 + $0x8] sm:$0xff] }
 0x3f6   :  { %4143 = vperm.xlu1 %5270, %v3651_v62   ;;  %4268 = vperm.xlu0 %5269, %v3653_v39   ;;  %v3659_v53 = vmul.f32 %v7542_v18, %v3459_v49  ;;  %v3679_v41 = vmul.f32 %v7545_v14, %v3539_v11  ;;  %v3681_v23 = vmul.f32 %v7547_v28, %v3547_v19 }
 0x3f7   :  { %v3682_v7 = vmul.f32 %v7548_v25, %v3551_v26 }
 0x3fa   :  { %4265 = vperm.xlu1 %5270, %v3652_v51   ;;  %4271 = vperm.xlu0 %5269, %v3654_v20  }
 0x3fe   :  { %4277 = vperm.xlu1 %5270, %v3656_v35   ;;  %4274 = vperm.xlu0 %5269, %v3655_v63  }
 0x402   :  { %4283 = vperm.xlu1 %5270, %v3658_v2   ;;  %4280 = vperm.xlu0 %5269, %v3657_v1  }
 0x406   :  { %4286 = vperm.xlu1 %5270, %v3659_v53   ;;  %4700 = vperm.xlu0 %5269, %v3678_v3  }
 0x40a   :  { %4572 = vperm.xlu1 %5270, %v3675_v5   ;;  %4703 = vperm.xlu0 %5269, %v3679_v41  }
 0x40e   :  { %4706 = vperm.xlu1 %5270, %v3680_v30   ;;  %4709 = vperm.xlu0 %5269, %v3681_v23  }
 0x412   :  { %4712 = vperm.xlu1 %5270, %v3682_v7   ;;  %4715 = vperm.xlu0 %5269, %v3683_v10  }
 0x415   :  { %v3697_v17 = vpop.permute.xlu1 %3696  ;;  %v3694_v36 = vpop.permute.xlu0 %3693 }
 0x416   :  { %v3723_v48 = vrot.slane %v3697_v17, %v7516_v15  ;;  %v3719_v37 = vrot.slane %v3694_v36, %v7516_v15 }
 0x418   :  { %v3748_v9 = vsel %vm2068_vm2, %v3723_v48, %v3719_v37 }
 0x419   :  { %v3700_v8 = vpop.permute.xlu1 %3699  ;;  %v3703_v42 = vpop.permute.xlu0 %3702 }
 0x41a   :  { %v3727_v60 = vrot.slane %v3700_v8, %v7516_v15  ;;  %v3731_v46 = vrot.slane %v3703_v42, %v7516_v15 }
 0x41c   :  { %v3749_v52 = vsel %vm2070_vm3, %v3727_v60, %v3748_v9 }
 0x41d   :  { %v3706_v56 = vpop.permute.xlu1 %3705  ;;  %v3709_v22 = vpop.permute.xlu0 %3708  ;;  %v3750_v62 = vsel %vm2072_vm4, %v3731_v46, %v3749_v52 }
 0x41e   :  { %v3735_v38 = vrot.slane %v3706_v56, %v7516_v15  ;;  %v3739_v58 = vrot.slane %v3709_v22, %v7516_v15 }
 0x420   :  { %v3751_v59 = vsel %vm2074_vm5, %v3735_v38, %v3750_v62  ;;  %v7200_v62 = vld [vmem:[#allocation2 + $0x10] sm:$0xff] }
 0x421   :  { %v3712_v31 = vpop.permute.xlu1 %3711  ;;  %v4412_v33 = vpop.permute.xlu0 %4411  ;;  %v3752_v50 = vsel %vm2076_vm6, %v3739_v58, %v3751_v59 }
 0x422   :  { %v3743_v61 = vrot.slane %v3712_v31, %v7516_v15  ;;  %v4438_v34 = vrot.slane %v4412_v33, %v7516_v15 }
 0x424   :  { %v3753_v6 = vsel %vm2078_vm7, %v3743_v61, %v3752_v50 }
 0x425   :  { %v3715_v39 = vpop.permute.xlu1 %3714  ;;  %v4415_v4 = vpop.permute.xlu0 %4414 }
 0x426   :  { %v3747_v51 = vrot.slane %v3715_v39, %v7516_v15  ;;  %v4442_v13 = vrot.slane %v4415_v4, %v7516_v15 }
 0x428   :  { %v3754_v27 = vsel %vm2080_vm8, %v3747_v51, %v3753_v6 }
 0x429   :  { %v4409_v20 = vpop.permute.xlu1 %4408  ;;  %5213 = vmatmul.mubr.msk.f32.vlgmr.msra.gmra.mrb[24].mxu1 %vm2139_vm9, %v3754_v27  ;;  %v4418_v44 = vpop.permute.xlu0 %4417 }
 0x42a   :  { %v4434_v35 = vrot.slane %v4409_v20, %v7516_v15  ;;  %5216 = vmatpush3.msra.mxu1 %v7159_v40  ;;  %5217 = vmatprep.mubr.msk.f32.mxu1 %vm5465_vm10, %v5464_v21  ;;  %v4446_v47 = vrot.slane %v4418_v44, %v7516_v15 }
 0x42b   :  { %5220 = vmatprep.subr.mxu1 %v5464_v21 }
 0x42c   :  { %v4463_v63 = vsel %vm2068_vm2, %v4438_v34, %v4434_v35 }
 0x42d   :  { %v4464_v24 = vsel %vm2070_vm3, %v4442_v13, %v4463_v63  ;;  %v4421_v2 = vpop.permute.xlu1 %4420  ;;  %v4424_v49 = vpop.permute.xlu0 %4423 }
 0x42e   :  { %v4465_v12 = vsel %vm2072_vm4, %v4446_v47, %v4464_v24  ;;  %v4450_v1 = vrot.slane %v4421_v2, %v7516_v15  ;;  %v4454_v0 = vrot.slane %v4424_v49, %v7516_v15 }
 0x430   :  { %v4466_v18 = vsel %vm2074_vm5, %v4450_v1, %v4465_v12 }
 0x431   :  { %v4467_v53 = vsel %vm2076_vm6, %v4454_v0, %v4466_v18  ;;  %v4427_v57 = vpop.permute.xlu1 %4426  ;;  %v3840_v55 = vpop.permute.xlu0 %3839 }
 0x432   :  { %v4458_v3 = vrot.slane %v4427_v57, %v7516_v15  ;;  %v3866_v43 = vrot.slane %v3840_v55, %v7516_v15 }
 0x434   :  { %v4468_v11 = vsel %vm2078_vm7, %v4458_v3, %v4467_v53 }
 0x435   :  { %v4430_v29 = vpop.permute.xlu1 %4429  ;;  %v3843_v5 = vpop.permute.xlu0 %3842 }
 0x436   :  { %v4462_v45 = vrot.slane %v4430_v29, %v7516_v15  ;;  %v3870_v26 = vrot.slane %v3843_v5, %v7516_v15 }
 0x438   :  { %v7178_v14 = vsel %vm2080_vm8, %v4462_v45, %v4468_v11 }
 0x439   :  { %v3837_v41 = vpop.permute.xlu1 %3836  ;;  %v3846_v19 = vpop.permute.xlu0 %3845 }
 0x43a   :  { %v3862_v30 = vrot.slane %v3837_v41, %v7516_v15  ;;  %v3874_v7 = vrot.slane %v3846_v19, %v7516_v15  ;;  %v7237_v41 = vld [vmem:[#allocation2 + $0x18] sm:$0xff] }
 0x43c   :  { %v3891_v28 = vsel %vm2068_vm2, %v3866_v43, %v3862_v30 }
 0x43d   :  { %v3892_v23 = vsel %vm2070_vm3, %v3870_v26, %v3891_v28  ;;  %v3849_v16 = vpop.permute.xlu1 %3848  ;;  %v3852_v25 = vpop.permute.xlu0 %3851 }
 0x43e   :  { %v3878_v32 = vrot.slane %v3849_v16, %v7516_v15  ;;  %v3893_v10 = vsel %vm2072_vm4, %v3874_v7, %v3892_v23  ;;  %v3882_v8 = vrot.slane %v3852_v25, %v7516_v15 }
 0x440   :  { %v3894_v42 = vsel %vm2074_vm5, %v3878_v32, %v3893_v10 }
 0x441   :  { %v3855_v17 = vpop.permute.xlu1 %3854  ;;  %v4555_v36 = vpop.permute.xlu0 %4554  ;;  %v3895_v56 = vsel %vm2076_vm6, %v3882_v8, %v3894_v42 }
 0x442   :  { %v3886_v48 = vrot.slane %v3855_v17, %v7516_v15  ;;  %v4581_v31 = vrot.slane %v4555_v36, %v7516_v15 }
 0x444   :  { %v3896_v9 = vsel %vm2078_vm7, %v3886_v48, %v3895_v56 }
 0x445   :  { %v3858_v37 = vpop.permute.xlu1 %3857  ;;  %v4558_v60 = vpop.permute.xlu0 %4557 }
 0x446   :  { %v3890_v22 = vrot.slane %v3858_v37, %v7516_v15  ;;  %v4585_v58 = vrot.slane %v4558_v60, %v7516_v15 }
 0x448   :  { %v3897_v46 = vsel %vm2080_vm8, %v3890_v22, %v3896_v9 }
 0x449   :  { %v4552_v52 = vpop.permute.xlu1 %4551  ;;  %5218 = vmatmul.mubr.msk.f32.vlgmr.msra.gmra.mrb[26].mxu1 %vm2139_vm9, %v3897_v46  ;;  %v7196_v38 = vpop.permute.xlu0 %4560 }
 0x44a   :  { %v4577_v33 = vrot.slane %v4552_v52, %v7516_v15  ;;  %5221 = vmatpush3.msra.mxu1 %v7200_v62  ;;  %5222 = vmatprep.mubr.msk.f32.mxu1 %vm5465_vm10, %v5464_v21 }
 0x44b   :  { %5225 = vmatprep.subr.mxu1 %v5464_v21 }
 0x44c   :  { %v4606_v59 = vsel %vm2068_vm2, %v4581_v31, %v4577_v33 }
 0x44d   :  { %v7209_v61 = vsel %vm2070_vm3, %v4585_v58, %v4606_v59  ;;  %v7211_v39 = vpop.permute.xlu1 %4563  ;;  %v7213_v4 = vpop.permute.xlu0 %4566  ;;  %v7260_v59 = vld [vmem:[#allocation2 + $0x20] sm:$0xff] }
 0x451   :  { %v7215_v50 = vpop.permute.xlu1 %4569  ;;  %v3983_v51 = vpop.permute.xlu0 %3982 }
 0x452   :  { %v4009_v20 = vrot.slane %v3983_v51, %v7516_v15 }
 0x455   :  { %v3980_v6 = vpop.permute.xlu1 %3979  ;;  %v3986_v27 = vpop.permute.xlu0 %3985 }
 0x456   :  { %v4005_v44 = vrot.slane %v3980_v6, %v7516_v15  ;;  %v4013_v34 = vrot.slane %v3986_v27, %v7516_v15 }
 0x458   :  { %v4034_v35 = vsel %vm2068_vm2, %v4009_v20, %v4005_v44 }
 0x459   :  { %v3992_v13 = vpop.permute.xlu1 %3991  ;;  %v3989_v63 = vpop.permute.xlu0 %3988  ;;  %v4035_v24 = vsel %vm2070_vm3, %v4013_v34, %v4034_v35 }
 0x45a   :  { %v4017_v47 = vrot.slane %v3989_v63, %v7516_v15  ;;  %v4021_v2 = vrot.slane %v3992_v13, %v7516_v15 }
 0x45c   :  { %v4036_v49 = vsel %vm2072_vm4, %v4017_v47, %v4035_v24 }
 0x45d   :  { %v3998_v12 = vpop.permute.xlu1 %3997  ;;  %v3995_v1 = vpop.permute.xlu0 %3994  ;;  %v4037_v53 = vsel %vm2074_vm5, %v4021_v2, %v4036_v49 }
 0x45e   :  { %v4025_v0 = vrot.slane %v3995_v1, %v7516_v15  ;;  %v4029_v18 = vrot.slane %v3998_v12, %v7516_v15 }
 0x460   :  { %v4038_v57 = vsel %vm2076_vm6, %v4025_v0, %v4037_v53  ;;  %v4589_v53 = vrot.slane %v7196_v38, %v7516_v15  ;;  %v4597_v38 = vrot.slane %v7213_v4, %v7516_v15 }
 0x461   :  { %v4001_v55 = vpop.permute.xlu1 %4000  ;;  %v7230_v11 = vpop.permute.xlu0 %4697  ;;  %v4039_v29 = vsel %vm2078_vm7, %v4029_v18, %v4038_v57 }
 0x462   :  { %v4033_v3 = vrot.slane %v4001_v55, %v7516_v15  ;;  %v4593_v55 = vrot.slane %v7211_v39, %v7516_v15  ;;  %v4724_v39 = vrot.slane %v7230_v11, %v7516_v15 }
 0x464   :  { %v4040_v5 = vsel %vm2080_vm8, %v4033_v3, %v4039_v29 }
 0x465   :  { %v7234_v45 = vpop.permute.xlu1 %4694  ;;  %5223 = vmatmul.mubr.msk.f32.vlgmr.msra.gmra.mrb[28].mxu1 %vm2139_vm9, %v4040_v5  ;;  %v4126_v19 = vpop.permute.xlu0 %4125  ;;  %v4608_v5 = vsel %vm2072_vm4, %v4589_v53, %v7209_v61 }
 0x466   :  { %5226 = vmatpush3.msra.mxu1 %v7237_v41  ;;  %5227 = vmatprep.mubr.msk.f32.mxu1 %vm5465_vm10, %v5464_v21  ;;  %v4152_v28 = vrot.slane %v4126_v19, %v7516_v15  ;;  %v4720_v19 = vrot.slane %v7234_v45, %v7516_v15  ;;  %v4609_v61 = vsel %vm2074_vm5, %v4593_v55, %v4608_v5 }
 0x467   :  { %5230 = vmatprep.subr.mxu1 %v5464_v21  ;;  %v4601_v45 = vrot.slane %v7215_v50, %v7516_v15 }
 0x468   :  { %v4749_v4 = vsel %vm2068_vm2, %v4724_v39, %v4720_v19 }
 0x469   :  { %v4123_v43 = vpop.permute.xlu1 %4122  ;;  %v4129_v26 = vpop.permute.xlu0 %4128 }
 0x46a   :  { %v4148_v30 = vrot.slane %v4123_v43, %v7516_v15  ;;  %v4156_v16 = vrot.slane %v4129_v26, %v7516_v15 }
 0x46c   :  { %v4177_v25 = vsel %vm2068_vm2, %v4152_v28, %v4148_v30  ;;  %v7294_v28 = vld [vmem:[#allocation2 + $0x28] sm:$0xff] }
 0x46d   :  { %v4135_v23 = vpop.permute.xlu1 %4134  ;;  %v4132_v7 = vpop.permute.xlu0 %4131  ;;  %v4178_v17 = vsel %vm2070_vm3, %v4156_v16, %v4177_v25 }
 0x46e   :  { %v4160_v32 = vrot.slane %v4132_v7, %v7516_v15  ;;  %v4164_v36 = vrot.slane %v4135_v23, %v7516_v15 }
 0x470   :  { %v4179_v8 = vsel %vm2072_vm4, %v4160_v32, %v4178_v17  ;;  %v7312_v17 = vld [vmem:[#allocation2 + $0x30] sm:$0xff] }
 0x471   :  { %v4141_v10 = vpop.permute.xlu1 %4140  ;;  %v4138_v48 = vpop.permute.xlu0 %4137  ;;  %v4180_v56 = vsel %vm2074_vm5, %v4164_v36, %v4179_v8 }
 0x472   :  { %v4172_v42 = vrot.slane %v4141_v10, %v7516_v15  ;;  %v4168_v37 = vrot.slane %v4138_v48, %v7516_v15  ;;  %v4610_v10 = vsel %vm2076_vm6, %v4597_v38, %v4609_v61 }
 0x473   :  { %v4611_v36 = vsel %vm2078_vm7, %v4601_v45, %v4610_v10 }
 0x474   :  { %v4181_v9 = vsel %vm2076_vm6, %v4168_v37, %v4180_v56 }
 0x475   :  { %v4144_v60 = vpop.permute.xlu1 %4143  ;;  %v4182_v46 = vsel %vm2078_vm7, %v4172_v42, %v4181_v9  ;;  %v4269_v52 = vpop.permute.xlu0 %4268 }
 0x476   :  { %v4176_v22 = vrot.slane %v4144_v60, %v7516_v15  ;;  %v4295_v6 = vrot.slane %v4269_v52, %v7516_v15 }
 0x478   :  { %v4183_v31 = vsel %vm2080_vm8, %v4176_v22, %v4182_v46  ;;  %v7325_v22 = vld [vmem:[#allocation2 + $0x38] sm:$0xff] }
 0x479   :  { %v4266_v33 = vpop.permute.xlu1 %4265  ;;  %5228 = vmatmul.mubr.msk.f32.vlgmr.msra.gmra.mrb[30].mxu1 %vm2139_vm9, %v4183_v31  ;;  %v4272_v51 = vpop.permute.xlu0 %4271 }
 0x47a   :  { %v4291_v58 = vrot.slane %v4266_v33, %v7516_v15  ;;  %5231 = vmatpush3.msra.mxu1 %v7260_v59  ;;  %5232 = vmatprep.mubr.msk.f32.mxu1 %vm5465_vm10, %v5464_v21  ;;  %v4299_v20 = vrot.slane %v4272_v51, %v7516_v15 }
 0x47b   :  { %5235 = vmatprep.subr.mxu1 %v5464_v21 }
 0x47c   :  { %v4320_v44 = vsel %vm2068_vm2, %v4295_v6, %v4291_v58 }
 0x47d   :  { %v4278_v27 = vpop.permute.xlu1 %4277  ;;  %v4275_v34 = vpop.permute.xlu0 %4274  ;;  %v4321_v63 = vsel %vm2070_vm3, %v4299_v20, %v4320_v44 }
 0x47e   :  { %v4303_v35 = vrot.slane %v4275_v34, %v7516_v15  ;;  %v4307_v47 = vrot.slane %v4278_v27, %v7516_v15 }
 0x480   :  { %v4322_v24 = vsel %vm2072_vm4, %v4303_v35, %v4321_v63 }
 0x481   :  { %v4284_v13 = vpop.permute.xlu1 %4283  ;;  %v4281_v49 = vpop.permute.xlu0 %4280  ;;  %v4323_v0 = vsel %vm2074_vm5, %v4307_v47, %v4322_v24 }
 0x482   :  { %v4315_v2 = vrot.slane %v4284_v13, %v7516_v15  ;;  %v4311_v12 = vrot.slane %v4281_v49, %v7516_v15 }
 0x484   :  { %v4324_v57 = vsel %vm2076_vm6, %v4311_v12, %v4323_v0  ;;  %v7341_v0 = vld [vmem:[%s7382_s5] ss:$0 sm:$0xff] }
 0x485   :  { %v4287_v1 = vpop.permute.xlu1 %4286  ;;  %v4325_v3 = vsel %vm2078_vm7, %v4315_v2, %v4324_v57  ;;  %v4701_v29 = vpop.permute.xlu0 %4700 }
 0x486   :  { %v4319_v18 = vrot.slane %v4287_v1, %v7516_v15  ;;  %v4728_v26 = vrot.slane %v4701_v29, %v7516_v15 }
 0x488   :  { %v4326_v43 = vsel %vm2080_vm8, %v4319_v18, %v4325_v3  ;;  %v4750_v7 = vsel %vm2070_vm3, %v4728_v26, %v4749_v4 }
 0x489   :  { %v4573_v30 = vpop.permute.xlu1 %4572  ;;  %5233 = vmatmul.mubr.msk.f32.vlgmr.msra.gmra.mrb[32].mxu1 %vm2139_vm9, %v4326_v43  ;;  %v4704_v23 = vpop.permute.xlu0 %4703 }
 0x48a   :  { %5236 = vmatpush3.msra.mxu1 %v7294_v28  ;;  %5237 = vmatprep.mubr.msk.f32.mxu1 %vm5465_vm10, %v5464_v21  ;;  %v4605_v16 = vrot.slane %v4573_v30, %v7516_v15  ;;  %v4732_v11 = vrot.slane %v4704_v23, %v7516_v15 }
 0x48b   :  { %5240 = vmatprep.subr.mxu1 %v5464_v21 }
 0x48c   :  { %v4751_v50 = vsel %vm2072_vm4, %v4732_v11, %v4750_v7 }
 0x48d   :  { %v4707_v25 = vpop.permute.xlu1 %4706  ;;  %5238 = vmatmul.mubr.msk.f32.vlgmr.msra.gmra.mrb[34].mxu1 %vm2139_vm9, %v7178_v14  ;;  %v4710_v42 = vpop.permute.xlu0 %4709  ;;  %v4612_v14 = vsel %vm2080_vm8, %v4605_v16, %v4611_v36 }
 0x48e   :  { %v4736_v32 = vrot.slane %v4707_v25, %v7516_v15  ;;  %5241 = vmatpush3.msra.mxu1 %v7312_v17  ;;  %5242 = vmatprep.mubr.msk.f32.mxu1 %vm5465_vm10, %v5464_v21  ;;  %v4740_v48 = vrot.slane %v4710_v42, %v7516_v15 }
 0x48f   :  { %5245 = vmatprep.subr.mxu1 %v5464_v21 }
 0x490   :  { %v4752_v8 = vsel %vm2074_vm5, %v4736_v32, %v4751_v50 }
 0x491   :  { %v4713_v37 = vpop.permute.xlu1 %4712  ;;  %5243 = vmatmul.mubr.msk.f32.vlgmr.msra.gmra.mrb[36].mxu1 %vm2139_vm9, %v4612_v14  ;;  %v4753_v56 = vsel %vm2076_vm6, %v4740_v48, %v4752_v8  ;;  %v4716_v46 = vpop.permute.xlu0 %4715 }
 0x492   :  { %v4744_v60 = vrot.slane %v4713_v37, %v7516_v15  ;;  %5246 = vmatpush3.msra.mxu1 %v7325_v22  ;;  %5247 = vmatprep.mubr.msk.f32.mxu1 %vm5465_vm10, %v5464_v21  ;;  %v4748_v52 = vrot.slane %v4716_v46, %v7516_v15 }
 0x494   :  { %v4754_v9 = vsel %vm2078_vm7, %v4744_v60, %v4753_v56 }
 0x495   :  { %v4755_v31 = vsel %vm2080_vm8, %v4748_v52, %v4754_v9 }
 0x496   :  { %5248 = vmatmul.mubr.msk.f32.vlgmr.msra.gmra.mrb[38].mxu1 %vm2139_vm9, %v4755_v31 }
 0x4fc   :  { %v3823_v33 = vpop.f32.mrb[24].mxu1 }
 0x4fd   :  { %v5214_v58 = vpop.f32.mrb[25].mxu1  ;;  %v4828_v51 = vmul.f32 %v7019_v54, %v3823_v33 }
 0x4ff   :  { %v4836_v6 = vsel %vm840_vm0, %v4828_v51, 0.0 }
 0x500   :  { %v4837_v27 = vrot.slane %v4836_v6, 4 }
 0x502   :  { %v4838_v20 = vadd.f32 %v4837_v27, %v4836_v6 }
 0x504   :  { %v4839_v35 = vrot.slane %v4838_v20, 2 }
 0x506   :  { %v4840_v63 = vadd.f32 %v4839_v35, %v4838_v20 }
 0x508   :  { %v4841_v2 = vrot.slane %v4840_v63, 1 }
 0x50a   :  { %v4842_v1 = vadd.f32 %v4841_v2, %v4840_v63 }
 0x50c   :  { %v4899_v18 = vmul.f32 %v7341_v0, %v4842_v1 }
 0x51c   :  { %v3966_v44 = vpop.f32.mrb[26].mxu1 }
 0x51d   :  { %v4829_v21 = vmul.f32 %v7159_v40, %v3966_v44  ;;  %v5219_v34 = vpop.f32.mrb[27].mxu1 }
 0x51f   :  { %v4843_v13 = vsel %vm840_vm0, %v4829_v21, 0.0 }
 0x520   :  { %v4844_v15 = vrot.slane %v4843_v13, 4 }
 0x522   :  { %v4845_v47 = vadd.f32 %v4844_v15, %v4843_v13 }
 0x524   :  { %v4846_v24 = vrot.slane %v4845_v47, 2 }
 0x526   :  { %v4847_v49 = vadd.f32 %v4846_v24, %v4845_v47 }
 0x528   :  { %v4848_v12 = vrot.slane %v4847_v49, 1 }
 0x52a   :  { %v4849_v54 = vadd.f32 %v4848_v12, %v4847_v49 }
 0x52c   :  { %v4900_v40 = vmul.f32 %v7341_v0, %v4849_v54 }
 0x52e   :  { %v4915_v53 = vrot.slane %v4900_v40, 7 }
 0x530   :  { %v4916_v57 = vsel %vm2068_vm2, %v4915_v53, %v4899_v18 }
 0x538   :  { %v4109_v55 = vpop.f32.mrb[28].mxu1 }
 0x539   :  { %v4830_v3 = vmul.f32 %v7200_v62, %v4109_v55  ;;  %v5224_v29 = vpop.f32.mrb[29].mxu1 }
 0x53b   :  { %v4850_v5 = vsel %vm840_vm0, %v4830_v3, 0.0 }
 0x53c   :  { %v4851_v19 = vrot.slane %v4850_v5, 4 }
 0x53e   :  { %v4852_v43 = vadd.f32 %v4851_v19, %v4850_v5 }
 0x540   :  { %v4853_v30 = vrot.slane %v4852_v43, 2 }
 0x542   :  { %v4854_v26 = vadd.f32 %v4853_v30, %v4852_v43 }
 0x544   :  { %v4855_v38 = vrot.slane %v4854_v26, 1 }
 0x546   :  { %v4856_v39 = vadd.f32 %v4855_v38, %v4854_v26 }
 0x548   :  { %v4901_v61 = vmul.f32 %v7341_v0, %v4856_v39 }
 0x54a   :  { %v4917_v45 = vrot.slane %v4901_v61, 6 }
 0x54c   :  { %v4918_v23 = vsel %vm2070_vm3, %v4917_v45, %v4916_v57  ;;  %v4252_v4 = vpop.f32.mrb[30].mxu1 }
 0x54d   :  { %v4831_v16 = vmul.f32 %v7237_v41, %v4252_v4  ;;  %v5229_v11 = vpop.f32.mrb[31].mxu1 }
 0x54f   :  { %v4857_v62 = vsel %vm840_vm0, %v4831_v16, 0.0 }
 0x550   :  { %v4858_v25 = vrot.slane %v4857_v62, 4 }
 0x552   :  { %v4859_v7 = vadd.f32 %v4858_v25, %v4857_v62  ;;  %v4933_v62 = vld [vmem:[%s7378_s1] sm:$0xff] }
 0x554   :  { %v4860_v32 = vrot.slane %v4859_v7, 2 }
 0x556   :  { %v4861_v10 = vadd.f32 %v4860_v32, %v4859_v7 }
 0x558   :  { %v4862_v50 = vrot.slane %v4861_v10, 1 }
 0x55a   :  { %v4863_v36 = vadd.f32 %v4862_v50, %v4861_v10 }
 0x55c   :  { %v4902_v8 = vmul.f32 %v7341_v0, %v4863_v36  ;;  %v4395_v42 = vpop.f32.mrb[32].mxu1 }
 0x55d   :  { %v4832_v14 = vmul.f32 %v7260_v59, %v4395_v42  ;;  %v5234_v48 = vpop.f32.mrb[33].mxu1 }
 0x55e   :  { %v4919_v37 = vrot.slane %v4902_v8, 5 }
 0x55f   :  { %v4864_v60 = vsel %vm840_vm0, %v4832_v14, 0.0 }
 0x560   :  { %v4865_v56 = vrot.slane %v4864_v60, 4  ;;  %v4538_v41 = vpop.f32.mrb[34].mxu1  ;;  %v4920_v9 = vsel %vm2072_vm4, %v4919_v37, %v4918_v23 }
 0x561   :  { %v4833_v46 = vmul.f32 %v7294_v28, %v4538_v41  ;;  %v5239_v52 = vpop.f32.mrb[35].mxu1 }
 0x562   :  { %v4866_v31 = vadd.f32 %v4865_v56, %v4864_v60 }
 0x563   :  { %v4871_v33 = vsel %vm840_vm0, %v4833_v46, 0.0 }
 0x564   :  { %v4867_v58 = vrot.slane %v4866_v31, 2  ;;  %v4872_v51 = vrot.slane %v4871_v33, 4  ;;  %v4681_v6 = vpop.f32.mrb[36].mxu1 }
 0x565   :  { %v4834_v27 = vmul.f32 %v7312_v17, %v4681_v6  ;;  %v5244_v59 = vpop.f32.mrb[37].mxu1 }
 0x566   :  { %v4868_v20 = vadd.f32 %v4867_v58, %v4866_v31  ;;  %v4873_v44 = vadd.f32 %v4872_v51, %v4871_v33 }
 0x567   :  { %v4878_v21 = vsel %vm840_vm0, %v4834_v27, 0.0 }
 0x568   :  { %v4869_v34 = vrot.slane %v4868_v20, 1  ;;  %v4874_v35 = vrot.slane %v4873_v44, 2  ;;  %v4879_v13 = vrot.slane %v4878_v21, 4 }
 0x569   :  { %v4824_v47 = vpop.f32.mrb[38].mxu1 }
 0x56a   :  { %v4870_v15 = vadd.f32 %v4869_v34, %v4868_v20  ;;  %v4875_v63 = vadd.f32 %v4874_v35, %v4873_v44  ;;  %v4880_v28 = vadd.f32 %v4879_v13, %v4878_v21  ;;  %v4835_v24 = vmul.f32 %v7325_v22, %v4824_v47  ;;  %v5249_v2 = vpop.f32.mrb[39].mxu1 }
 0x56c   :  { %v4903_v49 = vmul.f32 %v7341_v0, %v4870_v15  ;;  %v4876_v12 = vrot.slane %v4875_v63, 1  ;;  %v4881_v1 = vrot.slane %v4880_v28, 2  ;;  %v4885_v17 = vsel %vm840_vm0, %v4835_v24, 0.0 }
 0x56d   :  { %v4886_v53 = vrot.slane %v4885_v17, 4 }
 0x56e   :  { %v4921_v54 = vrot.slane %v4903_v49, 4  ;;  %v4877_v40 = vadd.f32 %v4876_v12, %v4875_v63  ;;  %v4882_v18 = vadd.f32 %v4881_v1, %v4880_v28 }
 0x56f   :  { %v4887_v3 = vadd.f32 %v4886_v53, %v4885_v17 }
 0x570   :  { %v4904_v57 = vmul.f32 %v7341_v0, %v4877_v40  ;;  %v4883_v55 = vrot.slane %v4882_v18, 1  ;;  %v4922_v29 = vsel %vm2074_vm5, %v4921_v54, %v4920_v9 }
 0x571   :  { %v4888_v22 = vrot.slane %v4887_v3, 2 }
 0x572   :  { %v4923_v5 = vrot.slane %v4904_v57, 3  ;;  %v4884_v19 = vadd.f32 %v4883_v55, %v4882_v18 }
 0x573   :  { %v4889_v30 = vadd.f32 %v4888_v22, %v4887_v3 }
 0x574   :  { %v4905_v43 = vmul.f32 %v7341_v0, %v4884_v19  ;;  %v4924_v26 = vsel %vm2076_vm6, %v4923_v5, %v4922_v29 }
 0x575   :  { %v4890_v38 = vrot.slane %v4889_v30, 1 }
 0x576   :  { %v4925_v39 = vrot.slane %v4905_v43, 2 }
 0x577   :  { %v4891_v61 = vadd.f32 %v4890_v38, %v4889_v30 }
 0x578   :  { %v4926_v45 = vsel %vm2078_vm7, %v4925_v39, %v4924_v26 }
 0x579   :  { %v4906_v23 = vmul.f32 %v7341_v0, %v4891_v61 }
 0x57b   :  { %v4927_v4 = vrot.slane %v4906_v23, 1 }
 0x57d   :  { %v4928_v16 = vsel %vm2080_vm8, %v4927_v4, %v4926_v45 }
 0x57e   :  { %v4930_v11 = vsel %vm840_vm0, %v4928_v16, 0.0 }
 0x57f   :  { %4931 = vadd.xlane.f32.xlu1 %v4930_v11 }
 0x60c   :  { %v4932_v25 = vpop.xlane.xlu1 %4931 }
 0x60d   :  { %v4934_v7 = vadd.f32 %v4933_v62, %v4932_v25 }
 0x60f   :  { %v4935_v32 = vsub.f32 0.0, %v4934_v7 }
 0x611   :  { %v4936_v10 = vmul.f32 1.442695, %v4935_v32 }
 0x613   :  { %5423 = vpow2.f32 %v4936_v10 }
 0x61d   :  { %v5424_v50 = vpop.eup %5423 }
 0x61e   :  { %v4938_v36 = vadd.f32 1.0, %v5424_v50 }
 0x620   :  { %5425 = vrcp.f32 %v4938_v36 }
 0x62a   :  { %v5426_v0 = vpop.eup %5425 }
 0x62b   :  { %4941 = vst.msk [vmem:[%s7383_s6] sm:$0xff] %vm4940_vm11, %v5426_v0 }
 0x62c   :  { %4946 = vsyncpa [#allocation3], 1 }

</bundles_post_ra>
